<compile_context>
chip_gen: v5e
topology: v5e:2x2
jax: 0.10.0
libtpu: 0.0.40
codegen_flags: <defaults>
</compile_context>

<pallas_src>
import functools

import numpy as np
import jax
import jax.numpy as jnp
from jax.experimental import pallas as pl
from jax.experimental.pallas import tpu as pltpu

# (name, kernel_size, stride) for the four conv layers.
_CONV_DEFS = [("conv1", 8, 4), ("conv2", 4, 2), ("conv3", 3, 1), ("conv4", 3, 1)]
_FC3_PAD = 128  # fc3 output padded to one full lane group; sliced back in JAX


# ----------------------------------------------------------------------------
# Fused kernel: conv1 matmul -> conv2/3/4 (in-kernel patch gather) -> fc1/2/3
# One grid step == one sample; everything stays in VMEM.
# ----------------------------------------------------------------------------
def _dqn_fused_kernel(p1_ref, w1_ref, b1_ref,
                      s2_ref, w2_ref, b2_ref,
                      s3_ref, w3_ref, b3_ref,
                      s4_ref, w4_ref, b4_ref,
                      wf1_ref, bf1_ref,
                      wf2_ref, bf2_ref,
                      wf3_ref, bf3_ref,
                      o_ref):
    f32 = jnp.float32

    def conv_taps(a_in, s_ref, w_ref, b_ref):
        # a_in: (Hi*Wi, Cin) bf16;  s_ref: (taps, Ho*Wo, Hi*Wi) 0/1 bf16;
        # w_ref: (taps, Cin, Cout) bf16;  b_ref: (1, Cout) f32.
        acc = None
        for t in range(s_ref.shape[0]):
            gathered = jnp.dot(s_ref[t], a_in, preferred_element_type=f32)
            contrib = jnp.dot(gathered.astype(a_in.dtype), w_ref[t],
                              preferred_element_type=f32)
            acc = contrib if acc is None else acc + contrib
        return jnp.maximum(acc + b_ref[...], 0.0).astype(a_in.dtype)

    # conv1: XLA-built im2col patches (Ho*Wo, 8*8*Cin) @ (8*8*Cin, 32)
    a = jnp.dot(p1_ref[0], w1_ref[...], preferred_element_type=f32)
    a = jnp.maximum(a + b1_ref[...], 0.0).astype(jnp.bfloat16)   # (196, 32)

    a = conv_taps(a, s2_ref, w2_ref, b2_ref)                     # (36, 64)
    a = conv_taps(a, s3_ref, w3_ref, b3_ref)                     # (16, 64)
    a = conv_taps(a, s4_ref, w4_ref, b4_ref)                     # (4, 32)

    # fc1: PyTorch's NCHW flatten is folded into per-spatial-position weight
    # slabs (p, 32, 512), so no in-kernel reshape of the (p, 32) activation.
    h = bf1_ref[...]                                             # (1, 512) f32
    for m in range(wf1_ref.shape[0]):
        h = h + jnp.dot(a[m:m + 1, :], wf1_ref[m], preferred_element_type=f32)
    h = jnp.maximum(h, 0.0).astype(jnp.bfloat16)
    h = jnp.dot(h, wf2_ref[...], preferred_element_type=f32) + bf2_ref[...]
    h = jnp.maximum(h, 0.0).astype(jnp.bfloat16)
    q = jnp.dot(h, wf3_ref[...], preferred_element_type=f32) + bf3_ref[...]
    o_ref[0] = q.astype(o_ref.dtype)


def _const_spec(arr):
    nd = arr.ndim

    def index_map(i):
        return (0,) * nd

    return pl.BlockSpec(arr.shape, index_map)


def _cost_estimate(kp, patches1):
    n, m1, k1 = patches1.shape

    def mm(m, k, c):
        return 2 * m * k * c

    flops = mm(m1, k1, kp["conv1_w"].shape[1])
    for name in ("conv2", "conv3", "conv4"):
        taps, mo, mi = kp[name + "_s"].shape
        _, ci, co = kp[name + "_w"].shape
        flops += taps * (mm(mo, mi, ci) + mm(mo, ci, co))
    p, c1, f1 = kp["fc1_w"].shape
    flops += p * mm(1, c1, f1)
    flops += mm(1, kp["fc2_w"].shape[0], kp["fc2_w"].shape[1])
    flops += mm(1, kp["fc3_w"].shape[0], kp["fc3_w"].shape[1])
    flops *= n

    bytes_accessed = patches1.size * patches1.dtype.itemsize
    for v in kp.values():
        bytes_accessed += v.size * v.dtype.itemsize
    bytes_accessed += n * kp["fc3_w"].shape[1] * 4
    return pl.CostEstimate(flops=int(flops), transcendentals=0,
                           bytes_accessed=int(bytes_accessed))


def dqn_fused(kp, patches1):
    """patches1: (N, Ho1*Wo1, 8*8*Cin) bf16 -> (N, 128) f32 Q-values (padded)."""
    n, m1, k1 = patches1.shape
    n_pad = kp["fc3_w"].shape[1]

    operands = [patches1,
                kp["conv1_w"], kp["conv1_b"],
                kp["conv2_s"], kp["conv2_w"], kp["conv2_b"],
                kp["conv3_s"], kp["conv3_w"], kp["conv3_b"],
                kp["conv4_s"], kp["conv4_w"], kp["conv4_b"],
                kp["fc1_w"], kp["fc1_b"],
                kp["fc2_w"], kp["fc2_b"],
                kp["fc3_w"], kp["fc3_b"]]

    in_specs = [pl.BlockSpec((1, m1, k1), lambda i: (i, 0, 0))]
    in_specs += [_const_spec(a) for a in operands[1:]]

    out = pl.pallas_call(
        _dqn_fused_kernel,
        out_shape=jax.ShapeDtypeStruct((n, 1, n_pad), jnp.float32),
        grid=(n,),
        in_specs=in_specs,
        out_specs=pl.BlockSpec((1, 1, n_pad), lambda i: (i, 0, 0)),
        compiler_params=pltpu.CompilerParams(
            dimension_semantics=("parallel",),
            vmem_limit_bytes=32 * 1024 * 1024),
        cost_estimate=_cost_estimate(kp, patches1),
    )(*operands)
    return out.reshape(n, n_pad)


# ----------------------------------------------------------------------------
# XLA-side glue (conv1 patches only) and parameter preparation
# ----------------------------------------------------------------------------
def im2col_nhwc(x, kh, kw, stride):
    # TODO(synk): conv1's patch gather stays XLA-side (strided window extraction
    # of the raw input); convs 2-4 gather in-kernel via selection matmuls.
    n, h, w, c = x.shape
    ho = (h - kh) // stride + 1
    wo = (w - kw) // stride + 1
    taps = []
    for i in range(kh):
        for j in range(kw):
            taps.append(x[:, i:i + stride * ho:stride, j:j + stride * wo:stride, :])
    cols = jnp.stack(taps, axis=3)                       # (n, ho, wo, kh*kw, c)
    return cols.reshape(n, ho * wo, kh * kw * c)


def conv_out_hw(h, w):
    sizes = []
    for _, k, s in _CONV_DEFS:
        h = (h - k) // s + 1
        w = (w - k) // s + 1
        sizes.append((h, w))
    return sizes


def _selection_matrices(hi, wi, k, s):
    """0/1 gather matrices: S[t, ho*Wo+wo, (s*ho+ki)*Wi + s*wo+kj] = 1, t=ki*k+kj."""
    ho = (hi - k) // s + 1
    wo = (wi - k) // s + 1
    sel = np.zeros((k * k, ho * wo, hi * wi), np.float32)
    for ki in range(k):
        for kj in range(k):
            t = ki * k + kj
            for oh in range(ho):
                for ow in range(wo):
                    sel[t, oh * wo + ow, (s * oh + ki) * wi + (s * ow + kj)] = 1.0
    return sel


def _uniform(key, shape, fan_in):
    bound = 1.0 / jnp.sqrt(jnp.float32(fan_in))
    return jax.random.uniform(key, shape, jnp.float32, -bound, bound)


def init_params(key, in_channels, n_actions, feature_size):
    keys = jax.random.split(key, 14)
    p = {}
    conv_io = {"conv1": (32, in_channels), "conv2": (64, 32),
               "conv3": (64, 64), "conv4": (32, 64)}
    ki = 0
    for name, k, _ in _CONV_DEFS:
        cout, cin = conv_io[name]
        fan_in = cin * k * k
        p[name + "_w"] = _uniform(keys[ki], (cout, cin, k, k), fan_in); ki += 1
        p[name + "_b"] = _uniform(keys[ki], (cout,), fan_in); ki += 1
    for name, fin, fout in [("fc1", feature_size, 512), ("fc2", 512, 256),
                            ("fc3", 256, n_actions)]:
        p[name + "_w"] = _uniform(keys[ki], (fin, fout), fin); ki += 1
        p[name + "_b"] = _uniform(keys[ki], (fout,), fin); ki += 1
    return p


def prepare_params(params, input_hw, n_actions):
    """One-time conversion of PyTorch-layout params to the fused-kernel layout.
    All contraction dims use the real channel counts (no 128-wide padding)."""
    kp = {}
    hw_sizes = conv_out_hw(*input_hw)

    # conv1: flattened im2col weight (kh*kw*cin, cout), tap order matching
    # im2col_nhwc's column order.
    w1 = params["conv1_w"]                                # (32, cin, 8, 8)
    kp["conv1_w"] = jnp.transpose(w1, (2, 3, 1, 0)).reshape(
        -1, w1.shape[0]).astype(jnp.bfloat16)
    kp["conv1_b"] = params["conv1_b"].reshape(1, -1).astype(jnp.float32)

    # conv2..4: per-tap (cin, cout) slabs + 0/1 spatial gather matrices.
    for idx, (name, k, s) in enumerate(_CONV_DEFS[1:], start=1):
        w = params[name + "_w"]                           # (cout, cin, k, k)
        hi, wi = hw_sizes[idx - 1]
        kp[name + "_s"] = jnp.asarray(_selection_matrices(hi, wi, k, s),
                                      jnp.bfloat16)
        wt = jnp.transpose(w, (2, 3, 1, 0)).reshape(k * k, w.shape[1], w.shape[0])
        kp[name + "_w"] = wt.astype(jnp.bfloat16)
        kp[name + "_b"] = params[name + "_b"].reshape(1, -1).astype(jnp.float32)

    # fc1: PyTorch flatten order is (c, h, w); regroup rows into per-spatial
    # (h*w, c, 512) slabs so the kernel consumes the conv4 (h*w, c) activation
    # without an in-kernel reshape.
    h4, w4 = hw_sizes[-1]
    cout4 = params["conv4_w"].shape[0]
    wf1 = params["fc1_w"].reshape(cout4, h4 * w4, -1)      # (c, p, 512)
    kp["fc1_w"] = jnp.transpose(wf1, (1, 0, 2)).astype(jnp.bfloat16)
    kp["fc1_b"] = params["fc1_b"].reshape(1, -1).astype(jnp.float32)
    kp["fc2_w"] = params["fc2_w"].astype(jnp.bfloat16)
    kp["fc2_b"] = params["fc2_b"].reshape(1, -1).astype(jnp.float32)
    kp["fc3_w"] = jnp.pad(params["fc3_w"],
                          ((0, 0), (0, _FC3_PAD - n_actions))).astype(jnp.bfloat16)
    kp["fc3_b"] = jnp.pad(params["fc3_b"],
                          (0, _FC3_PAD - n_actions)).reshape(1, _FC3_PAD
                                                             ).astype(jnp.float32)
    return kp


# ----------------------------------------------------------------------------
# Forward pass (mirrors DQNNetwork.forward)
# ----------------------------------------------------------------------------
@functools.partial(jax.jit, static_argnums=(2,))
def dqn_forward(kp, x, n_actions):
    x = jnp.transpose(x, (0, 2, 3, 1)).astype(jnp.bfloat16)   # NCHW -> NHWC once
    patches1 = im2col_nhwc(x, 8, 8, 4)                        # (N, Ho*Wo, 8*8*Cin)
    q = dqn_fused(kp, patches1)                               # (N, 128) f32
    return q[:, :n_actions]


# ----------------------------------------------------------------------------
# Pure-JAX f32 reference (PyTorch semantics) for the in-script check
# ----------------------------------------------------------------------------
def dqn_forward_ref(params, x):
    def conv(x, w, b, s):
        y = jax.lax.conv_general_dilated(
            x, w, window_strides=(s, s), padding="VALID",
            dimension_numbers=("NCHW", "OIHW", "NCHW"))
        return jax.nn.relu(y + b[None, :, None, None])
    x = conv(x, params["conv1_w"], params["conv1_b"], 4)
    x = conv(x, params["conv2_w"], params["conv2_b"], 2)
    x = conv(x, params["conv3_w"], params["conv3_b"], 1)
    x = conv(x, params["conv4_w"], params["conv4_b"], 1)
    x = x.reshape(x.shape[0], -1)
    x = jax.nn.relu(x @ params["fc1_w"] + params["fc1_b"])
    x = jax.nn.relu(x @ params["fc2_w"] + params["fc2_b"])
    return x @ params["fc3_w"] + params["fc3_b"]


if __name__ == "__main__":
    # Small-but-valid input: 4 stacked 60x60 frames, batch 2, 3 actions
    # (Freeway has 3 actions). Conv stack: 60 -> 14 -> 6 -> 4 -> 2, so the
    # PyTorch flattened feature size is 32*2*2 = 128.
    batch, in_channels, hw, n_actions = 2, 4, 60, 3
    h4, w4 = conv_out_hw(hw, hw)[-1]
    feature_size = 32 * h4 * w4

    key = jax.random.PRNGKey(0)
    k_params, k_x = jax.random.split(key)
    params = init_params(k_params, in_channels, n_actions, feature_size)
    x = jax.random.uniform(k_x, (batch, in_channels, hw, hw), jnp.float32)

    kparams = prepare_params(params, (hw, hw), n_actions)
    q_values = jax.block_until_ready(dqn_forward(kparams, x, n_actions))
    q_ref = jax.block_until_ready(dqn_forward_ref(params, x))

    assert q_values.shape == (batch, n_actions), q_values.shape
    # bf16 matmul operands (f32 accumulation) vs. an all-f32 reference.
    # (The in-kernel 0/1 gather matmuls are exact, so drift is unchanged.)
    assert jnp.allclose(q_values, q_ref, rtol=5e-2, atol=5e-2), (
        "mismatch vs reference", q_values, q_ref)

    print("KERNEL_OK")
</pallas_src>

<mosaic_0001>
module attributes {stable_mosaic.version = 11 : i64} {
  func.func @_dqn_fused_kernel(%arg0: i32, %arg1: memref<1x196x256xbf16, #tpu.memory_space<vmem>>, %arg2: memref<256x32xbf16, #tpu.memory_space<vmem>>, %arg3: memref<1x32xf32, #tpu.memory_space<vmem>>, %arg4: memref<16x36x196xbf16, #tpu.memory_space<vmem>>, %arg5: memref<16x32x64xbf16, #tpu.memory_space<vmem>>, %arg6: memref<1x64xf32, #tpu.memory_space<vmem>>, %arg7: memref<9x16x36xbf16, #tpu.memory_space<vmem>>, %arg8: memref<9x64x64xbf16, #tpu.memory_space<vmem>>, %arg9: memref<1x64xf32, #tpu.memory_space<vmem>>, %arg10: memref<9x4x16xbf16, #tpu.memory_space<vmem>>, %arg11: memref<9x64x32xbf16, #tpu.memory_space<vmem>>, %arg12: memref<1x32xf32, #tpu.memory_space<vmem>>, %arg13: memref<4x32x512xbf16, #tpu.memory_space<vmem>>, %arg14: memref<1x512xf32, #tpu.memory_space<vmem>>, %arg15: memref<512x256xbf16, #tpu.memory_space<vmem>>, %arg16: memref<1x256xf32, #tpu.memory_space<vmem>>, %arg17: memref<256x128xbf16, #tpu.memory_space<vmem>>, %arg18: memref<1x128xf32, #tpu.memory_space<vmem>>, %arg19: memref<1x1x128xf32, #tpu.memory_space<vmem>>) attributes {dimension_semantics = [#tpu.dimension_semantics<parallel>], iteration_bounds = array<i64: 2>, scalar_prefetch = 0 : i64, scratch_operands = 0 : i64, tpu.core_type = #tpu.core_type<tc>, window_params = [{transform_indices = @transform_0, window_bounds = array<i64: 1, 196, 256>}, {pipeline_mode = #tpu.pipeline_mode<synchronous>, transform_indices = @transform_1, window_bounds = array<i64: 256, 32>}, {pipeline_mode = #tpu.pipeline_mode<synchronous>, transform_indices = @transform_2, window_bounds = array<i64: 1, 32>}, {pipeline_mode = #tpu.pipeline_mode<synchronous>, transform_indices = @transform_3, window_bounds = array<i64: 16, 36, 196>}, {pipeline_mode = #tpu.pipeline_mode<synchronous>, transform_indices = @transform_4, window_bounds = array<i64: 16, 32, 64>}, {pipeline_mode = #tpu.pipeline_mode<synchronous>, transform_indices = @transform_5, window_bounds = array<i64: 1, 64>}, {pipeline_mode = #tpu.pipeline_mode<synchronous>, transform_indices = @transform_6, window_bounds = array<i64: 9, 16, 36>}, {pipeline_mode = #tpu.pipeline_mode<synchronous>, transform_indices = @transform_7, window_bounds = array<i64: 9, 64, 64>}, {pipeline_mode = #tpu.pipeline_mode<synchronous>, transform_indices = @transform_8, window_bounds = array<i64: 1, 64>}, {pipeline_mode = #tpu.pipeline_mode<synchronous>, transform_indices = @transform_9, window_bounds = array<i64: 9, 4, 16>}, {pipeline_mode = #tpu.pipeline_mode<synchronous>, transform_indices = @transform_10, window_bounds = array<i64: 9, 64, 32>}, {pipeline_mode = #tpu.pipeline_mode<synchronous>, transform_indices = @transform_11, window_bounds = array<i64: 1, 32>}, {pipeline_mode = #tpu.pipeline_mode<synchronous>, transform_indices = @transform_12, window_bounds = array<i64: 4, 32, 512>}, {pipeline_mode = #tpu.pipeline_mode<synchronous>, transform_indices = @transform_13, window_bounds = array<i64: 1, 512>}, {pipeline_mode = #tpu.pipeline_mode<synchronous>, transform_indices = @transform_14, window_bounds = array<i64: 512, 256>}, {pipeline_mode = #tpu.pipeline_mode<synchronous>, transform_indices = @transform_15, window_bounds = array<i64: 1, 256>}, {pipeline_mode = #tpu.pipeline_mode<synchronous>, transform_indices = @transform_16, window_bounds = array<i64: 256, 128>}, {pipeline_mode = #tpu.pipeline_mode<synchronous>, transform_indices = @transform_17, window_bounds = array<i64: 1, 128>}, {transform_indices = @transform_18, window_bounds = array<i64: 1, 1, 128>}]} {
    %c0 = arith.constant 0 : index
    %c0_0 = arith.constant 0 : index
    %c0_1 = arith.constant 0 : index
    %0 = vector.load %arg1[%c0, %c0_0, %c0_1] : memref<1x196x256xbf16, #tpu.memory_space<vmem>>, vector<1x196x256xbf16>
    %1 = vector.shape_cast %0 : vector<1x196x256xbf16> to vector<196x256xbf16>
    %c0_2 = arith.constant 0 : index
    %c0_3 = arith.constant 0 : index
    %2 = vector.load %arg2[%c0_2, %c0_3] : memref<256x32xbf16, #tpu.memory_space<vmem>>, vector<256x32xbf16>
    %cst = arith.constant dense<0.000000e+00> : vector<196x32xf32>
    %3 = tpu.matmul %1, %2, %cst {dimension_numbers = #tpu.dot_dimension_numbers<[1], [0], [0], [1], [0, 0, 1, 1], [], []>} : vector<196x256xbf16>, vector<256x32xbf16>, vector<196x32xf32> -> vector<196x32xf32>
    %c0_4 = arith.constant 0 : index
    %c0_5 = arith.constant 0 : index
    %4 = vector.load %arg3[%c0_4, %c0_5] : memref<1x32xf32, #tpu.memory_space<vmem>>, vector<1x32xf32>
    %5 = vector.broadcast %4 : vector<1x32xf32> to vector<196x32xf32>
    %6 = arith.addf %3, %5 : vector<196x32xf32>
    %cst_6 = arith.constant 0.000000e+00 : f32
    %7 = vector.broadcast %cst_6 : f32 to vector<196x32xf32>
    %8 = arith.maximumf %6, %7 : vector<196x32xf32>
    %9 = arith.truncf %8 : vector<196x32xf32> to vector<196x32xbf16>
    %c0_7 = arith.constant 0 : index
    %c0_8 = arith.constant 0 : index
    %c0_9 = arith.constant 0 : index
    %10 = vector.load %arg4[%c0_7, %c0_8, %c0_9] : memref<16x36x196xbf16, #tpu.memory_space<vmem>>, vector<1x36x196xbf16>
    %11 = vector.shape_cast %10 : vector<1x36x196xbf16> to vector<36x196xbf16>
    %cst_10 = arith.constant dense<0.000000e+00> : vector<36x32xf32>
    %12 = tpu.matmul %11, %9, %cst_10 {dimension_numbers = #tpu.dot_dimension_numbers<[1], [0], [0], [1], [0, 0, 1, 1], [], []>} : vector<36x196xbf16>, vector<196x32xbf16>, vector<36x32xf32> -> vector<36x32xf32>
    %13 = arith.truncf %12 : vector<36x32xf32> to vector<36x32xbf16>
    %c0_11 = arith.constant 0 : index
    %c0_12 = arith.constant 0 : index
    %c0_13 = arith.constant 0 : index
    %14 = vector.load %arg5[%c0_11, %c0_12, %c0_13] : memref<16x32x64xbf16, #tpu.memory_space<vmem>>, vector<1x32x64xbf16>
    %15 = vector.shape_cast %14 : vector<1x32x64xbf16> to vector<32x64xbf16>
    %cst_14 = arith.constant dense<0.000000e+00> : vector<36x64xf32>
    %16 = tpu.matmul %13, %15, %cst_14 {dimension_numbers = #tpu.dot_dimension_numbers<[1], [0], [0], [1], [0, 0, 1, 1], [], []>} : vector<36x32xbf16>, vector<32x64xbf16>, vector<36x64xf32> -> vector<36x64xf32>
    %c1 = arith.constant 1 : index
    %c0_15 = arith.constant 0 : index
    %c0_16 = arith.constant 0 : index
    %17 = vector.load %arg4[%c1, %c0_15, %c0_16] : memref<16x36x196xbf16, #tpu.memory_space<vmem>>, vector<1x36x196xbf16>
    %18 = vector.shape_cast %17 : vector<1x36x196xbf16> to vector<36x196xbf16>
    %cst_17 = arith.constant dense<0.000000e+00> : vector<36x32xf32>
    %19 = tpu.matmul %18, %9, %cst_17 {dimension_numbers = #tpu.dot_dimension_numbers<[1], [0], [0], [1], [0, 0, 1, 1], [], []>} : vector<36x196xbf16>, vector<196x32xbf16>, vector<36x32xf32> -> vector<36x32xf32>
    %20 = arith.truncf %19 : vector<36x32xf32> to vector<36x32xbf16>
    %c1_18 = arith.constant 1 : index
    %c0_19 = arith.constant 0 : index
    %c0_20 = arith.constant 0 : index
    %21 = vector.load %arg5[%c1_18, %c0_19, %c0_20] : memref<16x32x64xbf16, #tpu.memory_space<vmem>>, vector<1x32x64xbf16>
    %22 = vector.shape_cast %21 : vector<1x32x64xbf16> to vector<32x64xbf16>
    %cst_21 = arith.constant dense<0.000000e+00> : vector<36x64xf32>
    %23 = tpu.matmul %20, %22, %cst_21 {dimension_numbers = #tpu.dot_dimension_numbers<[1], [0], [0], [1], [0, 0, 1, 1], [], []>} : vector<36x32xbf16>, vector<32x64xbf16>, vector<36x64xf32> -> vector<36x64xf32>
    %24 = arith.addf %16, %23 : vector<36x64xf32>
    %c2 = arith.constant 2 : index
    %c0_22 = arith.constant 0 : index
    %c0_23 = arith.constant 0 : index
    %25 = vector.load %arg4[%c2, %c0_22, %c0_23] : memref<16x36x196xbf16, #tpu.memory_space<vmem>>, vector<1x36x196xbf16>
    %26 = vector.shape_cast %25 : vector<1x36x196xbf16> to vector<36x196xbf16>
    %cst_24 = arith.constant dense<0.000000e+00> : vector<36x32xf32>
    %27 = tpu.matmul %26, %9, %cst_24 {dimension_numbers = #tpu.dot_dimension_numbers<[1], [0], [0], [1], [0, 0, 1, 1], [], []>} : vector<36x196xbf16>, vector<196x32xbf16>, vector<36x32xf32> -> vector<36x32xf32>
    %28 = arith.truncf %27 : vector<36x32xf32> to vector<36x32xbf16>
    %c2_25 = arith.constant 2 : index
    %c0_26 = arith.constant 0 : index
    %c0_27 = arith.constant 0 : index
    %29 = vector.load %arg5[%c2_25, %c0_26, %c0_27] : memref<16x32x64xbf16, #tpu.memory_space<vmem>>, vector<1x32x64xbf16>
    %30 = vector.shape_cast %29 : vector<1x32x64xbf16> to vector<32x64xbf16>
    %cst_28 = arith.constant dense<0.000000e+00> : vector<36x64xf32>
    %31 = tpu.matmul %28, %30, %cst_28 {dimension_numbers = #tpu.dot_dimension_numbers<[1], [0], [0], [1], [0, 0, 1, 1], [], []>} : vector<36x32xbf16>, vector<32x64xbf16>, vector<36x64xf32> -> vector<36x64xf32>
    %32 = arith.addf %24, %31 : vector<36x64xf32>
    %c3 = arith.constant 3 : index
    %c0_29 = arith.constant 0 : index
    %c0_30 = arith.constant 0 : index
    %33 = vector.load %arg4[%c3, %c0_29, %c0_30] : memref<16x36x196xbf16, #tpu.memory_space<vmem>>, vector<1x36x196xbf16>
    %34 = vector.shape_cast %33 : vector<1x36x196xbf16> to vector<36x196xbf16>
    %cst_31 = arith.constant dense<0.000000e+00> : vector<36x32xf32>
    %35 = tpu.matmul %34, %9, %cst_31 {dimension_numbers = #tpu.dot_dimension_numbers<[1], [0], [0], [1], [0, 0, 1, 1], [], []>} : vector<36x196xbf16>, vector<196x32xbf16>, vector<36x32xf32> -> vector<36x32xf32>
    %36 = arith.truncf %35 : vector<36x32xf32> to vector<36x32xbf16>
    %c3_32 = arith.constant 3 : index
    %c0_33 = arith.constant 0 : index
    %c0_34 = arith.constant 0 : index
    %37 = vector.load %arg5[%c3_32, %c0_33, %c0_34] : memref<16x32x64xbf16, #tpu.memory_space<vmem>>, vector<1x32x64xbf16>
    %38 = vector.shape_cast %37 : vector<1x32x64xbf16> to vector<32x64xbf16>
    %cst_35 = arith.constant dense<0.000000e+00> : vector<36x64xf32>
    %39 = tpu.matmul %36, %38, %cst_35 {dimension_numbers = #tpu.dot_dimension_numbers<[1], [0], [0], [1], [0, 0, 1, 1], [], []>} : vector<36x32xbf16>, vector<32x64xbf16>, vector<36x64xf32> -> vector<36x64xf32>
    %40 = arith.addf %32, %39 : vector<36x64xf32>
    %c4 = arith.constant 4 : index
    %c0_36 = arith.constant 0 : index
    %c0_37 = arith.constant 0 : index
    %41 = vector.load %arg4[%c4, %c0_36, %c0_37] : memref<16x36x196xbf16, #tpu.memory_space<vmem>>, vector<1x36x196xbf16>
    %42 = vector.shape_cast %41 : vector<1x36x196xbf16> to vector<36x196xbf16>
    %cst_38 = arith.constant dense<0.000000e+00> : vector<36x32xf32>
    %43 = tpu.matmul %42, %9, %cst_38 {dimension_numbers = #tpu.dot_dimension_numbers<[1], [0], [0], [1], [0, 0, 1, 1], [], []>} : vector<36x196xbf16>, vector<196x32xbf16>, vector<36x32xf32> -> vector<36x32xf32>
    %44 = arith.truncf %43 : vector<36x32xf32> to vector<36x32xbf16>
    %c4_39 = arith.constant 4 : index
    %c0_40 = arith.constant 0 : index
    %c0_41 = arith.constant 0 : index
    %45 = vector.load %arg5[%c4_39, %c0_40, %c0_41] : memref<16x32x64xbf16, #tpu.memory_space<vmem>>, vector<1x32x64xbf16>
    %46 = vector.shape_cast %45 : vector<1x32x64xbf16> to vector<32x64xbf16>
    %cst_42 = arith.constant dense<0.000000e+00> : vector<36x64xf32>
    %47 = tpu.matmul %44, %46, %cst_42 {dimension_numbers = #tpu.dot_dimension_numbers<[1], [0], [0], [1], [0, 0, 1, 1], [], []>} : vector<36x32xbf16>, vector<32x64xbf16>, vector<36x64xf32> -> vector<36x64xf32>
    %48 = arith.addf %40, %47 : vector<36x64xf32>
    %c5 = arith.constant 5 : index
    %c0_43 = arith.constant 0 : index
    %c0_44 = arith.constant 0 : index
    %49 = vector.load %arg4[%c5, %c0_43, %c0_44] : memref<16x36x196xbf16, #tpu.memory_space<vmem>>, vector<1x36x196xbf16>
    %50 = vector.shape_cast %49 : vector<1x36x196xbf16> to vector<36x196xbf16>
    %cst_45 = arith.constant dense<0.000000e+00> : vector<36x32xf32>
    %51 = tpu.matmul %50, %9, %cst_45 {dimension_numbers = #tpu.dot_dimension_numbers<[1], [0], [0], [1], [0, 0, 1, 1], [], []>} : vector<36x196xbf16>, vector<196x32xbf16>, vector<36x32xf32> -> vector<36x32xf32>
    %52 = arith.truncf %51 : vector<36x32xf32> to vector<36x32xbf16>
    %c5_46 = arith.constant 5 : index
    %c0_47 = arith.constant 0 : index
    %c0_48 = arith.constant 0 : index
    %53 = vector.load %arg5[%c5_46, %c0_47, %c0_48] : memref<16x32x64xbf16, #tpu.memory_space<vmem>>, vector<1x32x64xbf16>
    %54 = vector.shape_cast %53 : vector<1x32x64xbf16> to vector<32x64xbf16>
    %cst_49 = arith.constant dense<0.000000e+00> : vector<36x64xf32>
    %55 = tpu.matmul %52, %54, %cst_49 {dimension_numbers = #tpu.dot_dimension_numbers<[1], [0], [0], [1], [0, 0, 1, 1], [], []>} : vector<36x32xbf16>, vector<32x64xbf16>, vector<36x64xf32> -> vector<36x64xf32>
    %56 = arith.addf %48, %55 : vector<36x64xf32>
    %c6 = arith.constant 6 : index
    %c0_50 = arith.constant 0 : index
    %c0_51 = arith.constant 0 : index
    %57 = vector.load %arg4[%c6, %c0_50, %c0_51] : memref<16x36x196xbf16, #tpu.memory_space<vmem>>, vector<1x36x196xbf16>
    %58 = vector.shape_cast %57 : vector<1x36x196xbf16> to vector<36x196xbf16>
    %cst_52 = arith.constant dense<0.000000e+00> : vector<36x32xf32>
    %59 = tpu.matmul %58, %9, %cst_52 {dimension_numbers = #tpu.dot_dimension_numbers<[1], [0], [0], [1], [0, 0, 1, 1], [], []>} : vector<36x196xbf16>, vector<196x32xbf16>, vector<36x32xf32> -> vector<36x32xf32>
    %60 = arith.truncf %59 : vector<36x32xf32> to vector<36x32xbf16>
    %c6_53 = arith.constant 6 : index
    %c0_54 = arith.constant 0 : index
    %c0_55 = arith.constant 0 : index
    %61 = vector.load %arg5[%c6_53, %c0_54, %c0_55] : memref<16x32x64xbf16, #tpu.memory_space<vmem>>, vector<1x32x64xbf16>
    %62 = vector.shape_cast %61 : vector<1x32x64xbf16> to vector<32x64xbf16>
    %cst_56 = arith.constant dense<0.000000e+00> : vector<36x64xf32>
    %63 = tpu.matmul %60, %62, %cst_56 {dimension_numbers = #tpu.dot_dimension_numbers<[1], [0], [0], [1], [0, 0, 1, 1], [], []>} : vector<36x32xbf16>, vector<32x64xbf16>, vector<36x64xf32> -> vector<36x64xf32>
    %64 = arith.addf %56, %63 : vector<36x64xf32>
    %c7 = arith.constant 7 : index
    %c0_57 = arith.constant 0 : index
    %c0_58 = arith.constant 0 : index
    %65 = vector.load %arg4[%c7, %c0_57, %c0_58] : memref<16x36x196xbf16, #tpu.memory_space<vmem>>, vector<1x36x196xbf16>
    %66 = vector.shape_cast %65 : vector<1x36x196xbf16> to vector<36x196xbf16>
    %cst_59 = arith.constant dense<0.000000e+00> : vector<36x32xf32>
    %67 = tpu.matmul %66, %9, %cst_59 {dimension_numbers = #tpu.dot_dimension_numbers<[1], [0], [0], [1], [0, 0, 1, 1], [], []>} : vector<36x196xbf16>, vector<196x32xbf16>, vector<36x32xf32> -> vector<36x32xf32>
    %68 = arith.truncf %67 : vector<36x32xf32> to vector<36x32xbf16>
    %c7_60 = arith.constant 7 : index
    %c0_61 = arith.constant 0 : index
    %c0_62 = arith.constant 0 : index
    %69 = vector.load %arg5[%c7_60, %c0_61, %c0_62] : memref<16x32x64xbf16, #tpu.memory_space<vmem>>, vector<1x32x64xbf16>
    %70 = vector.shape_cast %69 : vector<1x32x64xbf16> to vector<32x64xbf16>
    %cst_63 = arith.constant dense<0.000000e+00> : vector<36x64xf32>
    %71 = tpu.matmul %68, %70, %cst_63 {dimension_numbers = #tpu.dot_dimension_numbers<[1], [0], [0], [1], [0, 0, 1, 1], [], []>} : vector<36x32xbf16>, vector<32x64xbf16>, vector<36x64xf32> -> vector<36x64xf32>
    %72 = arith.addf %64, %71 : vector<36x64xf32>
    %c8 = arith.constant 8 : index
    %c0_64 = arith.constant 0 : index
    %c0_65 = arith.constant 0 : index
    %73 = vector.load %arg4[%c8, %c0_64, %c0_65] : memref<16x36x196xbf16, #tpu.memory_space<vmem>>, vector<1x36x196xbf16>
    %74 = vector.shape_cast %73 : vector<1x36x196xbf16> to vector<36x196xbf16>
    %cst_66 = arith.constant dense<0.000000e+00> : vector<36x32xf32>
    %75 = tpu.matmul %74, %9, %cst_66 {dimension_numbers = #tpu.dot_dimension_numbers<[1], [0], [0], [1], [0, 0, 1, 1], [], []>} : vector<36x196xbf16>, vector<196x32xbf16>, vector<36x32xf32> -> vector<36x32xf32>
    %76 = arith.truncf %75 : vector<36x32xf32> to vector<36x32xbf16>
    %c8_67 = arith.constant 8 : index
    %c0_68 = arith.constant 0 : index
    %c0_69 = arith.constant 0 : index
    %77 = vector.load %arg5[%c8_67, %c0_68, %c0_69] : memref<16x32x64xbf16, #tpu.memory_space<vmem>>, vector<1x32x64xbf16>
    %78 = vector.shape_cast %77 : vector<1x32x64xbf16> to vector<32x64xbf16>
    %cst_70 = arith.constant dense<0.000000e+00> : vector<36x64xf32>
    %79 = tpu.matmul %76, %78, %cst_70 {dimension_numbers = #tpu.dot_dimension_numbers<[1], [0], [0], [1], [0, 0, 1, 1], [], []>} : vector<36x32xbf16>, vector<32x64xbf16>, vector<36x64xf32> -> vector<36x64xf32>
    %80 = arith.addf %72, %79 : vector<36x64xf32>
    %c9 = arith.constant 9 : index
    %c0_71 = arith.constant 0 : index
    %c0_72 = arith.constant 0 : index
    %81 = vector.load %arg4[%c9, %c0_71, %c0_72] : memref<16x36x196xbf16, #tpu.memory_space<vmem>>, vector<1x36x196xbf16>
    %82 = vector.shape_cast %81 : vector<1x36x196xbf16> to vector<36x196xbf16>
    %cst_73 = arith.constant dense<0.000000e+00> : vector<36x32xf32>
    %83 = tpu.matmul %82, %9, %cst_73 {dimension_numbers = #tpu.dot_dimension_numbers<[1], [0], [0], [1], [0, 0, 1, 1], [], []>} : vector<36x196xbf16>, vector<196x32xbf16>, vector<36x32xf32> -> vector<36x32xf32>
    %84 = arith.truncf %83 : vector<36x32xf32> to vector<36x32xbf16>
    %c9_74 = arith.constant 9 : index
    %c0_75 = arith.constant 0 : index
    %c0_76 = arith.constant 0 : index
    %85 = vector.load %arg5[%c9_74, %c0_75, %c0_76] : memref<16x32x64xbf16, #tpu.memory_space<vmem>>, vector<1x32x64xbf16>
    %86 = vector.shape_cast %85 : vector<1x32x64xbf16> to vector<32x64xbf16>
    %cst_77 = arith.constant dense<0.000000e+00> : vector<36x64xf32>
    %87 = tpu.matmul %84, %86, %cst_77 {dimension_numbers = #tpu.dot_dimension_numbers<[1], [0], [0], [1], [0, 0, 1, 1], [], []>} : vector<36x32xbf16>, vector<32x64xbf16>, vector<36x64xf32> -> vector<36x64xf32>
    %88 = arith.addf %80, %87 : vector<36x64xf32>
    %c10 = arith.constant 10 : index
    %c0_78 = arith.constant 0 : index
    %c0_79 = arith.constant 0 : index
    %89 = vector.load %arg4[%c10, %c0_78, %c0_79] : memref<16x36x196xbf16, #tpu.memory_space<vmem>>, vector<1x36x196xbf16>
    %90 = vector.shape_cast %89 : vector<1x36x196xbf16> to vector<36x196xbf16>
    %cst_80 = arith.constant dense<0.000000e+00> : vector<36x32xf32>
    %91 = tpu.matmul %90, %9, %cst_80 {dimension_numbers = #tpu.dot_dimension_numbers<[1], [0], [0], [1], [0, 0, 1, 1], [], []>} : vector<36x196xbf16>, vector<196x32xbf16>, vector<36x32xf32> -> vector<36x32xf32>
    %92 = arith.truncf %91 : vector<36x32xf32> to vector<36x32xbf16>
    %c10_81 = arith.constant 10 : index
    %c0_82 = arith.constant 0 : index
    %c0_83 = arith.constant 0 : index
    %93 = vector.load %arg5[%c10_81, %c0_82, %c0_83] : memref<16x32x64xbf16, #tpu.memory_space<vmem>>, vector<1x32x64xbf16>
    %94 = vector.shape_cast %93 : vector<1x32x64xbf16> to vector<32x64xbf16>
    %cst_84 = arith.constant dense<0.000000e+00> : vector<36x64xf32>
    %95 = tpu.matmul %92, %94, %cst_84 {dimension_numbers = #tpu.dot_dimension_numbers<[1], [0], [0], [1], [0, 0, 1, 1], [], []>} : vector<36x32xbf16>, vector<32x64xbf16>, vector<36x64xf32> -> vector<36x64xf32>
    %96 = arith.addf %88, %95 : vector<36x64xf32>
    %c11 = arith.constant 11 : index
    %c0_85 = arith.constant 0 : index
    %c0_86 = arith.constant 0 : index
    %97 = vector.load %arg4[%c11, %c0_85, %c0_86] : memref<16x36x196xbf16, #tpu.memory_space<vmem>>, vector<1x36x196xbf16>
    %98 = vector.shape_cast %97 : vector<1x36x196xbf16> to vector<36x196xbf16>
    %cst_87 = arith.constant dense<0.000000e+00> : vector<36x32xf32>
    %99 = tpu.matmul %98, %9, %cst_87 {dimension_numbers = #tpu.dot_dimension_numbers<[1], [0], [0], [1], [0, 0, 1, 1], [], []>} : vector<36x196xbf16>, vector<196x32xbf16>, vector<36x32xf32> -> vector<36x32xf32>
    %100 = arith.truncf %99 : vector<36x32xf32> to vector<36x32xbf16>
    %c11_88 = arith.constant 11 : index
    %c0_89 = arith.constant 0 : index
    %c0_90 = arith.constant 0 : index
    %101 = vector.load %arg5[%c11_88, %c0_89, %c0_90] : memref<16x32x64xbf16, #tpu.memory_space<vmem>>, vector<1x32x64xbf16>
    %102 = vector.shape_cast %101 : vector<1x32x64xbf16> to vector<32x64xbf16>
    %cst_91 = arith.constant dense<0.000000e+00> : vector<36x64xf32>
    %103 = tpu.matmul %100, %102, %cst_91 {dimension_numbers = #tpu.dot_dimension_numbers<[1], [0], [0], [1], [0, 0, 1, 1], [], []>} : vector<36x32xbf16>, vector<32x64xbf16>, vector<36x64xf32> -> vector<36x64xf32>
    %104 = arith.addf %96, %103 : vector<36x64xf32>
    %c12 = arith.constant 12 : index
    %c0_92 = arith.constant 0 : index
    %c0_93 = arith.constant 0 : index
    %105 = vector.load %arg4[%c12, %c0_92, %c0_93] : memref<16x36x196xbf16, #tpu.memory_space<vmem>>, vector<1x36x196xbf16>
    %106 = vector.shape_cast %105 : vector<1x36x196xbf16> to vector<36x196xbf16>
    %cst_94 = arith.constant dense<0.000000e+00> : vector<36x32xf32>
    %107 = tpu.matmul %106, %9, %cst_94 {dimension_numbers = #tpu.dot_dimension_numbers<[1], [0], [0], [1], [0, 0, 1, 1], [], []>} : vector<36x196xbf16>, vector<196x32xbf16>, vector<36x32xf32> -> vector<36x32xf32>
    %108 = arith.truncf %107 : vector<36x32xf32> to vector<36x32xbf16>
    %c12_95 = arith.constant 12 : index
    %c0_96 = arith.constant 0 : index
    %c0_97 = arith.constant 0 : index
    %109 = vector.load %arg5[%c12_95, %c0_96, %c0_97] : memref<16x32x64xbf16, #tpu.memory_space<vmem>>, vector<1x32x64xbf16>
    %110 = vector.shape_cast %109 : vector<1x32x64xbf16> to vector<32x64xbf16>
    %cst_98 = arith.constant dense<0.000000e+00> : vector<36x64xf32>
    %111 = tpu.matmul %108, %110, %cst_98 {dimension_numbers = #tpu.dot_dimension_numbers<[1], [0], [0], [1], [0, 0, 1, 1], [], []>} : vector<36x32xbf16>, vector<32x64xbf16>, vector<36x64xf32> -> vector<36x64xf32>
    %112 = arith.addf %104, %111 : vector<36x64xf32>
    %c13 = arith.constant 13 : index
    %c0_99 = arith.constant 0 : index
    %c0_100 = arith.constant 0 : index
    %113 = vector.load %arg4[%c13, %c0_99, %c0_100] : memref<16x36x196xbf16, #tpu.memory_space<vmem>>, vector<1x36x196xbf16>
    %114 = vector.shape_cast %113 : vector<1x36x196xbf16> to vector<36x196xbf16>
    %cst_101 = arith.constant dense<0.000000e+00> : vector<36x32xf32>
    %115 = tpu.matmul %114, %9, %cst_101 {dimension_numbers = #tpu.dot_dimension_numbers<[1], [0], [0], [1], [0, 0, 1, 1], [], []>} : vector<36x196xbf16>, vector<196x32xbf16>, vector<36x32xf32> -> vector<36x32xf32>
    %116 = arith.truncf %115 : vector<36x32xf32> to vector<36x32xbf16>
    %c13_102 = arith.constant 13 : index
    %c0_103 = arith.constant 0 : index
    %c0_104 = arith.constant 0 : index
    %117 = vector.load %arg5[%c13_102, %c0_103, %c0_104] : memref<16x32x64xbf16, #tpu.memory_space<vmem>>, vector<1x32x64xbf16>
    %118 = vector.shape_cast %117 : vector<1x32x64xbf16> to vector<32x64xbf16>
    %cst_105 = arith.constant dense<0.000000e+00> : vector<36x64xf32>
    %119 = tpu.matmul %116, %118, %cst_105 {dimension_numbers = #tpu.dot_dimension_numbers<[1], [0], [0], [1], [0, 0, 1, 1], [], []>} : vector<36x32xbf16>, vector<32x64xbf16>, vector<36x64xf32> -> vector<36x64xf32>
    %120 = arith.addf %112, %119 : vector<36x64xf32>
    %c14 = arith.constant 14 : index
    %c0_106 = arith.constant 0 : index
    %c0_107 = arith.constant 0 : index
    %121 = vector.load %arg4[%c14, %c0_106, %c0_107] : memref<16x36x196xbf16, #tpu.memory_space<vmem>>, vector<1x36x196xbf16>
    %122 = vector.shape_cast %121 : vector<1x36x196xbf16> to vector<36x196xbf16>
    %cst_108 = arith.constant dense<0.000000e+00> : vector<36x32xf32>
    %123 = tpu.matmul %122, %9, %cst_108 {dimension_numbers = #tpu.dot_dimension_numbers<[1], [0], [0], [1], [0, 0, 1, 1], [], []>} : vector<36x196xbf16>, vector<196x32xbf16>, vector<36x32xf32> -> vector<36x32xf32>
    %124 = arith.truncf %123 : vector<36x32xf32> to vector<36x32xbf16>
    %c14_109 = arith.constant 14 : index
    %c0_110 = arith.constant 0 : index
    %c0_111 = arith.constant 0 : index
    %125 = vector.load %arg5[%c14_109, %c0_110, %c0_111] : memref<16x32x64xbf16, #tpu.memory_space<vmem>>, vector<1x32x64xbf16>
    %126 = vector.shape_cast %125 : vector<1x32x64xbf16> to vector<32x64xbf16>
    %cst_112 = arith.constant dense<0.000000e+00> : vector<36x64xf32>
    %127 = tpu.matmul %124, %126, %cst_112 {dimension_numbers = #tpu.dot_dimension_numbers<[1], [0], [0], [1], [0, 0, 1, 1], [], []>} : vector<36x32xbf16>, vector<32x64xbf16>, vector<36x64xf32> -> vector<36x64xf32>
    %128 = arith.addf %120, %127 : vector<36x64xf32>
    %c15 = arith.constant 15 : index
    %c0_113 = arith.constant 0 : index
    %c0_114 = arith.constant 0 : index
    %129 = vector.load %arg4[%c15, %c0_113, %c0_114] : memref<16x36x196xbf16, #tpu.memory_space<vmem>>, vector<1x36x196xbf16>
    %130 = vector.shape_cast %129 : vector<1x36x196xbf16> to vector<36x196xbf16>
    %cst_115 = arith.constant dense<0.000000e+00> : vector<36x32xf32>
    %131 = tpu.matmul %130, %9, %cst_115 {dimension_numbers = #tpu.dot_dimension_numbers<[1], [0], [0], [1], [0, 0, 1, 1], [], []>} : vector<36x196xbf16>, vector<196x32xbf16>, vector<36x32xf32> -> vector<36x32xf32>
    %132 = arith.truncf %131 : vector<36x32xf32> to vector<36x32xbf16>
    %c15_116 = arith.constant 15 : index
    %c0_117 = arith.constant 0 : index
    %c0_118 = arith.constant 0 : index
    %133 = vector.load %arg5[%c15_116, %c0_117, %c0_118] : memref<16x32x64xbf16, #tpu.memory_space<vmem>>, vector<1x32x64xbf16>
    %134 = vector.shape_cast %133 : vector<1x32x64xbf16> to vector<32x64xbf16>
    %cst_119 = arith.constant dense<0.000000e+00> : vector<36x64xf32>
    %135 = tpu.matmul %132, %134, %cst_119 {dimension_numbers = #tpu.dot_dimension_numbers<[1], [0], [0], [1], [0, 0, 1, 1], [], []>} : vector<36x32xbf16>, vector<32x64xbf16>, vector<36x64xf32> -> vector<36x64xf32>
    %136 = arith.addf %128, %135 : vector<36x64xf32>
    %c0_120 = arith.constant 0 : index
    %c0_121 = arith.constant 0 : index
    %137 = vector.load %arg6[%c0_120, %c0_121] : memref<1x64xf32, #tpu.memory_space<vmem>>, vector<1x64xf32>
    %138 = vector.broadcast %137 : vector<1x64xf32> to vector<36x64xf32>
    %139 = arith.addf %136, %138 : vector<36x64xf32>
    %cst_122 = arith.constant 0.000000e+00 : f32
    %140 = vector.broadcast %cst_122 : f32 to vector<36x64xf32>
    %141 = arith.maximumf %139, %140 : vector<36x64xf32>
    %142 = arith.truncf %141 : vector<36x64xf32> to vector<36x64xbf16>
    %c0_123 = arith.constant 0 : index
    %c0_124 = arith.constant 0 : index
    %c0_125 = arith.constant 0 : index
    %143 = vector.load %arg7[%c0_123, %c0_124, %c0_125] : memref<9x16x36xbf16, #tpu.memory_space<vmem>>, vector<1x16x36xbf16>
    %144 = vector.shape_cast %143 : vector<1x16x36xbf16> to vector<16x36xbf16>
    %cst_126 = arith.constant dense<0.000000e+00> : vector<16x64xf32>
    %145 = tpu.matmul %144, %142, %cst_126 {dimension_numbers = #tpu.dot_dimension_numbers<[1], [0], [0], [1], [0, 0, 1, 1], [], []>} : vector<16x36xbf16>, vector<36x64xbf16>, vector<16x64xf32> -> vector<16x64xf32>
    %146 = arith.truncf %145 : vector<16x64xf32> to vector<16x64xbf16>
    %c0_127 = arith.constant 0 : index
    %c0_128 = arith.constant 0 : index
    %c0_129 = arith.constant 0 : index
    %147 = vector.load %arg8[%c0_127, %c0_128, %c0_129] : memref<9x64x64xbf16, #tpu.memory_space<vmem>>, vector<1x64x64xbf16>
    %148 = vector.shape_cast %147 : vector<1x64x64xbf16> to vector<64x64xbf16>
    %cst_130 = arith.constant dense<0.000000e+00> : vector<16x64xf32>
    %149 = tpu.matmul %146, %148, %cst_130 {dimension_numbers = #tpu.dot_dimension_numbers<[1], [0], [0], [1], [0, 0, 1, 1], [], []>} : vector<16x64xbf16>, vector<64x64xbf16>, vector<16x64xf32> -> vector<16x64xf32>
    %c1_131 = arith.constant 1 : index
    %c0_132 = arith.constant 0 : index
    %c0_133 = arith.constant 0 : index
    %150 = vector.load %arg7[%c1_131, %c0_132, %c0_133] : memref<9x16x36xbf16, #tpu.memory_space<vmem>>, vector<1x16x36xbf16>
    %151 = vector.shape_cast %150 : vector<1x16x36xbf16> to vector<16x36xbf16>
    %cst_134 = arith.constant dense<0.000000e+00> : vector<16x64xf32>
    %152 = tpu.matmul %151, %142, %cst_134 {dimension_numbers = #tpu.dot_dimension_numbers<[1], [0], [0], [1], [0, 0, 1, 1], [], []>} : vector<16x36xbf16>, vector<36x64xbf16>, vector<16x64xf32> -> vector<16x64xf32>
    %153 = arith.truncf %152 : vector<16x64xf32> to vector<16x64xbf16>
    %c1_135 = arith.constant 1 : index
    %c0_136 = arith.constant 0 : index
    %c0_137 = arith.constant 0 : index
    %154 = vector.load %arg8[%c1_135, %c0_136, %c0_137] : memref<9x64x64xbf16, #tpu.memory_space<vmem>>, vector<1x64x64xbf16>
    %155 = vector.shape_cast %154 : vector<1x64x64xbf16> to vector<64x64xbf16>
    %cst_138 = arith.constant dense<0.000000e+00> : vector<16x64xf32>
    %156 = tpu.matmul %153, %155, %cst_138 {dimension_numbers = #tpu.dot_dimension_numbers<[1], [0], [0], [1], [0, 0, 1, 1], [], []>} : vector<16x64xbf16>, vector<64x64xbf16>, vector<16x64xf32> -> vector<16x64xf32>
    %157 = arith.addf %149, %156 : vector<16x64xf32>
    %c2_139 = arith.constant 2 : index
    %c0_140 = arith.constant 0 : index
    %c0_141 = arith.constant 0 : index
    %158 = vector.load %arg7[%c2_139, %c0_140, %c0_141] : memref<9x16x36xbf16, #tpu.memory_space<vmem>>, vector<1x16x36xbf16>
    %159 = vector.shape_cast %158 : vector<1x16x36xbf16> to vector<16x36xbf16>
    %cst_142 = arith.constant dense<0.000000e+00> : vector<16x64xf32>
    %160 = tpu.matmul %159, %142, %cst_142 {dimension_numbers = #tpu.dot_dimension_numbers<[1], [0], [0], [1], [0, 0, 1, 1], [], []>} : vector<16x36xbf16>, vector<36x64xbf16>, vector<16x64xf32> -> vector<16x64xf32>
    %161 = arith.truncf %160 : vector<16x64xf32> to vector<16x64xbf16>
    %c2_143 = arith.constant 2 : index
    %c0_144 = arith.constant 0 : index
    %c0_145 = arith.constant 0 : index
    %162 = vector.load %arg8[%c2_143, %c0_144, %c0_145] : memref<9x64x64xbf16, #tpu.memory_space<vmem>>, vector<1x64x64xbf16>
    %163 = vector.shape_cast %162 : vector<1x64x64xbf16> to vector<64x64xbf16>
    %cst_146 = arith.constant dense<0.000000e+00> : vector<16x64xf32>
    %164 = tpu.matmul %161, %163, %cst_146 {dimension_numbers = #tpu.dot_dimension_numbers<[1], [0], [0], [1], [0, 0, 1, 1], [], []>} : vector<16x64xbf16>, vector<64x64xbf16>, vector<16x64xf32> -> vector<16x64xf32>
    %165 = arith.addf %157, %164 : vector<16x64xf32>
    %c3_147 = arith.constant 3 : index
    %c0_148 = arith.constant 0 : index
    %c0_149 = arith.constant 0 : index
    %166 = vector.load %arg7[%c3_147, %c0_148, %c0_149] : memref<9x16x36xbf16, #tpu.memory_space<vmem>>, vector<1x16x36xbf16>
    %167 = vector.shape_cast %166 : vector<1x16x36xbf16> to vector<16x36xbf16>
    %cst_150 = arith.constant dense<0.000000e+00> : vector<16x64xf32>
    %168 = tpu.matmul %167, %142, %cst_150 {dimension_numbers = #tpu.dot_dimension_numbers<[1], [0], [0], [1], [0, 0, 1, 1], [], []>} : vector<16x36xbf16>, vector<36x64xbf16>, vector<16x64xf32> -> vector<16x64xf32>
    %169 = arith.truncf %168 : vector<16x64xf32> to vector<16x64xbf16>
    %c3_151 = arith.constant 3 : index
    %c0_152 = arith.constant 0 : index
    %c0_153 = arith.constant 0 : index
    %170 = vector.load %arg8[%c3_151, %c0_152, %c0_153] : memref<9x64x64xbf16, #tpu.memory_space<vmem>>, vector<1x64x64xbf16>
    %171 = vector.shape_cast %170 : vector<1x64x64xbf16> to vector<64x64xbf16>
    %cst_154 = arith.constant dense<0.000000e+00> : vector<16x64xf32>
    %172 = tpu.matmul %169, %171, %cst_154 {dimension_numbers = #tpu.dot_dimension_numbers<[1], [0], [0], [1], [0, 0, 1, 1], [], []>} : vector<16x64xbf16>, vector<64x64xbf16>, vector<16x64xf32> -> vector<16x64xf32>
    %173 = arith.addf %165, %172 : vector<16x64xf32>
    %c4_155 = arith.constant 4 : index
    %c0_156 = arith.constant 0 : index
    %c0_157 = arith.constant 0 : index
    %174 = vector.load %arg7[%c4_155, %c0_156, %c0_157] : memref<9x16x36xbf16, #tpu.memory_space<vmem>>, vector<1x16x36xbf16>
    %175 = vector.shape_cast %174 : vector<1x16x36xbf16> to vector<16x36xbf16>
    %cst_158 = arith.constant dense<0.000000e+00> : vector<16x64xf32>
    %176 = tpu.matmul %175, %142, %cst_158 {dimension_numbers = #tpu.dot_dimension_numbers<[1], [0], [0], [1], [0, 0, 1, 1], [], []>} : vector<16x36xbf16>, vector<36x64xbf16>, vector<16x64xf32> -> vector<16x64xf32>
    %177 = arith.truncf %176 : vector<16x64xf32> to vector<16x64xbf16>
    %c4_159 = arith.constant 4 : index
    %c0_160 = arith.constant 0 : index
    %c0_161 = arith.constant 0 : index
    %178 = vector.load %arg8[%c4_159, %c0_160, %c0_161] : memref<9x64x64xbf16, #tpu.memory_space<vmem>>, vector<1x64x64xbf16>
    %179 = vector.shape_cast %178 : vector<1x64x64xbf16> to vector<64x64xbf16>
    %cst_162 = arith.constant dense<0.000000e+00> : vector<16x64xf32>
    %180 = tpu.matmul %177, %179, %cst_162 {dimension_numbers = #tpu.dot_dimension_numbers<[1], [0], [0], [1], [0, 0, 1, 1], [], []>} : vector<16x64xbf16>, vector<64x64xbf16>, vector<16x64xf32> -> vector<16x64xf32>
    %181 = arith.addf %173, %180 : vector<16x64xf32>
    %c5_163 = arith.constant 5 : index
    %c0_164 = arith.constant 0 : index
    %c0_165 = arith.constant 0 : index
    %182 = vector.load %arg7[%c5_163, %c0_164, %c0_165] : memref<9x16x36xbf16, #tpu.memory_space<vmem>>, vector<1x16x36xbf16>
    %183 = vector.shape_cast %182 : vector<1x16x36xbf16> to vector<16x36xbf16>
    %cst_166 = arith.constant dense<0.000000e+00> : vector<16x64xf32>
    %184 = tpu.matmul %183, %142, %cst_166 {dimension_numbers = #tpu.dot_dimension_numbers<[1], [0], [0], [1], [0, 0, 1, 1], [], []>} : vector<16x36xbf16>, vector<36x64xbf16>, vector<16x64xf32> -> vector<16x64xf32>
    %185 = arith.truncf %184 : vector<16x64xf32> to vector<16x64xbf16>
    %c5_167 = arith.constant 5 : index
    %c0_168 = arith.constant 0 : index
    %c0_169 = arith.constant 0 : index
    %186 = vector.load %arg8[%c5_167, %c0_168, %c0_169] : memref<9x64x64xbf16, #tpu.memory_space<vmem>>, vector<1x64x64xbf16>
    %187 = vector.shape_cast %186 : vector<1x64x64xbf16> to vector<64x64xbf16>
    %cst_170 = arith.constant dense<0.000000e+00> : vector<16x64xf32>
    %188 = tpu.matmul %185, %187, %cst_170 {dimension_numbers = #tpu.dot_dimension_numbers<[1], [0], [0], [1], [0, 0, 1, 1], [], []>} : vector<16x64xbf16>, vector<64x64xbf16>, vector<16x64xf32> -> vector<16x64xf32>
    %189 = arith.addf %181, %188 : vector<16x64xf32>
    %c6_171 = arith.constant 6 : index
    %c0_172 = arith.constant 0 : index
    %c0_173 = arith.constant 0 : index
    %190 = vector.load %arg7[%c6_171, %c0_172, %c0_173] : memref<9x16x36xbf16, #tpu.memory_space<vmem>>, vector<1x16x36xbf16>
    %191 = vector.shape_cast %190 : vector<1x16x36xbf16> to vector<16x36xbf16>
    %cst_174 = arith.constant dense<0.000000e+00> : vector<16x64xf32>
    %192 = tpu.matmul %191, %142, %cst_174 {dimension_numbers = #tpu.dot_dimension_numbers<[1], [0], [0], [1], [0, 0, 1, 1], [], []>} : vector<16x36xbf16>, vector<36x64xbf16>, vector<16x64xf32> -> vector<16x64xf32>
    %193 = arith.truncf %192 : vector<16x64xf32> to vector<16x64xbf16>
    %c6_175 = arith.constant 6 : index
    %c0_176 = arith.constant 0 : index
    %c0_177 = arith.constant 0 : index
    %194 = vector.load %arg8[%c6_175, %c0_176, %c0_177] : memref<9x64x64xbf16, #tpu.memory_space<vmem>>, vector<1x64x64xbf16>
    %195 = vector.shape_cast %194 : vector<1x64x64xbf16> to vector<64x64xbf16>
    %cst_178 = arith.constant dense<0.000000e+00> : vector<16x64xf32>
    %196 = tpu.matmul %193, %195, %cst_178 {dimension_numbers = #tpu.dot_dimension_numbers<[1], [0], [0], [1], [0, 0, 1, 1], [], []>} : vector<16x64xbf16>, vector<64x64xbf16>, vector<16x64xf32> -> vector<16x64xf32>
    %197 = arith.addf %189, %196 : vector<16x64xf32>
    %c7_179 = arith.constant 7 : index
    %c0_180 = arith.constant 0 : index
    %c0_181 = arith.constant 0 : index
    %198 = vector.load %arg7[%c7_179, %c0_180, %c0_181] : memref<9x16x36xbf16, #tpu.memory_space<vmem>>, vector<1x16x36xbf16>
    %199 = vector.shape_cast %198 : vector<1x16x36xbf16> to vector<16x36xbf16>
    %cst_182 = arith.constant dense<0.000000e+00> : vector<16x64xf32>
    %200 = tpu.matmul %199, %142, %cst_182 {dimension_numbers = #tpu.dot_dimension_numbers<[1], [0], [0], [1], [0, 0, 1, 1], [], []>} : vector<16x36xbf16>, vector<36x64xbf16>, vector<16x64xf32> -> vector<16x64xf32>
    %201 = arith.truncf %200 : vector<16x64xf32> to vector<16x64xbf16>
    %c7_183 = arith.constant 7 : index
    %c0_184 = arith.constant 0 : index
    %c0_185 = arith.constant 0 : index
    %202 = vector.load %arg8[%c7_183, %c0_184, %c0_185] : memref<9x64x64xbf16, #tpu.memory_space<vmem>>, vector<1x64x64xbf16>
    %203 = vector.shape_cast %202 : vector<1x64x64xbf16> to vector<64x64xbf16>
    %cst_186 = arith.constant dense<0.000000e+00> : vector<16x64xf32>
    %204 = tpu.matmul %201, %203, %cst_186 {dimension_numbers = #tpu.dot_dimension_numbers<[1], [0], [0], [1], [0, 0, 1, 1], [], []>} : vector<16x64xbf16>, vector<64x64xbf16>, vector<16x64xf32> -> vector<16x64xf32>
    %205 = arith.addf %197, %204 : vector<16x64xf32>
    %c8_187 = arith.constant 8 : index
    %c0_188 = arith.constant 0 : index
    %c0_189 = arith.constant 0 : index
    %206 = vector.load %arg7[%c8_187, %c0_188, %c0_189] : memref<9x16x36xbf16, #tpu.memory_space<vmem>>, vector<1x16x36xbf16>
    %207 = vector.shape_cast %206 : vector<1x16x36xbf16> to vector<16x36xbf16>
    %cst_190 = arith.constant dense<0.000000e+00> : vector<16x64xf32>
    %208 = tpu.matmul %207, %142, %cst_190 {dimension_numbers = #tpu.dot_dimension_numbers<[1], [0], [0], [1], [0, 0, 1, 1], [], []>} : vector<16x36xbf16>, vector<36x64xbf16>, vector<16x64xf32> -> vector<16x64xf32>
    %209 = arith.truncf %208 : vector<16x64xf32> to vector<16x64xbf16>
    %c8_191 = arith.constant 8 : index
    %c0_192 = arith.constant 0 : index
    %c0_193 = arith.constant 0 : index
    %210 = vector.load %arg8[%c8_191, %c0_192, %c0_193] : memref<9x64x64xbf16, #tpu.memory_space<vmem>>, vector<1x64x64xbf16>
    %211 = vector.shape_cast %210 : vector<1x64x64xbf16> to vector<64x64xbf16>
    %cst_194 = arith.constant dense<0.000000e+00> : vector<16x64xf32>
    %212 = tpu.matmul %209, %211, %cst_194 {dimension_numbers = #tpu.dot_dimension_numbers<[1], [0], [0], [1], [0, 0, 1, 1], [], []>} : vector<16x64xbf16>, vector<64x64xbf16>, vector<16x64xf32> -> vector<16x64xf32>
    %213 = arith.addf %205, %212 : vector<16x64xf32>
    %c0_195 = arith.constant 0 : index
    %c0_196 = arith.constant 0 : index
    %214 = vector.load %arg9[%c0_195, %c0_196] : memref<1x64xf32, #tpu.memory_space<vmem>>, vector<1x64xf32>
    %215 = vector.broadcast %214 : vector<1x64xf32> to vector<16x64xf32>
    %216 = arith.addf %213, %215 : vector<16x64xf32>
    %cst_197 = arith.constant 0.000000e+00 : f32
    %217 = vector.broadcast %cst_197 : f32 to vector<16x64xf32>
    %218 = arith.maximumf %216, %217 : vector<16x64xf32>
    %219 = arith.truncf %218 : vector<16x64xf32> to vector<16x64xbf16>
    %c0_198 = arith.constant 0 : index
    %c0_199 = arith.constant 0 : index
    %c0_200 = arith.constant 0 : index
    %220 = vector.load %arg10[%c0_198, %c0_199, %c0_200] : memref<9x4x16xbf16, #tpu.memory_space<vmem>>, vector<1x4x16xbf16>
    %221 = vector.shape_cast %220 : vector<1x4x16xbf16> to vector<4x16xbf16>
    %cst_201 = arith.constant dense<0.000000e+00> : vector<4x64xf32>
    %222 = tpu.matmul %221, %219, %cst_201 {dimension_numbers = #tpu.dot_dimension_numbers<[1], [0], [0], [1], [0, 0, 1, 1], [], []>} : vector<4x16xbf16>, vector<16x64xbf16>, vector<4x64xf32> -> vector<4x64xf32>
    %223 = arith.truncf %222 : vector<4x64xf32> to vector<4x64xbf16>
    %c0_202 = arith.constant 0 : index
    %c0_203 = arith.constant 0 : index
    %c0_204 = arith.constant 0 : index
    %224 = vector.load %arg11[%c0_202, %c0_203, %c0_204] : memref<9x64x32xbf16, #tpu.memory_space<vmem>>, vector<1x64x32xbf16>
    %225 = vector.shape_cast %224 : vector<1x64x32xbf16> to vector<64x32xbf16>
    %cst_205 = arith.constant dense<0.000000e+00> : vector<4x32xf32>
    %226 = tpu.matmul %223, %225, %cst_205 {dimension_numbers = #tpu.dot_dimension_numbers<[1], [0], [0], [1], [0, 0, 1, 1], [], []>} : vector<4x64xbf16>, vector<64x32xbf16>, vector<4x32xf32> -> vector<4x32xf32>
    %c1_206 = arith.constant 1 : index
    %c0_207 = arith.constant 0 : index
    %c0_208 = arith.constant 0 : index
    %227 = vector.load %arg10[%c1_206, %c0_207, %c0_208] : memref<9x4x16xbf16, #tpu.memory_space<vmem>>, vector<1x4x16xbf16>
    %228 = vector.shape_cast %227 : vector<1x4x16xbf16> to vector<4x16xbf16>
    %cst_209 = arith.constant dense<0.000000e+00> : vector<4x64xf32>
    %229 = tpu.matmul %228, %219, %cst_209 {dimension_numbers = #tpu.dot_dimension_numbers<[1], [0], [0], [1], [0, 0, 1, 1], [], []>} : vector<4x16xbf16>, vector<16x64xbf16>, vector<4x64xf32> -> vector<4x64xf32>
    %230 = arith.truncf %229 : vector<4x64xf32> to vector<4x64xbf16>
    %c1_210 = arith.constant 1 : index
    %c0_211 = arith.constant 0 : index
    %c0_212 = arith.constant 0 : index
    %231 = vector.load %arg11[%c1_210, %c0_211, %c0_212] : memref<9x64x32xbf16, #tpu.memory_space<vmem>>, vector<1x64x32xbf16>
    %232 = vector.shape_cast %231 : vector<1x64x32xbf16> to vector<64x32xbf16>
    %cst_213 = arith.constant dense<0.000000e+00> : vector<4x32xf32>
    %233 = tpu.matmul %230, %232, %cst_213 {dimension_numbers = #tpu.dot_dimension_numbers<[1], [0], [0], [1], [0, 0, 1, 1], [], []>} : vector<4x64xbf16>, vector<64x32xbf16>, vector<4x32xf32> -> vector<4x32xf32>
    %234 = arith.addf %226, %233 : vector<4x32xf32>
    %c2_214 = arith.constant 2 : index
    %c0_215 = arith.constant 0 : index
    %c0_216 = arith.constant 0 : index
    %235 = vector.load %arg10[%c2_214, %c0_215, %c0_216] : memref<9x4x16xbf16, #tpu.memory_space<vmem>>, vector<1x4x16xbf16>
    %236 = vector.shape_cast %235 : vector<1x4x16xbf16> to vector<4x16xbf16>
    %cst_217 = arith.constant dense<0.000000e+00> : vector<4x64xf32>
    %237 = tpu.matmul %236, %219, %cst_217 {dimension_numbers = #tpu.dot_dimension_numbers<[1], [0], [0], [1], [0, 0, 1, 1], [], []>} : vector<4x16xbf16>, vector<16x64xbf16>, vector<4x64xf32> -> vector<4x64xf32>
    %238 = arith.truncf %237 : vector<4x64xf32> to vector<4x64xbf16>
    %c2_218 = arith.constant 2 : index
    %c0_219 = arith.constant 0 : index
    %c0_220 = arith.constant 0 : index
    %239 = vector.load %arg11[%c2_218, %c0_219, %c0_220] : memref<9x64x32xbf16, #tpu.memory_space<vmem>>, vector<1x64x32xbf16>
    %240 = vector.shape_cast %239 : vector<1x64x32xbf16> to vector<64x32xbf16>
    %cst_221 = arith.constant dense<0.000000e+00> : vector<4x32xf32>
    %241 = tpu.matmul %238, %240, %cst_221 {dimension_numbers = #tpu.dot_dimension_numbers<[1], [0], [0], [1], [0, 0, 1, 1], [], []>} : vector<4x64xbf16>, vector<64x32xbf16>, vector<4x32xf32> -> vector<4x32xf32>
    %242 = arith.addf %234, %241 : vector<4x32xf32>
    %c3_222 = arith.constant 3 : index
    %c0_223 = arith.constant 0 : index
    %c0_224 = arith.constant 0 : index
    %243 = vector.load %arg10[%c3_222, %c0_223, %c0_224] : memref<9x4x16xbf16, #tpu.memory_space<vmem>>, vector<1x4x16xbf16>
    %244 = vector.shape_cast %243 : vector<1x4x16xbf16> to vector<4x16xbf16>
    %cst_225 = arith.constant dense<0.000000e+00> : vector<4x64xf32>
    %245 = tpu.matmul %244, %219, %cst_225 {dimension_numbers = #tpu.dot_dimension_numbers<[1], [0], [0], [1], [0, 0, 1, 1], [], []>} : vector<4x16xbf16>, vector<16x64xbf16>, vector<4x64xf32> -> vector<4x64xf32>
    %246 = arith.truncf %245 : vector<4x64xf32> to vector<4x64xbf16>
    %c3_226 = arith.constant 3 : index
    %c0_227 = arith.constant 0 : index
    %c0_228 = arith.constant 0 : index
    %247 = vector.load %arg11[%c3_226, %c0_227, %c0_228] : memref<9x64x32xbf16, #tpu.memory_space<vmem>>, vector<1x64x32xbf16>
    %248 = vector.shape_cast %247 : vector<1x64x32xbf16> to vector<64x32xbf16>
    %cst_229 = arith.constant dense<0.000000e+00> : vector<4x32xf32>
    %249 = tpu.matmul %246, %248, %cst_229 {dimension_numbers = #tpu.dot_dimension_numbers<[1], [0], [0], [1], [0, 0, 1, 1], [], []>} : vector<4x64xbf16>, vector<64x32xbf16>, vector<4x32xf32> -> vector<4x32xf32>
    %250 = arith.addf %242, %249 : vector<4x32xf32>
    %c4_230 = arith.constant 4 : index
    %c0_231 = arith.constant 0 : index
    %c0_232 = arith.constant 0 : index
    %251 = vector.load %arg10[%c4_230, %c0_231, %c0_232] : memref<9x4x16xbf16, #tpu.memory_space<vmem>>, vector<1x4x16xbf16>
    %252 = vector.shape_cast %251 : vector<1x4x16xbf16> to vector<4x16xbf16>
    %cst_233 = arith.constant dense<0.000000e+00> : vector<4x64xf32>
    %253 = tpu.matmul %252, %219, %cst_233 {dimension_numbers = #tpu.dot_dimension_numbers<[1], [0], [0], [1], [0, 0, 1, 1], [], []>} : vector<4x16xbf16>, vector<16x64xbf16>, vector<4x64xf32> -> vector<4x64xf32>
    %254 = arith.truncf %253 : vector<4x64xf32> to vector<4x64xbf16>
    %c4_234 = arith.constant 4 : index
    %c0_235 = arith.constant 0 : index
    %c0_236 = arith.constant 0 : index
    %255 = vector.load %arg11[%c4_234, %c0_235, %c0_236] : memref<9x64x32xbf16, #tpu.memory_space<vmem>>, vector<1x64x32xbf16>
    %256 = vector.shape_cast %255 : vector<1x64x32xbf16> to vector<64x32xbf16>
    %cst_237 = arith.constant dense<0.000000e+00> : vector<4x32xf32>
    %257 = tpu.matmul %254, %256, %cst_237 {dimension_numbers = #tpu.dot_dimension_numbers<[1], [0], [0], [1], [0, 0, 1, 1], [], []>} : vector<4x64xbf16>, vector<64x32xbf16>, vector<4x32xf32> -> vector<4x32xf32>
    %258 = arith.addf %250, %257 : vector<4x32xf32>
    %c5_238 = arith.constant 5 : index
    %c0_239 = arith.constant 0 : index
    %c0_240 = arith.constant 0 : index
    %259 = vector.load %arg10[%c5_238, %c0_239, %c0_240] : memref<9x4x16xbf16, #tpu.memory_space<vmem>>, vector<1x4x16xbf16>
    %260 = vector.shape_cast %259 : vector<1x4x16xbf16> to vector<4x16xbf16>
    %cst_241 = arith.constant dense<0.000000e+00> : vector<4x64xf32>
    %261 = tpu.matmul %260, %219, %cst_241 {dimension_numbers = #tpu.dot_dimension_numbers<[1], [0], [0], [1], [0, 0, 1, 1], [], []>} : vector<4x16xbf16>, vector<16x64xbf16>, vector<4x64xf32> -> vector<4x64xf32>
    %262 = arith.truncf %261 : vector<4x64xf32> to vector<4x64xbf16>
    %c5_242 = arith.constant 5 : index
    %c0_243 = arith.constant 0 : index
    %c0_244 = arith.constant 0 : index
    %263 = vector.load %arg11[%c5_242, %c0_243, %c0_244] : memref<9x64x32xbf16, #tpu.memory_space<vmem>>, vector<1x64x32xbf16>
    %264 = vector.shape_cast %263 : vector<1x64x32xbf16> to vector<64x32xbf16>
    %cst_245 = arith.constant dense<0.000000e+00> : vector<4x32xf32>
    %265 = tpu.matmul %262, %264, %cst_245 {dimension_numbers = #tpu.dot_dimension_numbers<[1], [0], [0], [1], [0, 0, 1, 1], [], []>} : vector<4x64xbf16>, vector<64x32xbf16>, vector<4x32xf32> -> vector<4x32xf32>
    %266 = arith.addf %258, %265 : vector<4x32xf32>
    %c6_246 = arith.constant 6 : index
    %c0_247 = arith.constant 0 : index
    %c0_248 = arith.constant 0 : index
    %267 = vector.load %arg10[%c6_246, %c0_247, %c0_248] : memref<9x4x16xbf16, #tpu.memory_space<vmem>>, vector<1x4x16xbf16>
    %268 = vector.shape_cast %267 : vector<1x4x16xbf16> to vector<4x16xbf16>
    %cst_249 = arith.constant dense<0.000000e+00> : vector<4x64xf32>
    %269 = tpu.matmul %268, %219, %cst_249 {dimension_numbers = #tpu.dot_dimension_numbers<[1], [0], [0], [1], [0, 0, 1, 1], [], []>} : vector<4x16xbf16>, vector<16x64xbf16>, vector<4x64xf32> -> vector<4x64xf32>
    %270 = arith.truncf %269 : vector<4x64xf32> to vector<4x64xbf16>
    %c6_250 = arith.constant 6 : index
    %c0_251 = arith.constant 0 : index
    %c0_252 = arith.constant 0 : index
    %271 = vector.load %arg11[%c6_250, %c0_251, %c0_252] : memref<9x64x32xbf16, #tpu.memory_space<vmem>>, vector<1x64x32xbf16>
    %272 = vector.shape_cast %271 : vector<1x64x32xbf16> to vector<64x32xbf16>
    %cst_253 = arith.constant dense<0.000000e+00> : vector<4x32xf32>
    %273 = tpu.matmul %270, %272, %cst_253 {dimension_numbers = #tpu.dot_dimension_numbers<[1], [0], [0], [1], [0, 0, 1, 1], [], []>} : vector<4x64xbf16>, vector<64x32xbf16>, vector<4x32xf32> -> vector<4x32xf32>
    %274 = arith.addf %266, %273 : vector<4x32xf32>
    %c7_254 = arith.constant 7 : index
    %c0_255 = arith.constant 0 : index
    %c0_256 = arith.constant 0 : index
    %275 = vector.load %arg10[%c7_254, %c0_255, %c0_256] : memref<9x4x16xbf16, #tpu.memory_space<vmem>>, vector<1x4x16xbf16>
    %276 = vector.shape_cast %275 : vector<1x4x16xbf16> to vector<4x16xbf16>
    %cst_257 = arith.constant dense<0.000000e+00> : vector<4x64xf32>
    %277 = tpu.matmul %276, %219, %cst_257 {dimension_numbers = #tpu.dot_dimension_numbers<[1], [0], [0], [1], [0, 0, 1, 1], [], []>} : vector<4x16xbf16>, vector<16x64xbf16>, vector<4x64xf32> -> vector<4x64xf32>
    %278 = arith.truncf %277 : vector<4x64xf32> to vector<4x64xbf16>
    %c7_258 = arith.constant 7 : index
    %c0_259 = arith.constant 0 : index
    %c0_260 = arith.constant 0 : index
    %279 = vector.load %arg11[%c7_258, %c0_259, %c0_260] : memref<9x64x32xbf16, #tpu.memory_space<vmem>>, vector<1x64x32xbf16>
    %280 = vector.shape_cast %279 : vector<1x64x32xbf16> to vector<64x32xbf16>
    %cst_261 = arith.constant dense<0.000000e+00> : vector<4x32xf32>
    %281 = tpu.matmul %278, %280, %cst_261 {dimension_numbers = #tpu.dot_dimension_numbers<[1], [0], [0], [1], [0, 0, 1, 1], [], []>} : vector<4x64xbf16>, vector<64x32xbf16>, vector<4x32xf32> -> vector<4x32xf32>
    %282 = arith.addf %274, %281 : vector<4x32xf32>
    %c8_262 = arith.constant 8 : index
    %c0_263 = arith.constant 0 : index
    %c0_264 = arith.constant 0 : index
    %283 = vector.load %arg10[%c8_262, %c0_263, %c0_264] : memref<9x4x16xbf16, #tpu.memory_space<vmem>>, vector<1x4x16xbf16>
    %284 = vector.shape_cast %283 : vector<1x4x16xbf16> to vector<4x16xbf16>
    %cst_265 = arith.constant dense<0.000000e+00> : vector<4x64xf32>
    %285 = tpu.matmul %284, %219, %cst_265 {dimension_numbers = #tpu.dot_dimension_numbers<[1], [0], [0], [1], [0, 0, 1, 1], [], []>} : vector<4x16xbf16>, vector<16x64xbf16>, vector<4x64xf32> -> vector<4x64xf32>
    %286 = arith.truncf %285 : vector<4x64xf32> to vector<4x64xbf16>
    %c8_266 = arith.constant 8 : index
    %c0_267 = arith.constant 0 : index
    %c0_268 = arith.constant 0 : index
    %287 = vector.load %arg11[%c8_266, %c0_267, %c0_268] : memref<9x64x32xbf16, #tpu.memory_space<vmem>>, vector<1x64x32xbf16>
    %288 = vector.shape_cast %287 : vector<1x64x32xbf16> to vector<64x32xbf16>
    %cst_269 = arith.constant dense<0.000000e+00> : vector<4x32xf32>
    %289 = tpu.matmul %286, %288, %cst_269 {dimension_numbers = #tpu.dot_dimension_numbers<[1], [0], [0], [1], [0, 0, 1, 1], [], []>} : vector<4x64xbf16>, vector<64x32xbf16>, vector<4x32xf32> -> vector<4x32xf32>
    %290 = arith.addf %282, %289 : vector<4x32xf32>
    %c0_270 = arith.constant 0 : index
    %c0_271 = arith.constant 0 : index
    %291 = vector.load %arg12[%c0_270, %c0_271] : memref<1x32xf32, #tpu.memory_space<vmem>>, vector<1x32xf32>
    %292 = vector.broadcast %291 : vector<1x32xf32> to vector<4x32xf32>
    %293 = arith.addf %290, %292 : vector<4x32xf32>
    %cst_272 = arith.constant 0.000000e+00 : f32
    %294 = vector.broadcast %cst_272 : f32 to vector<4x32xf32>
    %295 = arith.maximumf %293, %294 : vector<4x32xf32>
    %296 = arith.truncf %295 : vector<4x32xf32> to vector<4x32xbf16>
    %c0_273 = arith.constant 0 : index
    %c0_274 = arith.constant 0 : index
    %297 = vector.load %arg14[%c0_273, %c0_274] : memref<1x512xf32, #tpu.memory_space<vmem>>, vector<1x512xf32>
    %298 = vector.extract_strided_slice %296 {offsets = [0, 0], sizes = [1, 32], strides = [1, 1]} : vector<4x32xbf16> to vector<1x32xbf16>
    %c0_275 = arith.constant 0 : index
    %c0_276 = arith.constant 0 : index
    %c0_277 = arith.constant 0 : index
    %299 = vector.load %arg13[%c0_275, %c0_276, %c0_277] : memref<4x32x512xbf16, #tpu.memory_space<vmem>>, vector<1x32x512xbf16>
    %300 = vector.shape_cast %299 : vector<1x32x512xbf16> to vector<32x512xbf16>
    %cst_278 = arith.constant dense<0.000000e+00> : vector<1x512xf32>
    %301 = tpu.matmul %298, %300, %cst_278 {dimension_numbers = #tpu.dot_dimension_numbers<[1], [0], [0], [1], [0, 0, 1, 1], [], []>} : vector<1x32xbf16>, vector<32x512xbf16>, vector<1x512xf32> -> vector<1x512xf32>
    %302 = arith.addf %297, %301 : vector<1x512xf32>
    %303 = vector.extract_strided_slice %296 {offsets = [1, 0], sizes = [1, 32], strides = [1, 1]} : vector<4x32xbf16> to vector<1x32xbf16>
    %c1_279 = arith.constant 1 : index
    %c0_280 = arith.constant 0 : index
    %c0_281 = arith.constant 0 : index
    %304 = vector.load %arg13[%c1_279, %c0_280, %c0_281] : memref<4x32x512xbf16, #tpu.memory_space<vmem>>, vector<1x32x512xbf16>
    %305 = vector.shape_cast %304 : vector<1x32x512xbf16> to vector<32x512xbf16>
    %cst_282 = arith.constant dense<0.000000e+00> : vector<1x512xf32>
    %306 = tpu.matmul %303, %305, %cst_282 {dimension_numbers = #tpu.dot_dimension_numbers<[1], [0], [0], [1], [0, 0, 1, 1], [], []>} : vector<1x32xbf16>, vector<32x512xbf16>, vector<1x512xf32> -> vector<1x512xf32>
    %307 = arith.addf %302, %306 : vector<1x512xf32>
    %308 = vector.extract_strided_slice %296 {offsets = [2, 0], sizes = [1, 32], strides = [1, 1]} : vector<4x32xbf16> to vector<1x32xbf16>
    %c2_283 = arith.constant 2 : index
    %c0_284 = arith.constant 0 : index
    %c0_285 = arith.constant 0 : index
    %309 = vector.load %arg13[%c2_283, %c0_284, %c0_285] : memref<4x32x512xbf16, #tpu.memory_space<vmem>>, vector<1x32x512xbf16>
    %310 = vector.shape_cast %309 : vector<1x32x512xbf16> to vector<32x512xbf16>
    %cst_286 = arith.constant dense<0.000000e+00> : vector<1x512xf32>
    %311 = tpu.matmul %308, %310, %cst_286 {dimension_numbers = #tpu.dot_dimension_numbers<[1], [0], [0], [1], [0, 0, 1, 1], [], []>} : vector<1x32xbf16>, vector<32x512xbf16>, vector<1x512xf32> -> vector<1x512xf32>
    %312 = arith.addf %307, %311 : vector<1x512xf32>
    %313 = vector.extract_strided_slice %296 {offsets = [3, 0], sizes = [1, 32], strides = [1, 1]} : vector<4x32xbf16> to vector<1x32xbf16>
    %c3_287 = arith.constant 3 : index
    %c0_288 = arith.constant 0 : index
    %c0_289 = arith.constant 0 : index
    %314 = vector.load %arg13[%c3_287, %c0_288, %c0_289] : memref<4x32x512xbf16, #tpu.memory_space<vmem>>, vector<1x32x512xbf16>
    %315 = vector.shape_cast %314 : vector<1x32x512xbf16> to vector<32x512xbf16>
    %cst_290 = arith.constant dense<0.000000e+00> : vector<1x512xf32>
    %316 = tpu.matmul %313, %315, %cst_290 {dimension_numbers = #tpu.dot_dimension_numbers<[1], [0], [0], [1], [0, 0, 1, 1], [], []>} : vector<1x32xbf16>, vector<32x512xbf16>, vector<1x512xf32> -> vector<1x512xf32>
    %317 = arith.addf %312, %316 : vector<1x512xf32>
    %cst_291 = arith.constant 0.000000e+00 : f32
    %318 = vector.broadcast %cst_291 : f32 to vector<1x512xf32>
    %319 = arith.maximumf %317, %318 : vector<1x512xf32>
    %320 = arith.truncf %319 : vector<1x512xf32> to vector<1x512xbf16>
    %c0_292 = arith.constant 0 : index
    %c0_293 = arith.constant 0 : index
    %321 = vector.load %arg15[%c0_292, %c0_293] : memref<512x256xbf16, #tpu.memory_space<vmem>>, vector<512x256xbf16>
    %cst_294 = arith.constant dense<0.000000e+00> : vector<1x256xf32>
    %322 = tpu.matmul %320, %321, %cst_294 {dimension_numbers = #tpu.dot_dimension_numbers<[1], [0], [0], [1], [0, 0, 1, 1], [], []>} : vector<1x512xbf16>, vector<512x256xbf16>, vector<1x256xf32> -> vector<1x256xf32>
    %c0_295 = arith.constant 0 : index
    %c0_296 = arith.constant 0 : index
    %323 = vector.load %arg16[%c0_295, %c0_296] : memref<1x256xf32, #tpu.memory_space<vmem>>, vector<1x256xf32>
    %324 = arith.addf %322, %323 : vector<1x256xf32>
    %cst_297 = arith.constant 0.000000e+00 : f32
    %325 = vector.broadcast %cst_297 : f32 to vector<1x256xf32>
    %326 = arith.maximumf %324, %325 : vector<1x256xf32>
    %327 = arith.truncf %326 : vector<1x256xf32> to vector<1x256xbf16>
    %c0_298 = arith.constant 0 : index
    %c0_299 = arith.constant 0 : index
    %328 = vector.load %arg17[%c0_298, %c0_299] : memref<256x128xbf16, #tpu.memory_space<vmem>>, vector<256x128xbf16>
    %cst_300 = arith.constant dense<0.000000e+00> : vector<1x128xf32>
    %329 = tpu.matmul %327, %328, %cst_300 {dimension_numbers = #tpu.dot_dimension_numbers<[1], [0], [0], [1], [0, 0, 1, 1], [], []>} : vector<1x256xbf16>, vector<256x128xbf16>, vector<1x128xf32> -> vector<1x128xf32>
    %c0_301 = arith.constant 0 : index
    %c0_302 = arith.constant 0 : index
    %330 = vector.load %arg18[%c0_301, %c0_302] : memref<1x128xf32, #tpu.memory_space<vmem>>, vector<1x128xf32>
    %331 = arith.addf %329, %330 : vector<1x128xf32>
    %c0_303 = arith.constant 0 : index
    %c0_304 = arith.constant 0 : index
    %c0_305 = arith.constant 0 : index
    %332 = vector.load %arg19[%c0_303, %c0_304, %c0_305] : memref<1x1x128xf32, #tpu.memory_space<vmem>>, vector<1x1x128xf32>
    %333 = vector.shape_cast %332 : vector<1x1x128xf32> to vector<1x128xf32>
    %334 = vector.shape_cast %331 : vector<1x128xf32> to vector<1x1x128xf32>
    tpu.vector_store %arg19[%c0_303, %c0_304, %c0_305], %334 {strides = array<i32>} : memref<1x1x128xf32, #tpu.memory_space<vmem>>, vector<1x1x128xf32>,
    return
  }
  func.func @transform_0(%arg0: i32) -> (i32, i32, i32) {
    %c0_i32 = arith.constant 0 : i32
    %c0_i32_0 = arith.constant 0 : i32
    %c0_i32_1 = arith.constant 0 : i32
    return %arg0, %c0_i32, %c0_i32_0 : i32, i32, i32
  }
  func.func @transform_1(%arg0: i32) -> (i32, i32) {
    %c0_i32 = arith.constant 0 : i32
    %c0_i32_0 = arith.constant 0 : i32
    %c0_i32_1 = arith.constant 0 : i32
    return %c0_i32, %c0_i32_0 : i32, i32
  }
  func.func @transform_2(%arg0: i32) -> (i32, i32) {
    %c0_i32 = arith.constant 0 : i32
    %c0_i32_0 = arith.constant 0 : i32
    %c0_i32_1 = arith.constant 0 : i32
    return %c0_i32, %c0_i32_0 : i32, i32
  }
  func.func @transform_3(%arg0: i32) -> (i32, i32, i32) {
    %c0_i32 = arith.constant 0 : i32
    %c0_i32_0 = arith.constant 0 : i32
    %c0_i32_1 = arith.constant 0 : i32
    %c0_i32_2 = arith.constant 0 : i32
    return %c0_i32, %c0_i32_0, %c0_i32_1 : i32, i32, i32
  }
  func.func @transform_4(%arg0: i32) -> (i32, i32, i32) {
    %c0_i32 = arith.constant 0 : i32
    %c0_i32_0 = arith.constant 0 : i32
    %c0_i32_1 = arith.constant 0 : i32
    %c0_i32_2 = arith.constant 0 : i32
    return %c0_i32, %c0_i32_0, %c0_i32_1 : i32, i32, i32
  }
  func.func @transform_5(%arg0: i32) -> (i32, i32) {
    %c0_i32 = arith.constant 0 : i32
    %c0_i32_0 = arith.constant 0 : i32
    %c0_i32_1 = arith.constant 0 : i32
    return %c0_i32, %c0_i32_0 : i32, i32
  }
  func.func @transform_6(%arg0: i32) -> (i32, i32, i32) {
    %c0_i32 = arith.constant 0 : i32
    %c0_i32_0 = arith.constant 0 : i32
    %c0_i32_1 = arith.constant 0 : i32
    %c0_i32_2 = arith.constant 0 : i32
    return %c0_i32, %c0_i32_0, %c0_i32_1 : i32, i32, i32
  }
  func.func @transform_7(%arg0: i32) -> (i32, i32, i32) {
    %c0_i32 = arith.constant 0 : i32
    %c0_i32_0 = arith.constant 0 : i32
    %c0_i32_1 = arith.constant 0 : i32
    %c0_i32_2 = arith.constant 0 : i32
    return %c0_i32, %c0_i32_0, %c0_i32_1 : i32, i32, i32
  }
  func.func @transform_8(%arg0: i32) -> (i32, i32) {
    %c0_i32 = arith.constant 0 : i32
    %c0_i32_0 = arith.constant 0 : i32
    %c0_i32_1 = arith.constant 0 : i32
    return %c0_i32, %c0_i32_0 : i32, i32
  }
  func.func @transform_9(%arg0: i32) -> (i32, i32, i32) {
    %c0_i32 = arith.constant 0 : i32
    %c0_i32_0 = arith.constant 0 : i32
    %c0_i32_1 = arith.constant 0 : i32
    %c0_i32_2 = arith.constant 0 : i32
    return %c0_i32, %c0_i32_0, %c0_i32_1 : i32, i32, i32
  }
  func.func @transform_10(%arg0: i32) -> (i32, i32, i32) {
    %c0_i32 = arith.constant 0 : i32
    %c0_i32_0 = arith.constant 0 : i32
    %c0_i32_1 = arith.constant 0 : i32
    %c0_i32_2 = arith.constant 0 : i32
    return %c0_i32, %c0_i32_0, %c0_i32_1 : i32, i32, i32
  }
  func.func @transform_11(%arg0: i32) -> (i32, i32) {
    %c0_i32 = arith.constant 0 : i32
    %c0_i32_0 = arith.constant 0 : i32
    %c0_i32_1 = arith.constant 0 : i32
    return %c0_i32, %c0_i32_0 : i32, i32
  }
  func.func @transform_12(%arg0: i32) -> (i32, i32, i32) {
    %c0_i32 = arith.constant 0 : i32
    %c0_i32_0 = arith.constant 0 : i32
    %c0_i32_1 = arith.constant 0 : i32
    %c0_i32_2 = arith.constant 0 : i32
    return %c0_i32, %c0_i32_0, %c0_i32_1 : i32, i32, i32
  }
  func.func @transform_13(%arg0: i32) -> (i32, i32) {
    %c0_i32 = arith.constant 0 : i32
    %c0_i32_0 = arith.constant 0 : i32
    %c0_i32_1 = arith.constant 0 : i32
    return %c0_i32, %c0_i32_0 : i32, i32
  }
  func.func @transform_14(%arg0: i32) -> (i32, i32) {
    %c0_i32 = arith.constant 0 : i32
    %c0_i32_0 = arith.constant 0 : i32
    %c0_i32_1 = arith.constant 0 : i32
    return %c0_i32, %c0_i32_0 : i32, i32
  }
  func.func @transform_15(%arg0: i32) -> (i32, i32) {
    %c0_i32 = arith.constant 0 : i32
    %c0_i32_0 = arith.constant 0 : i32
    %c0_i32_1 = arith.constant 0 : i32
    return %c0_i32, %c0_i32_0 : i32, i32
  }
  func.func @transform_16(%arg0: i32) -> (i32, i32) {
    %c0_i32 = arith.constant 0 : i32
    %c0_i32_0 = arith.constant 0 : i32
    %c0_i32_1 = arith.constant 0 : i32
    return %c0_i32, %c0_i32_0 : i32, i32
  }
  func.func @transform_17(%arg0: i32) -> (i32, i32) {
    %c0_i32 = arith.constant 0 : i32
    %c0_i32_0 = arith.constant 0 : i32
    %c0_i32_1 = arith.constant 0 : i32
    return %c0_i32, %c0_i32_0 : i32, i32
  }
  func.func @transform_18(%arg0: i32) -> (i32, i32, i32) {
    %c0_i32 = arith.constant 0 : i32
    %c0_i32_0 = arith.constant 0 : i32
    %c0_i32_1 = arith.constant 0 : i32
    return %arg0, %c0_i32, %c0_i32_0 : i32, i32, i32
  }
}

</mosaic_0001>

<bundles_post_ra>
// kernel: dqn_forward.1
= control target key start
LH: loop header
LB: loop body
LE: loop exit
PB: predicated region body
PF: predicated region fallthrough
CT: control target
= control target key end

     0   :  { %s10494_s0 = inlined_call_operand.vmem [shape: bf16[2,196,256], index: 0, kind: input, shape index: {}]   ;;  %s10495_s1 = inlined_call_operand.vmem [shape: bf16[256,32], index: 1, kind: input, shape index: {}]   ;;  %s10496_s2 = inlined_call_operand.vmem [shape: f32[1,32], index: 2, kind: input, shape index: {}]   ;;  %s10497_s3 = inlined_call_operand.vmem [shape: bf16[16,36,196], index: 3, kind: input, shape index: {}]   ;;  %s10498_s4 = inlined_call_operand.vmem [shape: bf16[16,32,64], index: 4, kind: input, shape index: {}]   ;;  %s10499_s5 = inlined_call_operand.vmem [shape: f32[1,64], index: 5, kind: input, shape index: {}]   ;;  %s10500_s6 = inlined_call_operand.vmem [shape: bf16[9,16,36], index: 6, kind: input, shape index: {}]   ;;  %s10501_s7 = inlined_call_operand.vmem [shape: bf16[9,64,64], index: 7, kind: input, shape index: {}]   ;;  %s10502_s8 = inlined_call_operand.vmem [shape: f32[1,64], index: 8, kind: input, shape index: {}]   ;;  %s10503_s9 = inlined_call_operand.vmem [shape: bf16[9,4,16], index: 9, kind: input, shape index: {}]   ;;  %s10504_s10 = inlined_call_operand.vmem [shape: bf16[9,64,32], index: 10, kind: input, shape index: {}]   ;;  %s10505_s11 = inlined_call_operand.vmem [shape: f32[1,32], index: 11, kind: input, shape index: {}]   ;;  %s10506_s12 = inlined_call_operand.vmem [shape: bf16[4,32,512], index: 12, kind: input, shape index: {}]   ;;  %s10507_s13 = inlined_call_operand.vmem [shape: f32[1,512], index: 13, kind: input, shape index: {}]   ;;  %s10508_s14 = inlined_call_operand.vmem [shape: bf16[512,256], index: 14, kind: input, shape index: {}]   ;;  %s10509_s15 = inlined_call_operand.vmem [shape: f32[1,256], index: 15, kind: input, shape index: {}]   ;;  %s10510_s16 = inlined_call_operand.vmem [shape: bf16[256,128], index: 16, kind: input, shape index: {}]   ;;  %s10511_s17 = inlined_call_operand.vmem [shape: f32[1,128], index: 17, kind: input, shape index: {}]   ;;  %s10512_s18 = inlined_call_operand.hbm [shape: f32[2,1,128], index: 18, kind: output, shape index: {}]  }
   0x1   :  { %10523 = sst [smem:[#allocation12_spill]] %s10494_s0 }
   0x2   :  { %10524 = sst [smem:[#allocation13_spill]] %s10495_s1 }
   0x3   :  { %10525 = sst [smem:[#allocation14_spill]] %s10496_s2 }
   0x4   :  { %10526 = sst [smem:[#allocation15_spill]] %s10497_s3 }
   0x5   :  { %10527 = sst [smem:[#allocation16_spill]] %s10511_s17 }
   0x6   :  { %10528 = sst [smem:[#allocation17_spill]] %s10512_s18 }
   0x7   :  { %23 = vsyncpa [#allocation3], 0 }
   0x8   :  { %25 = vsyncpa [#allocation3 + $0x1], 0  ;;  %s8184_s27 = smov 0   ;;  %s8186_s28 = smov 0  }
   0x9   :  { %s8188_s29 = smov 0   ;;  %s8190_s30 = smov 0  }
   0xa LB: > { %10529 = sst [smem:[#allocation5_spill]] %s8075_s27  ;;  %s8205_s0 = sadd.s32 4294967295, %s8087_s30   ;;  %s8087_s30 = sphi %s8190_s30, %s10548_s30   ;;  %s8083_s29 = sphi %s8188_s29, %s10550_s29   ;;  %s8079_s28 = sphi %s8186_s28, %s10552_s28   ;;  %s8075_s27 = sphi %s8184_s27, %s10551_s27  }
   0xb   : > { %10530 = sst [smem:[#allocation6_spill]] %s8083_s29  ;;  %s5870_s19 = sadd.s32 4294967294, %s8087_s30  }
   0xc   : > { %10531 = sst [smem:[#allocation7_spill]] %s8087_s30  ;;  %s8209_s1 = sadd.s32 1, %s8087_s30  }
   0xd   : > { %10532 = sst [smem:[#allocation8_spill]] %s8209_s1  ;;  %s421_s20 = sadd.s32 1, %s8083_s29 }
   0xe   : > { %s418_s21 = ssub.s32 %s8087_s30, %s8209_s1  ;;  %p431_p0 = scmp.ne.s32.totalorder %s8083_s29, %s8079_s28 }
   0xf   : > { %p419_p1 = scmp.eq.s32.totalorder %s418_s21, 0  ;;  %p432_p2 = scmp.eq.s32.totalorder %s8205_s0, 1 }
  0x10   : > { %p437_p3 = scmp.ne.s32.totalorder %s8079_s28, %s8075_s27  ;;  %p438_p4 = scmp.eq.s32.totalorder %s5870_s19, 1 }
  0x11   : > { %s8220_s22 = scalar_select %p419_p1, %s8083_s29, %s421_s20  }
  0x12   : > { %p8222_p5 = por %p432_p2, %p431_p0  ;;  %p8226_p6 = por %p438_p4, %p437_p3 }
  0x13   : > { %10533 = sst [smem:[#allocation9_spill]] %s8220_s22  ;;  %p5873_p7 = scmp.ge.s32.totalorder %s8087_s30, 1 }
  0x14   : > { %s10534_s2 = scalar_select %p8222_p5, 1, 0 }
  0x15   : > { %s10536_s23 = scalar_select %p8226_p6, 1, 0 }
  0x16   : > { %10535 = sst [smem:[#allocation10_spill]] %s10534_s2  ;;  %p515_p8 = scmp.lt.s32.totalorder %s8087_s30, 3 }
  0x17   : > { %10537 = sst [smem:[#allocation11_spill]] %s10536_s23 }
  0x18   : > { %p516_p9 = pnand %p5873_p7, %p515_p8 }
  0x19   : > { %s10538_s26 = sld [smem:[#allocation13_spill]] (!%p516_p9)  ;;  %p568_p10 = scmp.lt.s32.totalorder (!%p516_p9), %s8205_s0, 1 }
  0x1a   : > { %519 = sbr.rel (%p516_p9) target bundleno = 3595 (0xe0b), region = 92  ;;  %s10539_s17 = sld [smem:[#allocation12_spill]] (!%p516_p9) }
  0x1b   : > { %s10540_s30 = sld [smem:[#allocation14_spill]] (!%p516_p9)  ;;  %s566_s23 = sand.u32 (!%p516_p9), 1, %s8079_s28  }
  0x1c   : > { %s10541_s3 = sld [smem:[#allocation15_spill]] (!%p516_p9)  ;;  %s567_s20 = scalar_lea.vmem (!%p516_p9), [#allocation2], %s566_s23 }
  0x1d   : > { %s5803_s29 = scalar_lea.sflag (!%p516_p9), [#allocation3], %s566_s23 }
  0x1f   : > { %v7683_v0 = vld [vmem:[%s10538_s26 + $0x38] sm:$0xff]  ;;  %v7682_v2 = vld [vmem:[%s10538_s26 + $0x30] sm:$0xff]  ;;  %v7681_v4 = vld [vmem:[%s10538_s26 + $0x28] sm:$0xff]  ;;  %s569_s24 = scalar_select %p568_p10, %s8205_s0, 1  ;;  %vm1081_vm0 = vcmask 1041408   ;;  %vm1071_vm1 = vcmask 556032  }
  0x20   : > { %v7691_v1 = vld [vmem:[%s10538_s26 + $0x78] sm:$0xff]  ;;  %858 = vmatpush.bf16.msra.mxu0 %v7683_v0  ;;  %v7690_v3 = vld [vmem:[%s10538_s26 + $0x70] sm:$0xff]  ;;  %v7689_v5 = vld [vmem:[%s10538_s26 + $0x68] sm:$0xff]  ;;  %vm1243_vm2 = vcmask 261120   ;;  %vm3332_vm3 = vcmask 293888   ;;  %vm3421_vm4 = vcmask 523264  }
  0x21   : > { %931 = vmatpush.bf16.msra.mxu1 %v7691_v1  ;;  %v7680_v6 = vld [vmem:[%s10538_s26 + $0x20] sm:$0xff]  ;;  %v7679_v8 = vld [vmem:[%s10538_s26 + $0x18] sm:$0xff]  ;;  %v7678_v10 = vld [vmem:[%s10538_s26 + $0x10] sm:$0xff]  ;;  %s7981_s21 = smul.u32 200, %s569_s24  ;;  %vm4036_vm5 = vcmask 130048   ;;  %vm4771_vm6 = vcmask 1040384  }
  0x22   : > { %v7688_v7 = vld [vmem:[%s10538_s26 + $0x60] sm:$0xff]  ;;  %v7687_v9 = vld [vmem:[%s10538_s26 + $0x58] sm:$0xff]  ;;  %v7686_v11 = vld [vmem:[%s10538_s26 + $0x50] sm:$0xff]  ;;  %vm4773_vm7 = vcmask 1042434   ;;  %s10542_s24 = sld [smem:[#allocation17_spill]] }
  0x23   : > { %v7677_v12 = vld [vmem:[%s10538_s26 + $0x8] sm:$0xff]  ;;  %s8279_s25 = scalar_lea.vmem %s10539_s17, %s7981_s21  ;;  %v7676_v14 = vld [vmem:[%s10538_s26] sm:$0xff]  ;;  %s5813_s21 = sshll.u32 %s567_s20, 4  ;;  %s5814_s21 = int_to_ptr.vmem [resolvable:$true] %s5813_s21 }
  0x24   : > { %859 = vmatpush.bf16.msra.mxu0 %v7682_v2  ;;  %v7685_v13 = vld [vmem:[%s10538_s26 + $0x48] sm:$0xff]  ;;  %v7684_v15 = vld [vmem:[%s10538_s26 + $0x40] sm:$0xff]  ;;  %v5885_v22 = vld [vmem:[%s8279_s25 + $0x10] sm:$0xf] }
  0x25   : > { %932 = vmatpush.bf16.msra.mxu1 %v7690_v3  ;;  %v5877_v16 = vld [vmem:[%s8279_s25] sm:$0xf]  ;;  %v7653_v17 = vld [vmem:[%s8279_s25 + $0x4] sm:$0xf0]  ;;  %v7652_v18 = vld [vmem:[%s8279_s25 + $0x4] sm:$0xf] }
  0x26   : > { %v5879_v19 = vld [vmem:[%s8279_s25 + $0x8] sm:$0xf0]  ;;  %v5878_v20 = vor.u32 %v7653_v17, %v5877_v16  ;;  %v7655_v23 = vld [vmem:[%s8279_s25 + $0x14] sm:$0xf0]  ;;  %v7654_v24 = vld [vmem:[%s8279_s25 + $0x14] sm:$0xf] }
  0x27   : > { %v5882_v21 = vor.u32 %v7652_v18, %v5879_v19  ;;  %v5887_v25 = vld [vmem:[%s8279_s25 + $0x18] sm:$0xf0]  ;;  %v5886_v26 = vor.u32 %v7655_v23, %v5885_v22  ;;  %v5893_v28 = vld [vmem:[%s8279_s25 + $0x20] sm:$0xf]  ;;  %v7657_v29 = vld [vmem:[%s8279_s25 + $0x24] sm:$0xf0] }
  0x28   : > { %860 = vmatpush.bf16.msra.mxu0 %v7681_v4  ;;  %v5890_v27 = vor.u32 %v7654_v24, %v5887_v25  ;;  %v7656_v30 = vld [vmem:[%s8279_s25 + $0x24] sm:$0xf]  ;;  %v5895_v31 = vld [vmem:[%s8279_s25 + $0x28] sm:$0xf0]  ;;  %v5894_v32 = vor.u32 %v7657_v29, %v5893_v28  ;;  %v5901_v34 = vld [vmem:[%s8279_s25 + $0x30] sm:$0xf]  ;;  %s5811_s22 = scalar_lea.hbm %s10542_s24, %s8205_s0 }
  0x29   : > { %933 = vmatpush.bf16.msra.mxu1 %v7689_v5  ;;  %v5898_v33 = vor.u32 %v7656_v30, %v5895_v31  ;;  %v7659_v35 = vld [vmem:[%s8279_s25 + $0x34] sm:$0xf0]  ;;  %v7658_v36 = vld [vmem:[%s8279_s25 + $0x34] sm:$0xf]  ;;  %v5903_v37 = vld [vmem:[%s8279_s25 + $0x38] sm:$0xf0] }
  0x2a   : > { %v5902_v38 = vor.u32 %v7659_v35, %v5901_v34  ;;  %v5906_v39 = vor.u32 %v7658_v36, %v5903_v37  ;;  %v5909_v40 = vld [vmem:[%s8279_s25 + $0x40] sm:$0xf]  ;;  %v7661_v41 = vld [vmem:[%s8279_s25 + $0x44] sm:$0xf0]  ;;  %v7660_v42 = vld [vmem:[%s8279_s25 + $0x44] sm:$0xf] }
  0x2b   : > { %v5911_v43 = vld [vmem:[%s8279_s25 + $0x48] sm:$0xf0]  ;;  %v5910_v44 = vor.u32 %v7661_v41, %v5909_v40  ;;  %v5917_v46 = vld [vmem:[%s8279_s25 + $0x50] sm:$0xf]  ;;  %v7663_v47 = vld [vmem:[%s8279_s25 + $0x54] sm:$0xf0] }
  0x2c   : > { %861 = vmatpush.bf16.msra.mxu0 %v7680_v6  ;;  %v5914_v45 = vor.u32 %v7660_v42, %v5911_v43  ;;  %v7662_v48 = vld [vmem:[%s8279_s25 + $0x54] sm:$0xf]  ;;  %v5919_v49 = vld [vmem:[%s8279_s25 + $0x58] sm:$0xf0]  ;;  %v5918_v50 = vor.u32 %v7663_v47, %v5917_v46  ;;  %v5925_v52 = vld [vmem:[%s8279_s25 + $0x60] sm:$0xf] }
  0x2d   : > { %934 = vmatpush.bf16.msra.mxu1 %v7688_v7  ;;  %v5922_v51 = vor.u32 %v7662_v48, %v5919_v49  ;;  %v7665_v53 = vld [vmem:[%s8279_s25 + $0x64] sm:$0xf0]  ;;  %v7664_v54 = vld [vmem:[%s8279_s25 + $0x64] sm:$0xf]  ;;  %v5927_v55 = vld [vmem:[%s8279_s25 + $0x68] sm:$0xf0] }
  0x2e   : > { %v5926_v56 = vor.u32 %v7665_v53, %v5925_v52  ;;  %v5930_v57 = vor.u32 %v7664_v54, %v5927_v55  ;;  %v5933_v58 = vld [vmem:[%s8279_s25 + $0x70] sm:$0xf]  ;;  %v7667_v59 = vld [vmem:[%s8279_s25 + $0x74] sm:$0xf0]  ;;  %v7666_v60 = vld [vmem:[%s8279_s25 + $0x74] sm:$0xf] }
  0x2f   : > { %v5935_v61 = vld [vmem:[%s8279_s25 + $0x78] sm:$0xf0]  ;;  %v5934_v62 = vor.u32 %v7667_v59, %v5933_v58  ;;  %v5941_v0 = vld [vmem:[%s8279_s25 + $0x80] sm:$0xf]  ;;  %v7669_v1 = vld [vmem:[%s8279_s25 + $0x84] sm:$0xf0] }
  0x30   : > { %862 = vmatpush.bf16.msra.mxu0 %v7679_v8  ;;  %v5938_v63 = vor.u32 %v7666_v60, %v5935_v61  ;;  %v7668_v2 = vld [vmem:[%s8279_s25 + $0x84] sm:$0xf]  ;;  %v5943_v3 = vld [vmem:[%s8279_s25 + $0x88] sm:$0xf0]  ;;  %v8326_v4 = vld [vmem:[%s10540_s30] ss:$0 sm:$0xff]  ;;  %v5942_v5 = vor.u32 %v7669_v1, %v5941_v0 }
  0x31   : > { %935 = vmatpush.bf16.msra.mxu1 %v7687_v9  ;;  %v5946_v6 = vor.u32 %v7668_v2, %v5943_v3  ;;  %v7671_v16 = vld [vmem:[%s8279_s25 + $0x94] sm:$0xf0]  ;;  %v7670_v17 = vld [vmem:[%s8279_s25 + $0x94] sm:$0xf]  ;;  %v5951_v18 = vld [vmem:[%s8279_s25 + $0x98] sm:$0xf0] }
  0x32   : > { %v5954_v23 = vor.u32 %v7670_v17, %v5951_v18  ;;  %v5957_v30 = vld [vmem:[%s8279_s25 + $0xa0] sm:$0xf]  ;;  %v7673_v31 = vld [vmem:[%s8279_s25 + $0xa4] sm:$0xf0]  ;;  %v5965_v42 = vld [vmem:[%s8279_s25 + $0xb0] sm:$0xf] }
  0x33   : > { %v5958_v34 = vor.u32 %v7673_v31, %v5957_v30  ;;  %v7675_v43 = vld [vmem:[%s8279_s25 + $0xb4] sm:$0xf0]  ;;  %v598_v54 = vld [vmem:[%s8279_s25 + $0xc0] sm:$0x33]  ;;  %s10543_s30 = sld [smem:[#allocation16_spill]]  ;;  %s5815_s27 = sshll.u32 %s5811_s22, 4  ;;  %s5816_s27 = int_to_ptr.hbm [resolvable:$true] %s5815_s27 }
  0x34   : > { %863 = vmatpush.bf16.msra.mxu0 %v7678_v10  ;;  %v5966_v46 = vor.u32 %v7675_v43, %v5965_v42  ;;  %v708_v55 = vunpack.c.l.b16 %v598_v54  ;;  %s8039_s1 = sshra.s32 %s5816_s27, 4  ;;  %s8045_s19 = scalar_lea.hbm %s10542_s24, 2  ;;  %s8040_s1 = int_to_ptr.hbm [resolvable:$true] %s8039_s1 }
  0x35   : > { %936 = vmatpush.bf16.msra.mxu1 %v7686_v11  ;;  %p8046_p0 = scmp.lt.s32.totalorder %s8040_s1, %s10542_s24 }
  0x38   : > { %864 = vmatpush.bf16.msra.mxu0 %v7677_v12 }
  0x39   : > { %937 = vmatpush.bf16.msra.mxu1 %v7685_v13 }
  0x3c   : > { %865 = vmatpush.bf16.msra.mxu0 %v7676_v14 }
  0x3d   : > { %938 = vmatpush.bf16.msra.mxu1 %v7684_v15  ;;  %v5949_v15 = vld [vmem:[%s8279_s25 + $0x90] sm:$0xf] }
  0x3e   : > { %v5950_v22 = vor.u32 %v7671_v16, %v5949_v15 }
  0x3f   : > { %866 = vmatmul.bf16.vlgmr.msra.gmra.mxu0 %v5878_v20 }
  0x40   : > { %939 = vmatmul.bf16.vlgmr.msra.gmra.mxu1 %v5882_v21 }
  0x4f   : > { %871 = vmatmul.bf16.gmra.mxu0 %v5886_v26 }
  0x50   : > { %944 = vmatmul.bf16.gmra.mxu1 %v5890_v27 }
  0x5f   : > { %876 = vmatmul.bf16.gmra.mxu0 %v5894_v32  ;;  %v7672_v32 = vld [vmem:[%s8279_s25 + $0xa4] sm:$0xf] }
  0x60   : > { %949 = vmatmul.bf16.gmra.mxu1 %v5898_v33  ;;  %v5959_v33 = vld [vmem:[%s8279_s25 + $0xa8] sm:$0xf0] }
  0x61   : > { %v5962_v35 = vor.u32 %v7672_v32, %v5959_v33 }
  0x6f   : > { %881 = vmatmul.bf16.gmra.mxu0 %v5902_v38 }
  0x70   : > { %954 = vmatmul.bf16.gmra.mxu1 %v5906_v39 }
  0x7f   : > { %886 = vmatmul.bf16.gmra.mxu0 %v5910_v44  ;;  %v7674_v44 = vld [vmem:[%s8279_s25 + $0xb4] sm:$0xf] }
  0x80   : > { %959 = vmatmul.bf16.gmra.mxu1 %v5914_v45  ;;  %v5967_v45 = vld [vmem:[%s8279_s25 + $0xb8] sm:$0xf0] }
  0x81   : > { %v5970_v47 = vor.u32 %v7674_v44, %v5967_v45 }
  0x8f   : > { %891 = vmatmul.bf16.gmra.mxu0 %v5918_v50 }
  0x90   : > { %964 = vmatmul.bf16.gmra.mxu1 %v5922_v51 }
  0x9f   : > { %896 = vmatmul.bf16.gmra.mxu0 %v5926_v56  ;;  %v709_v56 = vunpack.c.h.b16 %v598_v54 }
  0xa0   : > { %969 = vmatmul.bf16.gmra.mxu1 %v5930_v57  ;;  %v734_v57 = vpack.c.b16 %v708_v55, %v708_v55 }
  0xa1   : > { %v735_v58 = vpack.c.b16 %v709_v56, %v709_v56 }
  0xaf   : > { %901 = vmatmul.bf16.gmra.mxu0 %v5934_v62 }
  0xb0   : > { %974 = vmatmul.bf16.gmra.mxu1 %v5938_v63 }
  0xbc   : > { %v867_v7 = vpop.f32.mrf.mxu0 }
  0xbd   : > { %v940_v8 = vpop.f32.mrf.mxu1  ;;  %v868_v9 = vadd.f32 %v8326_v4, %v867_v7  ;;  %v7714_v7 = vld [vmem:[%s10498_s4 + $0x30] sm:$0xff] }
  0xbf   : > { %v941_v10 = vadd.f32 %v940_v8, %v868_v9  ;;  %906 = vmatmul.bf16.gmra.mxu0 %v5942_v5 }
  0xc0   : > { %979 = vmatmul.bf16.gmra.mxu1 %v5946_v6  ;;  %v7715_v6 = vld [vmem:[%s10498_s4 + $0x38] sm:$0xff] }
  0xc1   : > { %v1004_v19 = vmax.f32 %v941_v10, 0.0  ;;  %1582 = vmatpush.bf16.msrb.mxu1 %v7715_v6 }
  0xc4   : > { %v869_v11 = vpop.f32.mrf.mxu0 }
  0xc5   : > { %v942_v12 = vpop.f32.mrf.mxu1  ;;  %v870_v13 = vadd.f32 %v8326_v4, %v869_v11  ;;  %1583 = vmatpush.bf16.msrb.mxu1 %v7714_v7 }
  0xc7   : > { %v943_v14 = vadd.f32 %v942_v12, %v870_v13 }
  0xc9   : > { %v1005_v20 = vmax.f32 %v943_v14, 0.0 }
  0xcb   : > { %v8334_v21 = vpack.c.bf16 %v1005_v20, %v1004_v19 }
  0xcc   : > { %v872_v24 = vpop.f32.mrf.mxu0 }
  0xcd   : > { %v945_v25 = vpop.f32.mrf.mxu1  ;;  %v873_v26 = vadd.f32 %v8326_v4, %v872_v24 }
  0xcf   : > { %v8337_v27 = vadd.f32 %v945_v25, %v873_v26  ;;  %911 = vmatmul.bf16.gmra.mxu0 %v5950_v22 }
  0xd0   : > { %984 = vmatmul.bf16.gmra.mxu1 %v5954_v23 }
  0xd4   : > { %v8339_v28 = vpop.f32.mrf.mxu0 }
  0xd5   : > { %v8341_v29 = vpop.f32.mrf.mxu1 }
  0xdc   : > { %v877_v36 = vpop.f32.mrf.mxu0 }
  0xdd   : > { %v950_v37 = vpop.f32.mrf.mxu1  ;;  %v878_v38 = vadd.f32 %v8326_v4, %v877_v36 }
  0xdf   : > { %v8348_v39 = vadd.f32 %v950_v37, %v878_v38  ;;  %916 = vmatmul.bf16.gmra.mxu0 %v5958_v34 }
  0xe0   : > { %989 = vmatmul.bf16.gmra.mxu1 %v5962_v35 }
  0xe4   : > { %v8350_v40 = vpop.f32.mrf.mxu0 }
  0xe5   : > { %v8352_v41 = vpop.f32.mrf.mxu1 }
  0xec   : > { %v882_v48 = vpop.f32.mrf.mxu0 }
  0xed   : > { %v955_v49 = vpop.f32.mrf.mxu1  ;;  %v883_v50 = vadd.f32 %v8326_v4, %v882_v48 }
  0xef   : > { %v8359_v51 = vadd.f32 %v955_v49, %v883_v50  ;;  %921 = vmatmul.bf16.gmra.mxu0 %v5966_v46  ;;  %v880_v50 = vadd.f32 %v8326_v4, %v8350_v40 }
  0xf0   : > { %994 = vmatmul.bf16.gmra.mxu1 %v5970_v47 }
  0xf4   : > { %v884_v52 = vpop.f32.mrf.mxu0 }
  0xf5   : > { %v957_v53 = vpop.f32.mrf.mxu1  ;;  %v885_v44 = vadd.f32 %v8326_v4, %v884_v52 }
  0xf7   : > { %v958_v54 = vadd.f32 %v957_v53, %v885_v44 }
  0xf9   : > { %v1011_v40 = vmax.f32 %v958_v54, 0.0 }
  0xfc   : > { %v887_v59 = vpop.f32.mrf.mxu0 }
  0xfd   : > { %v960_v60 = vpop.f32.mrf.mxu1  ;;  %v888_v61 = vadd.f32 %v8326_v4, %v887_v59  ;;  %v875_v59 = vadd.f32 %v8326_v4, %v8339_v28  ;;  %v1008_v28 = vmax.f32 %v8348_v39, 0.0  ;;  %v6037_v39 = vld [vmem:[%s10541_s3] sm:$0xf] }
  0xff   : > { %v8363_v62 = vadd.f32 %v960_v60, %v888_v61  ;;  %926 = vmatmul.bf16.gmra.mxu0 %v734_v57  ;;  %v953_v60 = vadd.f32 %v8352_v41, %v880_v50  ;;  %v1010_v61 = vmax.f32 %v8359_v51, 0.0 }
 0x100   : > { %999 = vmatmul.bf16.gmra.mxu1 %v735_v58 }
 0x101   : > { %v1012_v58 = vmax.f32 %v8363_v62, 0.0  ;;  %v948_v62 = vadd.f32 %v8341_v29, %v875_v59 }
 0x103   : > { %v1007_v41 = vmax.f32 %v948_v62, 0.0 }
 0x104   : > { %v889_v63 = vpop.f32.mrf.mxu0 }
 0x105   : > { %v962_v0 = vpop.f32.mrf.mxu1  ;;  %v890_v32 = vadd.f32 %v8326_v4, %v889_v63  ;;  %v1009_v63 = vmax.f32 %v953_v60, 0.0 }
 0x107   : > { %v963_v45 = vadd.f32 %v962_v0, %v890_v32  ;;  %v8410_v0 = vpack.c.bf16 %v1011_v40, %v1010_v61  ;;  %v8417_v51 = vpack.c.bf16 %v1009_v63, %v1008_v28 }
 0x109   : > { %v1013_v55 = vmax.f32 %v963_v45, 0.0 }
 0x10b   : > { %v8404_v53 = vpack.c.bf16 %v1013_v55, %v1012_v58 }
 0x10c   : > { %v892_v1 = vpop.f32.mrf.mxu0 }
 0x10d   : > { %v965_v2 = vpop.f32.mrf.mxu1  ;;  %v893_v25 = vadd.f32 %v8326_v4, %v892_v1 }
 0x10f   : > { %v966_v38 = vadd.f32 %v965_v2, %v893_v25 }
 0x111   : > { %v1014_v49 = vmax.f32 %v966_v38, 0.0 }
 0x114   : > { %v894_v3 = vpop.f32.mrf.mxu0 }
 0x115   : > { %v967_v5 = vpop.f32.mrf.mxu1  ;;  %v895_v22 = vadd.f32 %v8326_v4, %v894_v3  ;;  %v1006_v3 = vmax.f32 %v8337_v27, 0.0  ;;  %v7693_v27 = vld [vmem:[%s10541_s3 + $0x4] sm:$0xf0] }
 0x116   : > { %v6038_v7 = vor.u32 %v7693_v27, %v6037_v39  ;;  %v6152_v39 = vld [vmem:[%s10541_s3 + $0x80] sm:$0xf0] }
 0x117   : > { %v968_v33 = vadd.f32 %v967_v5, %v895_v22  ;;  %v8422_v29 = vpack.c.bf16 %v1007_v41, %v1006_v3  ;;  %v7692_v3 = vld [vmem:[%s10541_s3 + $0x4] sm:$0xf] }
 0x119   : > { %v1015_v46 = vmax.f32 %v968_v33, 0.0 }
 0x11b   : > { %v8392_v56 = vpack.c.bf16 %v1015_v46, %v1014_v49 }
 0x11c   : > { %v897_v8 = vpop.f32.mrf.mxu0 }
 0x11d   : > { %v970_v9 = vpop.f32.mrf.mxu1  ;;  %v898_v18 = vadd.f32 %v8326_v4, %v897_v8 }
 0x11f   : > { %v971_v26 = vadd.f32 %v970_v9, %v898_v18 }
 0x121   : > { %v1016_v42 = vmax.f32 %v971_v26, 0.0 }
 0x124   : > { %v899_v10 = vpop.f32.mrf.mxu0 }
 0x125   : > { %v972_v11 = vpop.f32.mrf.mxu1  ;;  %v900_v15 = vadd.f32 %v8326_v4, %v899_v10 }
 0x127   : > { %v973_v23 = vadd.f32 %v972_v11, %v900_v15 }
 0x129   : > { %v1017_v34 = vmax.f32 %v973_v23, 0.0 }
 0x12b   : > { %v8384_v47 = vpack.c.bf16 %v1017_v34, %v1016_v42 }
 0x12c   : > { %v902_v12 = vpop.f32.mrf.mxu0 }
 0x12d   : > { %v975_v13 = vpop.f32.mrf.mxu1  ;;  %v903_v14 = vadd.f32 %v8326_v4, %v902_v12  ;;  %v6045_v12 = vld [vmem:[%s10541_s3 + $0x10] sm:$0xf] }
 0x12f   : > { %v976_v19 = vadd.f32 %v975_v13, %v903_v14  ;;  %v7695_v13 = vld [vmem:[%s10541_s3 + $0x14] sm:$0xf0] }
 0x130   : > { %v6046_v14 = vor.u32 %v7695_v13, %v6045_v12  ;;  %v7696_v12 = vld [vmem:[%s10498_s4] sm:$0xff] }
 0x131   : > { %v1018_v30 = vmax.f32 %v976_v19, 0.0  ;;  %v7720_v13 = vld [vmem:[%s10498_s4 + $0x40] sm:$0xff] }
 0x134   : > { %v904_v16 = vpop.f32.mrf.mxu0 }
 0x135   : > { %v977_v17 = vpop.f32.mrf.mxu1  ;;  %v905_v20 = vadd.f32 %v8326_v4, %v904_v16 }
 0x137   : > { %v978_v24 = vadd.f32 %v977_v17, %v905_v20  ;;  %v8443_v17 = vld [vmem:[%s10541_s3 + $0x20] sm:$0x33] }
 0x138   : > { %v1060_v20 = vunpack.c.l.b16 %v8443_v17 }
 0x139   : > { %v1019_v31 = vmax.f32 %v978_v24, 0.0 }
 0x13a   : > { %v1066_v22 = vpack.c.b16 %v1060_v20, %v1060_v20  ;;  %v7703_v20 = vld [vmem:[%s10498_s4 + $0x18] sm:$0xff] }
 0x13b   : > { %v8378_v35 = vpack.c.bf16 %v1019_v31, %v1018_v30 }
 0x13c   : > { %v907_v36 = vpop.f32.mrf.mxu0 }
 0x13d   : > { %v980_v37 = vpop.f32.mrf.mxu1  ;;  %v908_v43 = vadd.f32 %v8326_v4, %v907_v36  ;;  %1085 = vmatpush.bf16.msra.mxu2 %v8378_v35  ;;  %1785 = vmatpush.bf16.msra.mxu1 %v8378_v35 }
 0x13f   : > { %v8386_v48 = vadd.f32 %v980_v37, %v908_v43 }
 0x141   : > { %1086 = vmatpush.bf16.msra.mxu2 %v8384_v47  ;;  %1786 = vmatpush.bf16.msra.mxu1 %v8384_v47 }
 0x144   : > { %v8394_v57 = vpop.f32.mrf.mxu0 }
 0x145   : > { %v8396_v52 = vpop.f32.mrf.mxu1  ;;  %1087 = vmatpush.bf16.msra.mxu2 %v8392_v56  ;;  %1787 = vmatpush.bf16.msra.mxu1 %v8392_v56  ;;  %v910_v58 = vadd.f32 %v8326_v4, %v8394_v57 }
 0x147   : > { %v983_v63 = vadd.f32 %v8396_v52, %v910_v58  ;;  %v6039_v52 = vld [vmem:[%s10541_s3 + $0x8] sm:$0xf0] }
 0x149   : > { %1088 = vmatpush.bf16.msra.mxu2 %v8404_v53  ;;  %1788 = vmatpush.bf16.msra.mxu1 %v8404_v53 }
 0x14c   : > { %v912_v1 = vpop.f32.mrf.mxu0 }
 0x14d   : > { %v8412_v2 = vpop.f32.mrf.mxu1  ;;  %1089 = vmatpush.bf16.msra.mxu2 %v8410_v0  ;;  %1789 = vmatpush.bf16.msra.mxu1 %v8410_v0  ;;  %v913_v50 = vadd.f32 %v8326_v4, %v912_v1 }
 0x14f   : > { %v986_v61 = vadd.f32 %v8412_v2, %v913_v50  ;;  %v1020_v2 = vmax.f32 %v8386_v48, 0.0  ;;  %v6063_v48 = vld [vmem:[%s10541_s3 + $0x30] sm:$0xf0] }
 0x151   : > { %1090 = vmatpush.bf16.msra.mxu2 %v8417_v51  ;;  %1790 = vmatpush.bf16.msra.mxu1 %v8417_v51  ;;  %v1022_v41 = vmax.f32 %v986_v61, 0.0 }
 0x154   : > { %v914_v5 = vpop.f32.mrf.mxu0 }
 0x155   : > { %v987_v6 = vpop.f32.mrf.mxu1  ;;  %1091 = vmatpush.bf16.msra.mxu2 %v8422_v29  ;;  %1791 = vmatpush.bf16.msra.mxu1 %v8422_v29  ;;  %v915_v42 = vadd.f32 %v8326_v4, %v914_v5  ;;  %v7698_v5 = vld [vmem:[%s10541_s3 + $0x2c] sm:$0xf] }
 0x157   : > { %v988_v59 = vadd.f32 %v987_v6, %v915_v42  ;;  %v7710_v6 = vld [vmem:[%s10541_s3 + $0x7c] sm:$0xf] }
 0x159   : > { %1092 = vmatpush.bf16.msra.mxu2 %v8334_v21  ;;  %1792 = vmatpush.bf16.msra.mxu1 %v8334_v21  ;;  %v1023_v1 = vmax.f32 %v988_v59, 0.0 }
 0x15b   : > { %v8473_v57 = vpack.c.bf16 %v1023_v1, %v1022_v41 }
 0x15c   : > { %v917_v8 = vpop.f32.mrf.mxu0  ;;  %1093 = vmatmul.bf16.vlgmr.msra.gmra.mxu2 %v6038_v7  ;;  %v7697_v7 = vld [vmem:[%s10498_s4 + $0x8] sm:$0xff] }
 0x15d   : > { %v990_v9 = vpop.f32.mrf.mxu1  ;;  %v918_v36 = vadd.f32 %v8326_v4, %v917_v8  ;;  %v7721_v8 = vld [vmem:[%s10498_s4 + $0x48] sm:$0xff] }
 0x15f   : > { %v991_v54 = vadd.f32 %v990_v9, %v918_v36  ;;  %v6042_v9 = vor.u32 %v7692_v3, %v6039_v52  ;;  %v7701_v36 = vld [vmem:[%s10541_s3 + $0x3c] sm:$0xf0] }
 0x161   : > { %v1024_v62 = vmax.f32 %v991_v54, 0.0 }
 0x164   : > { %v919_v10 = vpop.f32.mrf.mxu0 }
 0x165   : > { %v992_v11 = vpop.f32.mrf.mxu1  ;;  %v920_v32 = vadd.f32 %v8326_v4, %v919_v10  ;;  %v6066_v10 = vor.u32 %v7698_v5, %v6063_v48 }
 0x167   : > { %v993_v43 = vadd.f32 %v992_v11, %v920_v32  ;;  %v6155_v11 = vor.u32 %v7710_v6, %v6152_v39 }
 0x169   : > { %v1025_v60 = vmax.f32 %v993_v43, 0.0 }
 0x16b   : > { %v8468_v28 = vpack.c.bf16 %v1025_v60, %v1024_v62 }
 0x16c   : > { %v922_v15 = vpop.f32.mrf.mxu0  ;;  %1098 = vmatmul.bf16.gmra.mxu2 %v6046_v14  ;;  %v7694_v14 = vld [vmem:[%s10541_s3 + $0x14] sm:$0xf] }
 0x16d   : > { %v995_v16 = vpop.f32.mrf.mxu1  ;;  %v923_v30 = vadd.f32 %v8326_v4, %v922_v15  ;;  %v6047_v15 = vld [vmem:[%s10541_s3 + $0x18] sm:$0xf0] }
 0x16f   : > { %v996_v37 = vadd.f32 %v995_v16, %v923_v30  ;;  %v6050_v16 = vor.u32 %v7694_v14, %v6047_v15 }
 0x171   : > { %v1026_v55 = vmax.f32 %v996_v37, 0.0 }
 0x174   : > { %v924_v18 = vpop.f32.mrf.mxu0 }
 0x175   : > { %v997_v19 = vpop.f32.mrf.mxu1  ;;  %v925_v23 = vadd.f32 %v8326_v4, %v924_v18  ;;  %v7700_v18 = vld [vmem:[%s10541_s3 + $0x3c] sm:$0xf] }
 0x177   : > { %v998_v33 = vadd.f32 %v997_v19, %v925_v23  ;;  %v6071_v19 = vld [vmem:[%s10541_s3 + $0x40] sm:$0xf0]  ;;  %v1061_v23 = vunpack.c.h.b16 %v8443_v17  ;;  %v6061_v17 = vld [vmem:[%s10541_s3 + $0x28] sm:$0xf] }
 0x179   : > { %v1027_v44 = vmax.f32 %v998_v33, 0.0 }
 0x17b   : > { %v8461_v40 = vpack.c.bf16 %v1027_v44, %v1026_v55 }
 0x17c   : > { %v927_v24 = vpop.f32.mrf.mxu0  ;;  %1103 = vmatmul.bf16.gmra.mxu2 %v1066_v22  ;;  %v6074_v22 = vor.u32 %v7700_v18, %v6071_v19  ;;  %v7709_v19 = vld [vmem:[%s10498_s4 + $0x28] sm:$0xff] }
 0x17d   : > { %v1000_v25 = vpop.f32.mrf.mxu1  ;;  %v928_v26 = vadd.f32 %v8326_v4, %v927_v24  ;;  %v1021_v4 = vmax.f32 %v983_v63, 0.0  ;;  %v7702_v24 = vld [vmem:[%s10498_s4 + $0x10] sm:$0xff] }
 0x17f   : > { %v1001_v31 = vadd.f32 %v1000_v25, %v928_v26  ;;  %v8497_v27 = vpack.c.bf16 %v1021_v4, %v1020_v2  ;;  %v1067_v25 = vpack.c.b16 %v1061_v23, %v1061_v23  ;;  %v7699_v26 = vld [vmem:[%s10541_s3 + $0x2c] sm:$0xf0]  ;;  %v7706_v23 = vld [vmem:[%s10541_s3 + $0x64] sm:$0xf] }
 0x180   : > { %v6062_v30 = vor.u32 %v7699_v26, %v6061_v17 }
 0x181   : > { %v1028_v34 = vmax.f32 %v1001_v31, 0.0  ;;  %v6058_v31 = vld [vmem:[%s10541_s3 + $0x48] sm:$0x33] }
 0x182   : > { %v1158_v32 = vunpack.c.h.b16 %v6058_v31 }
 0x183   : > { %v1041_v38 = vpack.c.bf16 %v1028_v34, %v1028_v34  ;;  %v6069_v34 = vld [vmem:[%s10541_s3 + $0x38] sm:$0xf] }
 0x184   : > { %v929_v45 = vpop.f32.mrf.mxu0  ;;  %v1164_v33 = vpack.c.b16 %v1158_v32, %v1158_v32  ;;  %v6070_v37 = vor.u32 %v7701_v36, %v6069_v34 }
 0x185   : > { %v1002_v46 = vpop.f32.mrf.mxu1  ;;  %v8453_v49 = vsel %vm1081_vm0, %v1041_v38, 0  ;;  %v1157_v38 = vunpack.c.l.b16 %v6058_v31 }
 0x186   : > { %1111 = vmatpush.bf16.msra.mxu3 %v8453_v49  ;;  %1203 = vmatpush.bf16.msrb.mxu2 %v8453_v49 }
 0x187   : > { %1527 = vmatpush.bf16.msrb.mxu0 %v8453_v49  ;;  %v1163_v42 = vpack.c.b16 %v1157_v38, %v1157_v38 }
 0x18a   : > { %1112 = vmatpush.bf16.msra.mxu3 %v8461_v40  ;;  %1204 = vmatpush.bf16.msrb.mxu2 %v8461_v40 }
 0x18b   : > { %1528 = vmatpush.bf16.msrb.mxu0 %v8461_v40 }
 0x18e   : > { %1113 = vmatpush.bf16.msra.mxu3 %v8468_v28  ;;  %1205 = vmatpush.bf16.msrb.mxu2 %v8468_v28 }
 0x18f   : > { %1529 = vmatpush.bf16.msrb.mxu0 %v8468_v28 }
 0x192   : > { %1114 = vmatpush.bf16.msra.mxu3 %v8473_v57  ;;  %1206 = vmatpush.bf16.msrb.mxu2 %v8473_v57 }
 0x193   : > { %1530 = vmatpush.bf16.msrb.mxu0 %v8473_v57 }
 0x196   : > { %1115 = vmatpush.bf16.msra.mxu3 %v8497_v27  ;;  %1207 = vmatpush.bf16.msrb.mxu2 %v8497_v27 }
 0x197   : > { %1531 = vmatpush.bf16.msrb.mxu0 %v8497_v27 }
 0x199   : > { %6051 = vmatmul.msk.bf16.vlgmr.msra.gmra.mxu3 %vm1071_vm1, %v6042_v9  ;;  %6075 = vmatmul.msk.bf16.vlgmr.msrb.gmra.mxu2 %vm1071_vm1, %v6066_v10  ;;  %v7704_v10 = vld [vmem:[%s10541_s3 + $0x54] sm:$0xf] }
 0x19a   : > { %1177 = vmatpush.bf16.msrb.mxu3 %v8378_v35  ;;  %1303 = vmatpush.bf16.msra.mxu2 %v7697_v7 }
 0x19b   : > { %1724 = vmatpush.bf16.msra.mxu0 %v7721_v8 }
 0x19c   : > { %6164 = vmatmul.msk.bf16.vlgmr.msrb.gmra.mxu0 %vm1071_vm1, %v6155_v11  ;;  %v6113_v11 = vld [vmem:[%s10541_s3 + $0x58] sm:$0xf0] }
 0x19d   : > { %v6116_v15 = vor.u32 %v7704_v10, %v6113_v11  ;;  %v6191_v10 = vld [vmem:[%s10541_s3 + $0xa8] sm:$0xf0] }
 0x19e   : > { %1178 = vmatpush.bf16.msrb.mxu3 %v8384_v47  ;;  %1304 = vmatpush.bf16.msra.mxu2 %v7696_v12 }
 0x19f   : > { %1725 = vmatpush.bf16.msra.mxu0 %v7720_v13 }
 0x1a2   : > { %1385 = vmatpush.bf16.msrb.mxu2 %v8453_v49  ;;  %1179 = vmatpush.bf16.msrb.mxu3 %v8392_v56 }
 0x1a3   : > { %1927 = vmatpush.bf16.msrb.mxu0 %v8378_v35 }
 0x1a6   : > { %1386 = vmatpush.bf16.msrb.mxu2 %v8461_v40  ;;  %1180 = vmatpush.bf16.msrb.mxu3 %v8404_v53 }
 0x1a7   : > { %1928 = vmatpush.bf16.msrb.mxu0 %v8384_v47 }
 0x1a9   : > { %6052 = vmatmul.msk.bf16.gmra.mxu3 %vm1071_vm1, %v6050_v16  ;;  %6076 = vmatmul.msk.bf16.gmra.mxu2 %vm1071_vm1, %v6074_v22 }
 0x1aa   : > { %1387 = vmatpush.bf16.msrb.mxu2 %v8468_v28  ;;  %1181 = vmatpush.bf16.msrb.mxu3 %v8410_v0 }
 0x1ab   : > { %1929 = vmatpush.bf16.msrb.mxu0 %v8392_v56 }
 0x1ae   : > { %1388 = vmatpush.bf16.msrb.mxu2 %v8473_v57  ;;  %1182 = vmatpush.bf16.msrb.mxu3 %v8417_v51 }
 0x1af   : > { %1930 = vmatpush.bf16.msrb.mxu0 %v8404_v53 }
 0x1b2   : > { %1389 = vmatpush.bf16.msrb.mxu2 %v8497_v27  ;;  %1183 = vmatpush.bf16.msrb.mxu3 %v8422_v29 }
 0x1b3   : > { %1931 = vmatpush.bf16.msrb.mxu0 %v8410_v0 }
 0x1b6   : > { %1184 = vmatpush.bf16.msrb.mxu3 %v8334_v21 }
 0x1b7   : > { %1932 = vmatpush.bf16.msrb.mxu0 %v8417_v51 }
 0x1b9   : > { %6053 = vmatmul.msk.bf16.gmra.mxu3 %vm1071_vm1, %v1067_v25  ;;  %6077 = vmatmul.msk.bf16.gmra.mxu2 %vm1071_vm1, %v1164_v33  ;;  %v6108_v33 = vld [vmem:[%s10541_s3 + $0x70] sm:$0x33] }
 0x1ba   : > { %1259 = vmatpush.bf16.msra.mxu3 %v7703_v20  ;;  %v7708_v20 = vld [vmem:[%s10498_s4 + $0x20] sm:$0xff]  ;;  %v1340_v36 = vunpack.c.h.b16 %v6108_v33 }
 0x1bb   : > { %1933 = vmatpush.bf16.msrb.mxu0 %v8422_v29 }
 0x1be   : > { %1260 = vmatpush.bf16.msra.mxu3 %v7702_v24  ;;  %v6121_v24 = vld [vmem:[%s10541_s3 + $0x68] sm:$0xf0] }
 0x1bf   : > { %1934 = vmatpush.bf16.msrb.mxu0 %v8334_v21 }
 0x1c9   : > { %1185 = vmatmul.bf16.vlgmr.msrb.gmra.mxu3 %v6062_v30  ;;  %v6124_v30 = vor.u32 %v7706_v23, %v6121_v24 }
 0x1ca   : > { %1359 = vmatpush.bf16.msrb.mxu3 %v8378_v35 }
 0x1ce   : > { %1360 = vmatpush.bf16.msrb.mxu3 %v8384_v47 }
 0x1d2   : > { %1361 = vmatpush.bf16.msrb.mxu3 %v8392_v56 }
 0x1d6   : > { %1362 = vmatpush.bf16.msrb.mxu3 %v8404_v53 }
 0x1d9   : > { %1190 = vmatmul.bf16.gmra.mxu3 %v6070_v37 }
 0x1da   : > { %1363 = vmatpush.bf16.msrb.mxu3 %v8410_v0 }
 0x1de   : > { %1364 = vmatpush.bf16.msrb.mxu3 %v8417_v51 }
 0x1df   : > { %v1094_v43 = vpop.f32.mrf.mxu2 }
 0x1e2   : > { %1365 = vmatpush.bf16.msrb.mxu3 %v8422_v29 }
 0x1e6   : > { %1366 = vmatpush.bf16.msrb.mxu3 %v8334_v21 }
 0x1e7   : > { %v1096_v44 = vpop.f32.mrf.mxu2 }
 0x1e9   : > { %1195 = vmatmul.bf16.gmra.mxu3 %v1163_v42  ;;  %v1346_v42 = vpack.c.b16 %v1340_v36, %v1340_v36 }
 0x1ef   : > { %v1099_v45 = vpop.f32.mrf.mxu2 }
 0x1f7   : > { %v1101_v46 = vpop.f32.mrf.mxu2 }
 0x1ff   : > { %v1104_v50 = vpop.f32.mrf.mxu2 }
 0x207   : > { %v1106_v54 = vpop.f32.mrf.mxu2 }
 0x208   : > { %v6150_v54 = vld [vmem:[%s10541_s3 + $0x78] sm:$0xf] }
 0x21c   : > { %v1117_v55 = vpop.f32.mrf.mxu3  ;;  %v1209_v62 = vpop.f32.mrf.mxu2 }
 0x21d   : > { %v1118_v59 = vadd.f32 %v1117_v55, %v1094_v43  ;;  %v7712_v43 = vld [vmem:[%s10541_s3 + $0x8c] sm:$0xf]  ;;  %v7711_v55 = vld [vmem:[%s10541_s3 + $0x7c] sm:$0xf0] }
 0x224   : > { %v1119_v58 = vpop.f32.mrf.mxu3  ;;  %v1211_v1 = vpop.f32.mrf.mxu2 }
 0x225   : > { %v1120_v60 = vadd.f32 %v1119_v58, %v1096_v44  ;;  %v6160_v44 = vld [vmem:[%s10541_s3 + $0x90] sm:$0xf0] }
 0x227   : > { %v1131_v61 = vpack.c.bf16 %v1120_v60, %v1118_v59  ;;  %v6151_v59 = vor.u32 %v7711_v55, %v6150_v54  ;;  %v6147_v60 = vld [vmem:[%s10541_s3 + $0x98] sm:$0x33] }
 0x229   : > { %6101 = vmatmul.msk.bf16.vlgmr.msra.gmra.mxu2 %vm1243_vm2, %v1131_v61  ;;  %v1482_v61 = vunpack.c.h.b16 %v6147_v60 }
 0x22a   : > { %1501 = vmatpush.bf16.msra.mxu2 %v8378_v35 }
 0x22c   : > { %v1122_v63 = vpop.f32.mrf.mxu3  ;;  %v1214_v52 = vpop.f32.mrf.mxu2 }
 0x22d   : > { %v1123_v4 = vadd.f32 %v1122_v63, %v1099_v45  ;;  %v6163_v45 = vor.u32 %v7712_v43, %v6160_v44  ;;  %v6119_v63 = vld [vmem:[%s10541_s3 + $0x60] sm:$0xf] }
 0x22e   : > { %1502 = vmatpush.bf16.msra.mxu2 %v8384_v47 }
 0x22f   : > { %6165 = vmatmul.msk.bf16.gmra.mxu0 %vm1071_vm1, %v6163_v45 }
 0x232   : > { %1503 = vmatpush.bf16.msra.mxu2 %v8392_v56 }
 0x234   : > { %v1124_v41 = vpop.f32.mrf.mxu3  ;;  %v1216_v39 = vpop.f32.mrf.mxu2 }
 0x235   : > { %v1125_v2 = vadd.f32 %v1124_v41, %v1101_v46  ;;  %v6111_v46 = vld [vmem:[%s10541_s3 + $0x50] sm:$0xf]  ;;  %v6158_v41 = vld [vmem:[%s10541_s3 + $0x88] sm:$0xf] }
 0x236   : > { %1504 = vmatpush.bf16.msra.mxu2 %v8404_v53 }
 0x237   : > { %v1132_v3 = vpack.c.bf16 %v1125_v2, %v1123_v4  ;;  %v7713_v4 = vld [vmem:[%s10541_s3 + $0x8c] sm:$0xf0]  ;;  %v7727_v2 = vld [vmem:[%s10498_s4 + $0x58] sm:$0xff] }
 0x239   : > { %6102 = vmatmul.msk.bf16.gmra.mxu2 %vm1243_vm2, %v1132_v3 }
 0x23a   : > { %1505 = vmatpush.bf16.msra.mxu2 %v8410_v0 }
 0x23c   : > { %v1127_v5 = vpop.f32.mrf.mxu3  ;;  %v1219_v9 = vpop.f32.mrf.mxu2 }
 0x23d   : > { %v1128_v48 = vadd.f32 %v1127_v5, %v1104_v50  ;;  %v7705_v50 = vld [vmem:[%s10541_s3 + $0x54] sm:$0xf0]  ;;  %v7726_v5 = vld [vmem:[%s10498_s4 + $0x50] sm:$0xff] }
 0x23e   : > { %1506 = vmatpush.bf16.msra.mxu2 %v8417_v51  ;;  %v6112_v58 = vor.u32 %v7705_v50, %v6111_v46 }
 0x23f   : > { %v1133_v7 = vpack.c.bf16 %v1128_v48, %v1128_v48  ;;  %v1339_v48 = vunpack.c.l.b16 %v6108_v33 }
 0x242   : > { %1507 = vmatpush.bf16.msra.mxu2 %v8422_v29 }
 0x244   : > { %v1129_v6 = vpop.f32.mrf.mxu3  ;;  %v1221_v16 = vpop.f32.mrf.mxu2 }
 0x245   : > { %v1481_v6 = vunpack.c.l.b16 %v6147_v60 }
 0x246   : > { %1508 = vmatpush.bf16.msra.mxu2 %v8334_v21 }
 0x249   : > { %6103 = vmatmul.msk.bf16.gmra.mxu2 %vm1243_vm2, %v1133_v7  ;;  %v1487_v7 = vpack.c.b16 %v1481_v6, %v1481_v6 }
 0x24c   : > { %v1186_v8 = vpop.f32.mrf.mxu3 }
 0x24d   : > { %v1210_v13 = vadd.f32 %v1209_v62, %v1186_v8  ;;  %v1488_v62 = vpack.c.b16 %v1482_v61, %v1482_v61 }
 0x24f   : > { %6166 = vmatmul.msk.bf16.gmra.mxu0 %vm1071_vm1, %v1488_v62 }
 0x254   : > { %v1188_v12 = vpop.f32.mrf.mxu3 }
 0x255   : > { %v1212_v14 = vadd.f32 %v1211_v1, %v1188_v12  ;;  %v7707_v1 = vld [vmem:[%s10541_s3 + $0x64] sm:$0xf0] }
 0x256   : > { %v6120_v3 = vor.u32 %v7707_v1, %v6119_v63 }
 0x257   : > { %v1223_v18 = vpack.c.bf16 %v1212_v14, %v1210_v13 }
 0x259   : > { %6090 = vmatmul.msk.bf16.vlgmr.msra.gmra.mxu3 %vm1243_vm2, %v1223_v18  ;;  %6125 = vmatmul.msk.bf16.vlgmr.msrb.gmra.mxu2 %vm1071_vm1, %v6116_v15 }
 0x25a   : > { %1669 = vmatpush.bf16.msrb.mxu2 %v8453_v49  ;;  %1440 = vmatpush.bf16.msra.mxu3 %v7709_v19 }
 0x25c   : > { %v1191_v22 = vpop.f32.mrf.mxu3 }
 0x25d   : > { %v1215_v17 = vadd.f32 %v1214_v52, %v1191_v22  ;;  %v6159_v52 = vor.u32 %v7713_v4, %v6158_v41 }
 0x25e   : > { %1670 = vmatpush.bf16.msrb.mxu2 %v8461_v40  ;;  %1441 = vmatpush.bf16.msra.mxu3 %v7708_v20 }
 0x262   : > { %1671 = vmatpush.bf16.msrb.mxu2 %v8468_v28 }
 0x264   : > { %v1193_v25 = vpop.f32.mrf.mxu3 }
 0x265   : > { %v1217_v26 = vadd.f32 %v1216_v39, %v1193_v25  ;;  %v1345_v39 = vpack.c.b16 %v1339_v48, %v1339_v48 }
 0x266   : > { %1672 = vmatpush.bf16.msrb.mxu2 %v8473_v57 }
 0x267   : > { %v1224_v31 = vpack.c.bf16 %v1217_v26, %v1215_v17  ;;  %v1533_v26 = vpop.f32.mrf.mxu0 }
 0x269   : > { %6091 = vmatmul.msk.bf16.gmra.mxu3 %vm1243_vm2, %v1224_v31  ;;  %6126 = vmatmul.msk.bf16.gmra.mxu2 %vm1071_vm1, %v6124_v30 }
 0x26a   : > { %1673 = vmatpush.bf16.msrb.mxu2 %v8497_v27 }
 0x26c   : > { %v1196_v32 = vpop.f32.mrf.mxu3 }
 0x26d   : > { %v1220_v34 = vadd.f32 %v1219_v9, %v1196_v32  ;;  %v7716_v9 = vld [vmem:[%s10541_s3 + $0xa4] sm:$0xf] }
 0x26e   : > { %v6194_v12 = vor.u32 %v7716_v9, %v6191_v10 }
 0x26f   : > { %v1225_v38 = vpack.c.bf16 %v1220_v34, %v1220_v34  ;;  %v1535_v32 = vpop.f32.mrf.mxu0 }
 0x274   : > { %v1198_v37 = vpop.f32.mrf.mxu3 }
 0x279   : > { %6092 = vmatmul.msk.bf16.gmra.mxu3 %vm1243_vm2, %v1225_v38  ;;  %6127 = vmatmul.msk.bf16.gmra.mxu2 %vm1071_vm1, %v1346_v42 }
 0x289   : > { %1367 = vmatmul.bf16.vlgmr.msrb.gmra.mxu3 %v6112_v58  ;;  %1509 = vmatmul.bf16.vlgmr.msra.gmra.mxu2 %v6151_v59 }
 0x28a   : > { %1643 = vmatpush.bf16.msrb.mxu3 %v8378_v35  ;;  %1866 = vmatpush.bf16.msra.mxu2 %v7727_v2 }
 0x28e   : > { %1644 = vmatpush.bf16.msrb.mxu3 %v8384_v47  ;;  %1867 = vmatpush.bf16.msra.mxu2 %v7726_v5 }
 0x292   : > { %1645 = vmatpush.bf16.msrb.mxu3 %v8392_v56 }
 0x296   : > { %1646 = vmatpush.bf16.msrb.mxu3 %v8404_v53 }
 0x299   : > { %1372 = vmatmul.bf16.gmra.mxu3 %v6120_v3  ;;  %1514 = vmatmul.bf16.gmra.mxu2 %v6159_v52 }
 0x29a   : > { %1647 = vmatpush.bf16.msrb.mxu3 %v8410_v0 }
 0x29e   : > { %1648 = vmatpush.bf16.msrb.mxu3 %v8417_v51 }
 0x2a2   : > { %1649 = vmatpush.bf16.msrb.mxu3 %v8422_v29 }
 0x2a6   : > { %1650 = vmatpush.bf16.msrb.mxu3 %v8334_v21 }
 0x2a9   : > { %1377 = vmatmul.bf16.gmra.mxu3 %v1345_v39  ;;  %1519 = vmatmul.bf16.gmra.mxu2 %v1487_v7  ;;  %v7718_v7 = vld [vmem:[%s10541_s3 + $0xb4] sm:$0xf] }
 0x2ac   : > { %v1306_v8 = vpop.f32.mrf.mxu2  ;;  %v1538_v37 = vpop.f32.mrf.mxu0 }
 0x2b4   : > { %v8682_v11 = vpop.f32.mrf.mxu2  ;;  %v1540_v45 = vpop.f32.mrf.mxu0 }
 0x2b9   : > { %6203 = vmatmul.msk.bf16.vlgmr.msrb.gmra.mxu2 %vm1071_vm1, %v6194_v12 }
 0x2ba   : > { %2069 = vmatpush.bf16.msrb.mxu2 %v8378_v35 }
 0x2bc   : > { %v1311_v13 = vpop.f32.mrf.mxu2 }
 0x2be   : > { %2070 = vmatpush.bf16.msrb.mxu2 %v8384_v47 }
 0x2c2   : > { %2071 = vmatpush.bf16.msrb.mxu2 %v8392_v56 }
 0x2c4   : > { %v8688_v14 = vpop.f32.mrf.mxu2 }
 0x2c6   : > { %2072 = vmatpush.bf16.msrb.mxu2 %v8404_v53 }
 0x2ca   : > { %2073 = vmatpush.bf16.msrb.mxu2 %v8410_v0 }
 0x2cc   : > { %v1316_v15 = vpop.f32.mrf.mxu2  ;;  %v1543_v60 = vpop.f32.mrf.mxu0 }
 0x2ce   : > { %2074 = vmatpush.bf16.msrb.mxu2 %v8417_v51 }
 0x2d2   : > { %2075 = vmatpush.bf16.msrb.mxu2 %v8422_v29 }
 0x2d4   : > { %v1318_v16 = vpop.f32.mrf.mxu2  ;;  %v1545_v41 = vpop.f32.mrf.mxu0 }
 0x2d5   : > { %v7722_v41 = vld [vmem:[%s10541_s3 + $0xcc] sm:$0xf] }
 0x2d6   : > { %2076 = vmatpush.bf16.msrb.mxu2 %v8334_v21 }
 0x2dc   : > { %v1262_v18 = vpop.f32.mrf.mxu3  ;;  %v1391_v19 = vpop.f32.mrf.mxu2 }
 0x2dd   : > { %v8695_v20 = vadd.f32 %v1306_v8, %v1262_v18  ;;  %v6199_v8 = vld [vmem:[%s10541_s3 + $0xb8] sm:$0xf0] }
 0x2de   : > { %v6202_v9 = vor.u32 %v7718_v7, %v6199_v8 }
 0x2e0   : > { %6204 = vmatmul.msk.bf16.gmra.mxu2 %vm1071_vm1, %v6202_v9 }
 0x2e4   : > { %v8697_v22 = vpop.f32.mrf.mxu3  ;;  %v1393_v23 = vpop.f32.mrf.mxu2 }
 0x2ec   : > { %v1267_v24 = vpop.f32.mrf.mxu3  ;;  %v1396_v25 = vpop.f32.mrf.mxu2 }
 0x2ed   : > { %v8699_v17 = vadd.f32 %v1311_v13, %v1267_v24  ;;  %v6186_v24 = vld [vmem:[%s10541_s3 + $0xc0] sm:$0x33] }
 0x2f4   : > { %v8701_v30 = vpop.f32.mrf.mxu3  ;;  %v1398_v31 = vpop.f32.mrf.mxu2 }
 0x2fc   : > { %v1272_v33 = vpop.f32.mrf.mxu3  ;;  %v1401_v34 = vpop.f32.mrf.mxu2 }
 0x2fd   : > { %v8703_v36 = vadd.f32 %v1316_v15, %v1272_v33  ;;  %v6228_v33 = vld [vmem:[%s10541_s3 + $0xc8] sm:$0xf] }
 0x304   : > { %v1274_v38 = vpop.f32.mrf.mxu3  ;;  %v1403_v42 = vpop.f32.mrf.mxu2 }
 0x305   : > { %v7733_v42 = vld [vmem:[%s10498_s4 + $0x68] sm:$0xff] }
 0x30c   : > { %v1368_v43 = vpop.f32.mrf.mxu3  ;;  %v1510_v44 = vpop.f32.mrf.mxu2 }
 0x30d   : > { %v1534_v46 = vadd.f32 %v1533_v26, %v1510_v44  ;;  %v1392_v55 = vadd.f32 %v1391_v19, %v1368_v43  ;;  %v7739_v43 = vld [vmem:[%s10498_s4 + $0x78] sm:$0xff]  ;;  %v7732_v44 = vld [vmem:[%s10498_s4 + $0x60] sm:$0xff] }
 0x314   : > { %v1370_v50 = vpop.f32.mrf.mxu3  ;;  %v1512_v54 = vpop.f32.mrf.mxu2 }
 0x315   : > { %v1394_v58 = vadd.f32 %v1393_v23, %v1370_v50  ;;  %v1536_v59 = vadd.f32 %v1535_v32, %v1512_v54  ;;  %v7717_v32 = vld [vmem:[%s10541_s3 + $0xa4] sm:$0xf0]  ;;  %v7719_v50 = vld [vmem:[%s10541_s3 + $0xb4] sm:$0xf0] }
 0x316   : > { %v6236_v54 = vld [vmem:[%s10541_s3 + $0xd8] sm:$0xf] }
 0x317   : > { %v1405_v61 = vpack.c.bf16 %v1394_v58, %v1392_v55  ;;  %v1547_v62 = vpack.c.bf16 %v1536_v59, %v1534_v46  ;;  %v6197_v46 = vld [vmem:[%s10541_s3 + $0xb0] sm:$0xf]  ;;  %v7725_v55 = vld [vmem:[%s10541_s3 + $0xdc] sm:$0xf0] }
 0x318   : > { %v6198_v58 = vor.u32 %v7719_v50, %v6197_v46  ;;  %v6237_v59 = vor.u32 %v7725_v55, %v6236_v54 }
 0x319   : > { %6140 = vmatmul.msk.bf16.vlgmr.msra.gmra.mxu3 %vm1243_vm2, %v1405_v61  ;;  %6179 = vmatmul.msk.bf16.vlgmr.msrb.gmra.mxu1 %vm1243_vm2, %v1547_v62  ;;  %v1623_v61 = vunpack.c.l.b16 %v6186_v24 }
 0x31a   : > { %1811 = vmatpush.bf16.msra.mxu3 %v8453_v49  ;;  %1953 = vmatpush.bf16.msrb.mxu1 %v8453_v49 }
 0x31c   : > { %v1373_v63 = vpop.f32.mrf.mxu3  ;;  %v1515_v1 = vpop.f32.mrf.mxu2 }
 0x31d   : > { %v1539_v4 = vadd.f32 %v1538_v37, %v1515_v1  ;;  %v1397_v52 = vadd.f32 %v1396_v25, %v1373_v63  ;;  %v1624_v25 = vunpack.c.h.b16 %v6186_v24  ;;  %v1629_v63 = vpack.c.b16 %v1623_v61, %v1623_v61 }
 0x31e   : > { %1812 = vmatpush.bf16.msra.mxu3 %v8461_v40  ;;  %1954 = vmatpush.bf16.msrb.mxu1 %v8461_v40 }
 0x31f   : > { %v1630_v26 = vpack.c.b16 %v1624_v25, %v1624_v25 }
 0x321   : > { %6205 = vmatmul.msk.bf16.gmra.mxu2 %vm1071_vm1, %v1630_v26 }
 0x322   : > { %1813 = vmatpush.bf16.msra.mxu3 %v8468_v28  ;;  %1955 = vmatpush.bf16.msrb.mxu1 %v8468_v28 }
 0x324   : > { %v1375_v2 = vpop.f32.mrf.mxu3  ;;  %v1517_v3 = vpop.f32.mrf.mxu2 }
 0x325   : > { %v1399_v5 = vadd.f32 %v1398_v31, %v1375_v2  ;;  %v1541_v48 = vadd.f32 %v1540_v45, %v1517_v3  ;;  %v6189_v31 = vld [vmem:[%s10541_s3 + $0xa0] sm:$0xf]  ;;  %v7738_v45 = vld [vmem:[%s10498_s4 + $0x70] sm:$0xff]  ;;  %v6269_v3 = vld [vmem:[%s10541_s3 + $0xf8] sm:$0xf0] }
 0x326   : > { %1814 = vmatpush.bf16.msra.mxu3 %v8473_v57  ;;  %1956 = vmatpush.bf16.msrb.mxu1 %v8473_v57  ;;  %v6190_v37 = vor.u32 %v7717_v32, %v6189_v31  ;;  %v7728_v2 = vld [vmem:[%s10541_s3 + $0xf4] sm:$0xf] }
 0x327   : > { %v1406_v6 = vpack.c.bf16 %v1399_v5, %v1397_v52  ;;  %v1548_v39 = vpack.c.bf16 %v1541_v48, %v1539_v4  ;;  %v6230_v4 = vld [vmem:[%s10541_s3 + $0xd0] sm:$0xf0]  ;;  %v6272_v5 = vor.u32 %v7728_v2, %v6269_v3  ;;  %v7724_v48 = vld [vmem:[%s10541_s3 + $0xdc] sm:$0xf]  ;;  %v7730_v2 = vld [vmem:[%s10541_s3 + $0x104] sm:$0xf] }
 0x328   : > { %v6233_v52 = vor.u32 %v7722_v41, %v6230_v4  ;;  %v6277_v3 = vld [vmem:[%s10541_s3 + $0x108] sm:$0xf0] }
 0x329   : > { %6141 = vmatmul.msk.bf16.gmra.mxu3 %vm1243_vm2, %v1406_v6  ;;  %6180 = vmatmul.msk.bf16.gmra.mxu1 %vm1243_vm2, %v1548_v39  ;;  %v6238_v6 = vld [vmem:[%s10541_s3 + $0xe0] sm:$0xf0] }
 0x32a   : > { %1815 = vmatpush.bf16.msra.mxu3 %v8497_v27  ;;  %1957 = vmatpush.bf16.msrb.mxu1 %v8497_v27  ;;  %v6241_v39 = vor.u32 %v7724_v48, %v6238_v6 }
 0x32c   : > { %v1378_v10 = vpop.f32.mrf.mxu3  ;;  %v1520_v12 = vpop.f32.mrf.mxu2 }
 0x32d   : > { %v1544_v13 = vadd.f32 %v1543_v60, %v1520_v12  ;;  %v1402_v15 = vadd.f32 %v1401_v34, %v1378_v10  ;;  %v7723_v34 = vld [vmem:[%s10541_s3 + $0xcc] sm:$0xf0]  ;;  %v6225_v60 = vld [vmem:[%s10541_s3 + $0xe8] sm:$0x33] }
 0x32e   : > { %v6229_v38 = vor.u32 %v7723_v34, %v6228_v33  ;;  %v1765_v62 = vunpack.c.l.b16 %v6225_v60  ;;  %v1766_v7 = vunpack.c.h.b16 %v6225_v60 }
 0x32f   : > { %v1549_v19 = vpack.c.bf16 %v1544_v13, %v1544_v13  ;;  %v1407_v23 = vpack.c.bf16 %v1402_v15, %v1402_v15 }
 0x330   : > { %v1771_v1 = vpack.c.b16 %v1765_v62, %v1765_v62  ;;  %v1772_v8 = vpack.c.b16 %v1766_v7, %v1766_v7 }
 0x334   : > { %v1380_v16 = vpop.f32.mrf.mxu3  ;;  %v1522_v18 = vpop.f32.mrf.mxu2 }
 0x339   : > { %6142 = vmatmul.msk.bf16.gmra.mxu3 %vm1243_vm2, %v1407_v23  ;;  %6181 = vmatmul.msk.bf16.gmra.mxu1 %vm1243_vm2, %v1549_v19 }
 0x33c   : > { %v1675_v19 = vpop.f32.mrf.mxu2 }
 0x344   : > { %v1677_v31 = vpop.f32.mrf.mxu2 }
 0x349   : > { %1651 = vmatmul.bf16.vlgmr.msrb.gmra.mxu3 %v6190_v37  ;;  %1793 = vmatmul.bf16.vlgmr.msra.gmra.mxu1 %v6229_v38 }
 0x34a   : > { %2008 = vmatpush.bf16.msrb.mxu3 %v7733_v42  ;;  %2150 = vmatpush.bf16.msra.mxu1 %v7739_v43 }
 0x34e   : > { %2009 = vmatpush.bf16.msrb.mxu3 %v7732_v44  ;;  %2151 = vmatpush.bf16.msra.mxu1 %v7738_v45 }
 0x359   : > { %1656 = vmatmul.bf16.gmra.mxu3 %v6198_v58  ;;  %1798 = vmatmul.bf16.gmra.mxu1 %v6237_v59 }
 0x369   : > { %1661 = vmatmul.bf16.gmra.mxu3 %v1629_v63  ;;  %1803 = vmatmul.bf16.gmra.mxu1 %v1771_v1 }
 0x379   : > { %6242 = vmatmul.msk.bf16.vlgmr.msra.gmra.mxu3 %vm1071_vm1, %v6233_v52  ;;  %6281 = vmatmul.msk.bf16.vlgmr.msrb.gmra.mxu1 %vm1071_vm1, %v6272_v5  ;;  %v6280_v52 = vor.u32 %v7730_v2, %v6277_v3 }
 0x37a   : > { %2211 = vmatpush.bf16.msra.mxu3 %v8378_v35  ;;  %2353 = vmatpush.bf16.msrb.mxu1 %v8378_v35 }
 0x37e   : > { %2212 = vmatpush.bf16.msra.mxu3 %v8384_v47  ;;  %2354 = vmatpush.bf16.msrb.mxu1 %v8384_v47 }
 0x382   : > { %2213 = vmatpush.bf16.msra.mxu3 %v8392_v56  ;;  %2355 = vmatpush.bf16.msrb.mxu1 %v8392_v56 }
 0x386   : > { %2214 = vmatpush.bf16.msra.mxu3 %v8404_v53  ;;  %2356 = vmatpush.bf16.msrb.mxu1 %v8404_v53 }
 0x389   : > { %6243 = vmatmul.msk.bf16.gmra.mxu3 %vm1071_vm1, %v6241_v39  ;;  %6282 = vmatmul.msk.bf16.gmra.mxu1 %vm1071_vm1, %v6280_v52  ;;  %v7751_v52 = vld [vmem:[%s10498_s4 + $0x98] sm:$0xff] }
 0x38a   : > { %2215 = vmatpush.bf16.msra.mxu3 %v8410_v0  ;;  %2357 = vmatpush.bf16.msrb.mxu1 %v8410_v0 }
 0x38e   : > { %2216 = vmatpush.bf16.msra.mxu3 %v8417_v51  ;;  %2358 = vmatpush.bf16.msrb.mxu1 %v8417_v51 }
 0x392   : > { %2217 = vmatpush.bf16.msra.mxu3 %v8422_v29  ;;  %2359 = vmatpush.bf16.msrb.mxu1 %v8422_v29 }
 0x396   : > { %2218 = vmatpush.bf16.msra.mxu3 %v8334_v21  ;;  %2360 = vmatpush.bf16.msrb.mxu1 %v8334_v21  ;;  %v1585_v9 = vpop.f32.mrf.mxu1 }
 0x399   : > { %6244 = vmatmul.msk.bf16.gmra.mxu3 %vm1071_vm1, %v1772_v8 }
 0x39c   : > { %v1443_v10 = vpop.f32.mrf.mxu3 }
 0x39d   : > { %v1457_v12 = vadd.f32 %v1443_v10, %v8695_v20  ;;  %v1680_v20 = vpop.f32.mrf.mxu2  ;;  %v7729_v10 = vld [vmem:[%s10541_s3 + $0xf4] sm:$0xf0] }
 0x39e   : > { %v8810_v13 = vpop.f32.mrf.mxu1 }
 0x39f   : > { %v8812_v15 = vadd.f32 %v1585_v9, %v1457_v12  ;;  %v6267_v9 = vld [vmem:[%s10541_s3 + $0xf0] sm:$0xf] }
 0x3a4   : > { %v8814_v16 = vpop.f32.mrf.mxu3 }
 0x3a5   : > { %v1682_v44 = vpop.f32.mrf.mxu2 }
 0x3a6   : > { %v1590_v18 = vpop.f32.mrf.mxu1 }
 0x3ac   : > { %v1448_v23 = vpop.f32.mrf.mxu3 }
 0x3ad   : > { %v1459_v24 = vadd.f32 %v1448_v23, %v8699_v17  ;;  %v1685_v46 = vpop.f32.mrf.mxu2 }
 0x3ae   : > { %v8817_v25 = vpop.f32.mrf.mxu1 }
 0x3af   : > { %v8819_v26 = vadd.f32 %v1590_v18, %v1459_v24  ;;  %v6268_v24 = vor.u32 %v7729_v10, %v6267_v9  ;;  %v7750_v9 = vld [vmem:[%s10498_s4 + $0x90] sm:$0xff]  ;;  %v6303_v10 = vld [vmem:[%s10541_s3 + $0x138] sm:$0x33] }
 0x3b4   : > { %v8821_v32 = vpop.f32.mrf.mxu3 }
 0x3b5   : > { %v1687_v50 = vpop.f32.mrf.mxu2 }
 0x3b6   : > { %v1595_v33 = vpop.f32.mrf.mxu1 }
 0x3bc   : > { %v1453_v34 = vpop.f32.mrf.mxu3 }
 0x3bd   : > { %v1461_v37 = vadd.f32 %v1453_v34, %v8703_v36 }
 0x3be   : > { %v1597_v38 = vpop.f32.mrf.mxu1 }
 0x3bf   : > { %v8824_v42 = vadd.f32 %v1595_v33, %v1461_v37  ;;  %v7745_v37 = vld [vmem:[%s10498_s4 + $0x88] sm:$0xff]  ;;  %v7744_v38 = vld [vmem:[%s10498_s4 + $0x80] sm:$0xff] }
 0x3c4   : > { %v1455_v43 = vpop.f32.mrf.mxu3 }
 0x3c6   : > { %v1794_v58 = vpop.f32.mrf.mxu1 }
 0x3cc   : > { %v1652_v45 = vpop.f32.mrf.mxu3 }
 0x3cd   : > { %v1676_v54 = vadd.f32 %v1675_v19, %v1652_v45  ;;  %v7731_v45 = vld [vmem:[%s10541_s3 + $0x104] sm:$0xf0] }
 0x3ce   : > { %v1796_v36 = vpop.f32.mrf.mxu1 }
 0x3d4   : > { %v1654_v17 = vpop.f32.mrf.mxu3 }
 0x3d5   : > { %v1678_v55 = vadd.f32 %v1677_v31, %v1654_v17  ;;  %v6264_v31 = vld [vmem:[%s10541_s3 + $0x110] sm:$0x33] }
 0x3d6   : > { %v1799_v41 = vpop.f32.mrf.mxu1  ;;  %v1908_v33 = vunpack.c.h.b16 %v6264_v31 }
 0x3d7   : > { %v1689_v59 = vpack.c.bf16 %v1678_v55, %v1676_v54 }
 0x3d8   : > { %v1914_v34 = vpack.c.b16 %v1908_v33, %v1908_v33 }
 0x3d9   : > { %6218 = vmatmul.msk.bf16.vlgmr.msra.gmra.mxu0 %vm1243_vm2, %v1689_v59 }
 0x3da   : > { %2095 = vmatpush.bf16.msra.mxu0 %v8453_v49  ;;  %6283 = vmatmul.msk.bf16.gmra.mxu1 %vm1071_vm1, %v1914_v34  ;;  %v7740_v34 = vld [vmem:[%s10541_s3 + $0x144] sm:$0xf] }
 0x3dc   : > { %v1657_v60 = vpop.f32.mrf.mxu3 }
 0x3dd   : > { %v1681_v62 = vadd.f32 %v1680_v20, %v1657_v60  ;;  %v1907_v60 = vunpack.c.l.b16 %v6264_v31 }
 0x3de   : > { %2096 = vmatpush.bf16.msra.mxu0 %v8461_v40  ;;  %v1801_v5 = vpop.f32.mrf.mxu1 }
 0x3e2   : > { %2097 = vmatpush.bf16.msra.mxu0 %v8468_v28 }
 0x3e4   : > { %v1659_v61 = vpop.f32.mrf.mxu3 }
 0x3e5   : > { %v1683_v63 = vadd.f32 %v1682_v44, %v1659_v61  ;;  %v6275_v44 = vld [vmem:[%s10541_s3 + $0x100] sm:$0xf] }
 0x3e6   : > { %2098 = vmatpush.bf16.msra.mxu0 %v8473_v57  ;;  %v1804_v7 = vpop.f32.mrf.mxu1  ;;  %v6276_v54 = vor.u32 %v7731_v45, %v6275_v44 }
 0x3e7   : > { %v1690_v1 = vpack.c.bf16 %v1683_v63, %v1681_v62  ;;  %v1913_v62 = vpack.c.b16 %v1907_v60, %v1907_v60  ;;  %v6306_v63 = vld [vmem:[%s10541_s3 + $0x118] sm:$0xf] }
 0x3e9   : > { %6219 = vmatmul.msk.bf16.gmra.mxu0 %vm1243_vm2, %v1690_v1  ;;  %v7735_v1 = vld [vmem:[%s10541_s3 + $0x11c] sm:$0xf0] }
 0x3ea   : > { %2099 = vmatpush.bf16.msra.mxu0 %v8497_v27  ;;  %v6307_v2 = vor.u32 %v7735_v1, %v6306_v63 }
 0x3ec   : > { %v1662_v4 = vpop.f32.mrf.mxu3 }
 0x3ed   : > { %v1686_v48 = vadd.f32 %v1685_v46, %v1662_v4  ;;  %v6308_v4 = vld [vmem:[%s10541_s3 + $0x120] sm:$0xf0] }
 0x3ee   : > { %v1806_v12 = vpop.f32.mrf.mxu1 }
 0x3ef   : > { %v1691_v39 = vpack.c.bf16 %v1686_v48, %v1686_v48  ;;  %v7737_v48 = vld [vmem:[%s10541_s3 + $0x12c] sm:$0xf0]  ;;  %v2049_v12 = vunpack.c.l.b16 %v6303_v10 }
 0x3f4   : > { %v1664_v6 = vpop.f32.mrf.mxu3 }
 0x3f5   : > { %v7736_v6 = vld [vmem:[%s10541_s3 + $0x12c] sm:$0xf] }
 0x3f9   : > { %6220 = vmatmul.msk.bf16.gmra.mxu0 %vm1243_vm2, %v1691_v39  ;;  %v6316_v39 = vld [vmem:[%s10541_s3 + $0x130] sm:$0xf0] }
 0x3fc   : > { %v1817_v8 = vpop.f32.mrf.mxu3 }
 0x3fd   : > { %v1818_v19 = vadd.f32 %v1817_v8, %v1794_v58  ;;  %v6319_v8 = vor.u32 %v7736_v6, %v6316_v39 }
 0x404   : > { %v1819_v18 = vpop.f32.mrf.mxu3 }
 0x405   : > { %v1820_v23 = vadd.f32 %v1819_v18, %v1796_v36  ;;  %v2050_v18 = vunpack.c.h.b16 %v6303_v10 }
 0x407   : > { %v1831_v20 = vpack.c.bf16 %v1820_v23, %v1818_v19  ;;  %v2055_v19 = vpack.c.b16 %v2049_v12, %v2049_v12  ;;  %v2056_v23 = vpack.c.b16 %v2050_v18, %v2050_v18 }
 0x409   : > { %6257 = vmatmul.msk.bf16.vlgmr.msra.gmra.mxu2 %vm1243_vm2, %v1831_v20  ;;  %1935 = vmatmul.bf16.vlgmr.msrb.gmra.mxu0 %v6268_v24  ;;  %v1959_v20 = vpop.f32.mrf.mxu1 }
 0x40a   : > { %2237 = vmatpush.bf16.msra.mxu2 %v8453_v49  ;;  %2292 = vmatpush.bf16.msrb.mxu0 %v7745_v37  ;;  %v6347_v37 = vld [vmem:[%s10541_s3 + $0x148] sm:$0xf0] }
 0x40c   : > { %v1822_v43 = vpop.f32.mrf.mxu3 }
 0x40d   : > { %v1823_v17 = vadd.f32 %v1822_v43, %v1799_v41  ;;  %v7734_v41 = vld [vmem:[%s10541_s3 + $0x11c] sm:$0xf] }
 0x40e   : > { %2238 = vmatpush.bf16.msra.mxu2 %v8461_v40  ;;  %2293 = vmatpush.bf16.msrb.mxu0 %v7744_v38  ;;  %v6311_v3 = vor.u32 %v7734_v41, %v6308_v4  ;;  %v6350_v38 = vor.u32 %v7740_v34, %v6347_v37  ;;  %v6345_v34 = vld [vmem:[%s10541_s3 + $0x140] sm:$0xf]  ;;  %v7741_v37 = vld [vmem:[%s10541_s3 + $0x144] sm:$0xf0] }
 0x412   : > { %2239 = vmatpush.bf16.msra.mxu2 %v8468_v28 }
 0x414   : > { %v1824_v46 = vpop.f32.mrf.mxu3 }
 0x415   : > { %v1825_v50 = vadd.f32 %v1824_v46, %v1801_v5  ;;  %v6314_v5 = vld [vmem:[%s10541_s3 + $0x128] sm:$0xf] }
 0x416   : > { %2240 = vmatpush.bf16.msra.mxu2 %v8473_v57 }
 0x417   : > { %v1832_v55 = vpack.c.bf16 %v1825_v50, %v1823_v17 }
 0x419   : > { %6258 = vmatmul.msk.bf16.gmra.mxu2 %vm1243_vm2, %v1832_v55  ;;  %1940 = vmatmul.bf16.gmra.mxu0 %v6276_v54 }
 0x41a   : > { %2241 = vmatpush.bf16.msra.mxu2 %v8497_v27 }
 0x41c   : > { %v1827_v58 = vpop.f32.mrf.mxu3 }
 0x41d   : > { %v1828_v59 = vadd.f32 %v1827_v58, %v1804_v7  ;;  %v6315_v7 = vor.u32 %v7737_v48, %v6314_v5 }
 0x41f   : > { %v1833_v61 = vpack.c.bf16 %v1828_v59, %v1828_v59 }
 0x424   : > { %v1829_v36 = vpop.f32.mrf.mxu3 }
 0x429   : > { %6259 = vmatmul.msk.bf16.gmra.mxu2 %vm1243_vm2, %v1833_v61  ;;  %1945 = vmatmul.bf16.gmra.mxu0 %v1913_v62 }
 0x439   : > { %2077 = vmatmul.bf16.vlgmr.msrb.gmra.mxu2 %v6307_v2  ;;  %6320 = vmatmul.msk.bf16.vlgmr.msra.gmra.mxu0 %vm1071_vm1, %v6311_v3 }
 0x43a   : > { %2495 = vmatpush.bf16.msra.mxu0 %v8378_v35  ;;  %2434 = vmatpush.bf16.msrb.mxu2 %v7751_v52 }
 0x43e   : > { %2496 = vmatpush.bf16.msra.mxu0 %v8384_v47  ;;  %2435 = vmatpush.bf16.msrb.mxu2 %v7750_v9 }
 0x442   : > { %2497 = vmatpush.bf16.msra.mxu0 %v8392_v56 }
 0x446   : > { %2498 = vmatpush.bf16.msra.mxu0 %v8404_v53 }
 0x449   : > { %2082 = vmatmul.bf16.gmra.mxu2 %v6315_v7  ;;  %6321 = vmatmul.msk.bf16.gmra.mxu0 %vm1071_vm1, %v6319_v8  ;;  %v7742_v7 = vld [vmem:[%s10541_s3 + $0x154] sm:$0xf]  ;;  %v6355_v8 = vld [vmem:[%s10541_s3 + $0x158] sm:$0xf0] }
 0x44a   : > { %2499 = vmatpush.bf16.msra.mxu0 %v8410_v0  ;;  %v6358_v9 = vor.u32 %v7742_v7, %v6355_v8 }
 0x44e   : > { %2500 = vmatpush.bf16.msra.mxu0 %v8417_v51 }
 0x452   : > { %2501 = vmatpush.bf16.msra.mxu0 %v8422_v29 }
 0x456   : > { %2502 = vmatpush.bf16.msra.mxu0 %v8334_v21  ;;  %v1727_v24 = vpop.f32.mrf.mxu0 }
 0x457   : > { %v1741_v31 = vadd.f32 %v1727_v24, %v8812_v15  ;;  %v1961_v15 = vpop.f32.mrf.mxu1 }
 0x459   : > { %2087 = vmatmul.bf16.gmra.mxu2 %v2055_v19  ;;  %6322 = vmatmul.msk.bf16.gmra.mxu0 %vm1071_vm1, %v2056_v23 }
 0x45e   : > { %v8916_v33 = vpop.f32.mrf.mxu0 }
 0x45f   : > { %v1964_v46 = vpop.f32.mrf.mxu1 }
 0x466   : > { %v1732_v43 = vpop.f32.mrf.mxu0 }
 0x467   : > { %v1743_v44 = vadd.f32 %v1732_v43, %v8819_v26  ;;  %v1966_v54 = vpop.f32.mrf.mxu1  ;;  %v6346_v43 = vor.u32 %v7741_v37, %v6345_v34  ;;  %v7748_v37 = vld [vmem:[%s10541_s3 + $0x17c] sm:$0xf] }
 0x469   : > { %6359 = vmatmul.msk.bf16.vlgmr.msra.gmra.mxu2 %vm1071_vm1, %v6350_v38 }
 0x46a   : > { %2637 = vmatpush.bf16.msra.mxu2 %v8378_v35 }
 0x46e   : > { %2638 = vmatpush.bf16.msra.mxu2 %v8384_v47  ;;  %v8928_v45 = vpop.f32.mrf.mxu0 }
 0x46f   : > { %v1969_v58 = vpop.f32.mrf.mxu1 }
 0x472   : > { %2639 = vmatpush.bf16.msra.mxu2 %v8392_v56 }
 0x476   : > { %2640 = vmatpush.bf16.msra.mxu2 %v8404_v53  ;;  %v1737_v17 = vpop.f32.mrf.mxu0 }
 0x477   : > { %v1745_v50 = vadd.f32 %v1737_v17, %v8824_v42  ;;  %v1971_v63 = vpop.f32.mrf.mxu1 }
 0x479   : > { %6360 = vmatmul.msk.bf16.gmra.mxu2 %vm1071_vm1, %v6358_v9 }
 0x47a   : > { %2641 = vmatpush.bf16.msra.mxu2 %v8410_v0 }
 0x47e   : > { %2642 = vmatpush.bf16.msra.mxu2 %v8417_v51  ;;  %v1739_v26 = vpop.f32.mrf.mxu0 }
 0x482   : > { %2643 = vmatpush.bf16.msra.mxu2 %v8422_v29 }
 0x486   : > { %2644 = vmatpush.bf16.msra.mxu2 %v8334_v21  ;;  %v1936_v55 = vpop.f32.mrf.mxu0 }
 0x487   : > { %v1960_v61 = vadd.f32 %v1959_v20, %v1936_v55 }
 0x48c   : > { %v1869_v59 = vpop.f32.mrf.mxu2 }
 0x48d   : > { %v8937_v60 = vadd.f32 %v1869_v59, %v1741_v31  ;;  %v7756_v59 = vld [vmem:[%s10498_s4 + $0xa0] sm:$0xff] }
 0x48e   : > { %v1938_v36 = vpop.f32.mrf.mxu0 }
 0x48f   : > { %v1962_v62 = vadd.f32 %v1961_v15, %v1938_v36 }
 0x491   : > { %v1973_v42 = vpack.c.bf16 %v1962_v62, %v1960_v61  ;;  %v6353_v61 = vld [vmem:[%s10541_s3 + $0x150] sm:$0xf]  ;;  %v7743_v62 = vld [vmem:[%s10541_s3 + $0x154] sm:$0xf0] }
 0x493   : > { %6296 = vmatmul.msk.bf16.vlgmr.msrb.gmra.mxu3 %vm1243_vm2, %v1973_v42  ;;  %v6354_v42 = vor.u32 %v7743_v62, %v6353_v61 }
 0x494   : > { %2379 = vmatpush.bf16.msrb.mxu3 %v8453_v49  ;;  %v8941_v1 = vpop.f32.mrf.mxu2 }
 0x496   : > { %v1941_v41 = vpop.f32.mrf.mxu0 }
 0x497   : > { %v1965_v52 = vadd.f32 %v1964_v46, %v1941_v41 }
 0x498   : > { %2380 = vmatpush.bf16.msrb.mxu3 %v8461_v40 }
 0x49c   : > { %2381 = vmatpush.bf16.msrb.mxu3 %v8468_v28  ;;  %v1874_v4 = vpop.f32.mrf.mxu2 }
 0x49d   : > { %v8945_v2 = vadd.f32 %v1874_v4, %v1743_v44  ;;  %v6342_v44 = vld [vmem:[%s10541_s3 + $0x160] sm:$0x33] }
 0x49e   : > { %v1943_v3 = vpop.f32.mrf.mxu0  ;;  %v2192_v15 = vunpack.c.h.b16 %v6342_v44 }
 0x49f   : > { %v1967_v5 = vadd.f32 %v1966_v54, %v1943_v3 }
 0x4a0   : > { %2382 = vmatpush.bf16.msrb.mxu3 %v8473_v57  ;;  %v2198_v46 = vpack.c.b16 %v2192_v15, %v2192_v15  ;;  %v6392_v15 = vld [vmem:[%s10541_s3 + $0x178] sm:$0xf] }
 0x4a1   : > { %v1974_v48 = vpack.c.bf16 %v1967_v5, %v1965_v52 }
 0x4a2   : > { %6361 = vmatmul.msk.bf16.gmra.mxu2 %vm1071_vm1, %v2198_v46  ;;  %v7749_v46 = vld [vmem:[%s10541_s3 + $0x17c] sm:$0xf0] }
 0x4a3   : > { %6297 = vmatmul.msk.bf16.gmra.mxu3 %vm1243_vm2, %v1974_v48  ;;  %v2191_v48 = vunpack.c.l.b16 %v6342_v44  ;;  %v7763_v44 = vld [vmem:[%s10498_s4 + $0xb8] sm:$0xff] }
 0x4a4   : > { %2383 = vmatpush.bf16.msrb.mxu3 %v8497_v27  ;;  %v8950_v6 = vpop.f32.mrf.mxu2 }
 0x4a5   : > { %v2197_v8 = vpack.c.b16 %v2191_v48, %v2191_v48 }
 0x4a6   : > { %v1946_v39 = vpop.f32.mrf.mxu0 }
 0x4a7   : > { %v1970_v12 = vadd.f32 %v1969_v58, %v1946_v39  ;;  %v7757_v58 = vld [vmem:[%s10498_s4 + $0xa8] sm:$0xff] }
 0x4a9   : > { %v1975_v23 = vpack.c.bf16 %v1970_v12, %v1970_v12 }
 0x4ac   : > { %v1879_v10 = vpop.f32.mrf.mxu2 }
 0x4ad   : > { %v8959_v18 = vadd.f32 %v1879_v10, %v1745_v50 }
 0x4ae   : > { %v1948_v19 = vpop.f32.mrf.mxu0 }
 0x4af   : > { %v7746_v19 = vld [vmem:[%s10541_s3 + $0x16c] sm:$0xf] }
 0x4b3   : > { %6298 = vmatmul.msk.bf16.gmra.mxu3 %vm1243_vm2, %v1975_v23  ;;  %v6386_v23 = vld [vmem:[%s10541_s3 + $0x170] sm:$0xf0] }
 0x4b4   : > { %v1881_v24 = vpop.f32.mrf.mxu2 }
 0x4b5   : > { %v6389_v24 = vor.u32 %v7746_v19, %v6386_v23 }
 0x4b6   : > { %v2101_v31 = vpop.f32.mrf.mxu0 }
 0x4bc   : > { %v2078_v20 = vpop.f32.mrf.mxu2 }
 0x4bd   : > { %v2102_v50 = vadd.f32 %v2101_v31, %v2078_v20  ;;  %v6384_v31 = vld [vmem:[%s10541_s3 + $0x168] sm:$0xf]  ;;  %v7747_v20 = vld [vmem:[%s10541_s3 + $0x16c] sm:$0xf0] }
 0x4be   : > { %v2103_v38 = vpop.f32.mrf.mxu0  ;;  %v6385_v34 = vor.u32 %v7747_v20, %v6384_v31 }
 0x4c3   : > { %2219 = vmatmul.bf16.vlgmr.msra.gmra.mxu3 %v6346_v43 }
 0x4c4   : > { %v2080_v17 = vpop.f32.mrf.mxu2  ;;  %2576 = vmatpush.bf16.msra.mxu3 %v7757_v58 }
 0x4c5   : > { %v2104_v26 = vadd.f32 %v2103_v38, %v2080_v17  ;;  %v6394_v38 = vld [vmem:[%s10541_s3 + $0x180] sm:$0xf0]  ;;  %v6393_v17 = vor.u32 %v7749_v46, %v6392_v15 }
 0x4c6   : > { %v2106_v54 = vpop.f32.mrf.mxu0  ;;  %v6397_v43 = vor.u32 %v7748_v37, %v6394_v38 }
 0x4c7   : > { %v2115_v55 = vpack.c.bf16 %v2104_v26, %v2102_v50  ;;  %v7762_v50 = vld [vmem:[%s10498_s4 + $0xb0] sm:$0xff]  ;;  %v6381_v26 = vld [vmem:[%s10541_s3 + $0x188] sm:$0x33] }
 0x4c8   : > { %2577 = vmatpush.bf16.msra.mxu3 %v7756_v59  ;;  %v2333_v58 = vunpack.c.l.b16 %v6381_v26 }
 0x4c9   : > { %6335 = vmatmul.msk.bf16.vlgmr.msra.gmra.mxu1 %vm1243_vm2, %v2115_v55 }
 0x4ca   : > { %2521 = vmatpush.bf16.msra.mxu1 %v8453_v49  ;;  %v2339_v59 = vpack.c.b16 %v2333_v58, %v2333_v58  ;;  %v7754_v58 = vld [vmem:[%s10541_s3 + $0x1a4] sm:$0xf] }
 0x4cc   : > { %v2083_v36 = vpop.f32.mrf.mxu2 }
 0x4cd   : > { %v2107_v4 = vadd.f32 %v2106_v54, %v2083_v36  ;;  %v2334_v54 = vunpack.c.h.b16 %v6381_v26 }
 0x4ce   : > { %2522 = vmatpush.bf16.msra.mxu1 %v8461_v40  ;;  %v2108_v63 = vpop.f32.mrf.mxu0 }
 0x4cf   : > { %v2340_v55 = vpack.c.b16 %v2334_v54, %v2334_v54 }
 0x4d2   : > { %2523 = vmatpush.bf16.msra.mxu1 %v8468_v28 }
 0x4d3   : > { %2224 = vmatmul.bf16.gmra.mxu3 %v6354_v42  ;;  %v7752_v42 = vld [vmem:[%s10541_s3 + $0x194] sm:$0xf] }
 0x4d4   : > { %v2085_v41 = vpop.f32.mrf.mxu2 }
 0x4d5   : > { %v2109_v3 = vadd.f32 %v2108_v63, %v2085_v41  ;;  %v6425_v41 = vld [vmem:[%s10541_s3 + $0x198] sm:$0xf0] }
 0x4d6   : > { %2524 = vmatpush.bf16.msra.mxu1 %v8473_v57  ;;  %v2111_v52 = vpop.f32.mrf.mxu0 }
 0x4d7   : > { %v2116_v5 = vpack.c.bf16 %v2109_v3, %v2107_v4  ;;  %v6428_v4 = vor.u32 %v7752_v42, %v6425_v41 }
 0x4d9   : > { %6336 = vmatmul.msk.bf16.gmra.mxu1 %vm1243_vm2, %v2116_v5 }
 0x4da   : > { %2525 = vmatpush.bf16.msra.mxu1 %v8497_v27 }
 0x4dc   : > { %v2088_v39 = vpop.f32.mrf.mxu2 }
 0x4dd   : > { %v2112_v9 = vadd.f32 %v2111_v52, %v2088_v39 }
 0x4de   : > { %v2113_v7 = vpop.f32.mrf.mxu0 }
 0x4df   : > { %v2117_v12 = vpack.c.bf16 %v2112_v9, %v2112_v9 }
 0x4e3   : > { %2229 = vmatmul.bf16.gmra.mxu3 %v2197_v8 }
 0x4e4   : > { %v2090_v10 = vpop.f32.mrf.mxu2 }
 0x4e9   : > { %6337 = vmatmul.msk.bf16.gmra.mxu1 %vm1243_vm2, %v2117_v12 }
 0x4ec   : > { %v2243_v63 = vpop.f32.mrf.mxu2 }
 0x4f3   : > { %6398 = vmatmul.msk.bf16.vlgmr.msrb.gmra.mxu3 %vm1071_vm1, %v6389_v24 }
 0x4f4   : > { %2779 = vmatpush.bf16.msrb.mxu3 %v8378_v35 }
 0x4f8   : > { %2780 = vmatpush.bf16.msrb.mxu3 %v8384_v47 }
 0x4f9   : > { %2361 = vmatmul.bf16.vlgmr.msrb.gmra.mxu1 %v6385_v34 }
 0x4fa   : > { %2718 = vmatpush.bf16.msrb.mxu1 %v7763_v44 }
 0x4fc   : > { %2781 = vmatpush.bf16.msrb.mxu3 %v8392_v56 }
 0x4fe   : > { %2719 = vmatpush.bf16.msrb.mxu1 %v7762_v50 }
 0x500   : > { %2782 = vmatpush.bf16.msrb.mxu3 %v8404_v53 }
 0x503   : > { %6399 = vmatmul.msk.bf16.gmra.mxu3 %vm1071_vm1, %v6397_v43 }
 0x504   : > { %2783 = vmatpush.bf16.msrb.mxu3 %v8410_v0 }
 0x508   : > { %2784 = vmatpush.bf16.msrb.mxu3 %v8417_v51 }
 0x509   : > { %2366 = vmatmul.bf16.gmra.mxu1 %v6393_v17 }
 0x50c   : > { %2785 = vmatpush.bf16.msrb.mxu3 %v8422_v29 }
 0x510   : > { %2786 = vmatpush.bf16.msrb.mxu3 %v8334_v21 }
 0x513   : > { %6400 = vmatmul.msk.bf16.gmra.mxu3 %vm1071_vm1, %v2340_v55 }
 0x516   : > { %v2011_v36 = vpop.f32.mrf.mxu3 }
 0x517   : > { %v2025_v61 = vadd.f32 %v2011_v36, %v8937_v60  ;;  %v2245_v60 = vpop.f32.mrf.mxu2 }
 0x519   : > { %2371 = vmatmul.bf16.gmra.mxu1 %v2339_v59  ;;  %v6433_v59 = vld [vmem:[%s10541_s3 + $0x1a8] sm:$0xf0] }
 0x51a   : > { %v6436_v36 = vor.u32 %v7754_v58, %v6433_v59 }
 0x51e   : > { %v9037_v62 = vpop.f32.mrf.mxu3 }
 0x51f   : > { %v2248_v48 = vpop.f32.mrf.mxu2 }
 0x526   : > { %v2016_v3 = vpop.f32.mrf.mxu3 }
 0x527   : > { %v2027_v52 = vadd.f32 %v2016_v3, %v8945_v2  ;;  %v2250_v8 = vpop.f32.mrf.mxu2 }
 0x529   : > { %6437 = vmatmul.msk.bf16.vlgmr.msra.gmra.mxu1 %vm1071_vm1, %v6428_v4 }
 0x52a   : > { %2921 = vmatpush.bf16.msra.mxu1 %v8378_v35 }
 0x52e   : > { %2922 = vmatpush.bf16.msra.mxu1 %v8384_v47  ;;  %v9049_v5 = vpop.f32.mrf.mxu3 }
 0x52f   : > { %v2253_v19 = vpop.f32.mrf.mxu2 }
 0x532   : > { %2923 = vmatpush.bf16.msra.mxu1 %v8392_v56 }
 0x536   : > { %2924 = vmatpush.bf16.msra.mxu1 %v8404_v53  ;;  %v2021_v39 = vpop.f32.mrf.mxu3 }
 0x537   : > { %v2029_v7 = vadd.f32 %v2021_v39, %v8959_v18  ;;  %v2255_v20 = vpop.f32.mrf.mxu2 }
 0x539   : > { %6438 = vmatmul.msk.bf16.gmra.mxu1 %vm1071_vm1, %v6436_v36 }
 0x53a   : > { %2925 = vmatpush.bf16.msra.mxu1 %v8410_v0 }
 0x53e   : > { %2926 = vmatpush.bf16.msra.mxu1 %v8417_v51  ;;  %v2023_v2 = vpop.f32.mrf.mxu3 }
 0x542   : > { %2927 = vmatpush.bf16.msra.mxu1 %v8422_v29 }
 0x546   : > { %2928 = vmatpush.bf16.msra.mxu1 %v8334_v21  ;;  %v2153_v9 = vpop.f32.mrf.mxu1  ;;  %v2220_v10 = vpop.f32.mrf.mxu3 }
 0x547   : > { %v9058_v12 = vadd.f32 %v2153_v9, %v2025_v61  ;;  %v2244_v31 = vadd.f32 %v2243_v63, %v2220_v10  ;;  %v6420_v9 = vld [vmem:[%s10541_s3 + $0x1b0] sm:$0x33] }
 0x548   : > { %v2476_v10 = vunpack.c.h.b16 %v6420_v9 }
 0x54e   : > { %v9060_v23 = vpop.f32.mrf.mxu1  ;;  %v2222_v24 = vpop.f32.mrf.mxu3 }
 0x54f   : > { %v2246_v18 = vadd.f32 %v2245_v60, %v2222_v24  ;;  %v7753_v60 = vld [vmem:[%s10541_s3 + $0x194] sm:$0xf0]  ;;  %v2482_v24 = vpack.c.b16 %v2476_v10, %v2476_v10  ;;  %v7760_v10 = vld [vmem:[%s10541_s3 + $0x1cc] sm:$0xf] }
 0x551   : > { %v2257_v34 = vpack.c.bf16 %v2246_v18, %v2244_v31  ;;  %v7769_v31 = vld [vmem:[%s10498_s4 + $0xc8] sm:$0xff]  ;;  %6439 = vmatmul.msk.bf16.gmra.mxu1 %vm1071_vm1, %v2482_v24  ;;  %v7768_v18 = vld [vmem:[%s10498_s4 + $0xc0] sm:$0xff] }
 0x553   : > { %6374 = vmatmul.msk.bf16.vlgmr.msrb.gmra.mxu0 %vm1243_vm2, %v2257_v34 }
 0x554   : > { %2663 = vmatpush.bf16.msrb.mxu0 %v8453_v49 }
 0x556   : > { %v2158_v37 = vpop.f32.mrf.mxu1  ;;  %v2225_v38 = vpop.f32.mrf.mxu3 }
 0x557   : > { %v9064_v43 = vadd.f32 %v2158_v37, %v2027_v52  ;;  %v2249_v46 = vadd.f32 %v2248_v48, %v2225_v38  ;;  %v6423_v52 = vld [vmem:[%s10541_s3 + $0x190] sm:$0xf]  ;;  %v6431_v37 = vld [vmem:[%s10541_s3 + $0x1a0] sm:$0xf]  ;;  %v7755_v38 = vld [vmem:[%s10541_s3 + $0x1a4] sm:$0xf0] }
 0x558   : > { %2664 = vmatpush.bf16.msrb.mxu0 %v8461_v40 }
 0x55c   : > { %2665 = vmatpush.bf16.msrb.mxu0 %v8468_v28 }
 0x55e   : > { %v9068_v44 = vpop.f32.mrf.mxu1  ;;  %v2227_v15 = vpop.f32.mrf.mxu3 }
 0x55f   : > { %v2251_v17 = vadd.f32 %v2250_v8, %v2227_v15  ;;  %v6424_v8 = vor.u32 %v7753_v60, %v6423_v52  ;;  %v7759_v52 = vld [vmem:[%s10541_s3 + $0x1bc] sm:$0xf0]  ;;  %v7758_v60 = vld [vmem:[%s10541_s3 + $0x1bc] sm:$0xf] }
 0x560   : > { %2666 = vmatpush.bf16.msrb.mxu0 %v8473_v57 }
 0x561   : > { %v2258_v50 = vpack.c.bf16 %v2251_v17, %v2249_v46 }
 0x563   : > { %6375 = vmatmul.msk.bf16.gmra.mxu0 %vm1243_vm2, %v2258_v50 }
 0x564   : > { %2667 = vmatpush.bf16.msrb.mxu0 %v8497_v27 }
 0x566   : > { %v2163_v26 = vpop.f32.mrf.mxu1  ;;  %v2230_v54 = vpop.f32.mrf.mxu3 }
 0x567   : > { %v9073_v55 = vadd.f32 %v2163_v26, %v2029_v7  ;;  %v2254_v61 = vadd.f32 %v2253_v19, %v2230_v54  ;;  %v6432_v26 = vor.u32 %v7755_v38, %v6431_v37 }
 0x569   : > { %v2259_v41 = vpack.c.bf16 %v2254_v61, %v2254_v61  ;;  %v2475_v61 = vunpack.c.l.b16 %v6420_v9  ;;  %v7761_v9 = vld [vmem:[%s10541_s3 + $0x1cc] sm:$0xf0] }
 0x56e   : > { %v2165_v63 = vpop.f32.mrf.mxu1  ;;  %v2232_v42 = vpop.f32.mrf.mxu3 }
 0x573   : > { %6376 = vmatmul.msk.bf16.gmra.mxu0 %vm1243_vm2, %v2259_v41 }
 0x576   : > { %v2362_v4 = vpop.f32.mrf.mxu1  ;;  %v2385_v3 = vpop.f32.mrf.mxu3 }
 0x577   : > { %v2386_v7 = vadd.f32 %v2385_v3, %v2362_v4  ;;  %v2481_v4 = vpack.c.b16 %v2475_v61, %v2475_v61  ;;  %v6462_v3 = vld [vmem:[%s10541_s3 + $0x1b8] sm:$0xf] }
 0x57e   : > { %v2364_v48 = vpop.f32.mrf.mxu1  ;;  %v2387_v39 = vpop.f32.mrf.mxu3 }
 0x57f   : > { %v2388_v2 = vadd.f32 %v2387_v39, %v2364_v48  ;;  %v6464_v48 = vld [vmem:[%s10541_s3 + $0x1c0] sm:$0xf0]  ;;  %v6463_v39 = vor.u32 %v7759_v52, %v6462_v3 }
 0x581   : > { %v2399_v19 = vpack.c.bf16 %v2388_v2, %v2386_v7  ;;  %v6467_v7 = vor.u32 %v7758_v60, %v6464_v48  ;;  %v7775_v2 = vld [vmem:[%s10498_s4 + $0xd8] sm:$0xff] }
 0x583   : > { %6413 = vmatmul.msk.bf16.vlgmr.msrb.gmra.mxu2 %vm1243_vm2, %v2399_v19  ;;  %2503 = vmatmul.bf16.vlgmr.msra.gmra.mxu0 %v6424_v8  ;;  %v6470_v8 = vld [vmem:[%s10541_s3 + $0x1c8] sm:$0xf]  ;;  %v6472_v19 = vld [vmem:[%s10541_s3 + $0x1d0] sm:$0xf0] }
 0x584   : > { %2805 = vmatpush.bf16.msrb.mxu2 %v8453_v49  ;;  %2860 = vmatpush.bf16.msra.mxu0 %v7769_v31  ;;  %v6471_v24 = vor.u32 %v7761_v9, %v6470_v8  ;;  %v6475_v31 = vor.u32 %v7760_v10, %v6472_v19 }
 0x586   : > { %v2367_v20 = vpop.f32.mrf.mxu1  ;;  %v2390_v34 = vpop.f32.mrf.mxu3 }
 0x587   : > { %v2391_v17 = vadd.f32 %v2390_v34, %v2367_v20  ;;  %v6459_v20 = vld [vmem:[%s10541_s3 + $0x1d8] sm:$0x33] }
 0x588   : > { %2806 = vmatpush.bf16.msrb.mxu2 %v8461_v40  ;;  %2861 = vmatpush.bf16.msra.mxu0 %v7768_v18  ;;  %v7774_v18 = vld [vmem:[%s10498_s4 + $0xd0] sm:$0xff]  ;;  %v2617_v34 = vunpack.c.l.b16 %v6459_v20  ;;  %v2618_v37 = vunpack.c.h.b16 %v6459_v20 }
 0x58a   : > { %v2623_v38 = vpack.c.b16 %v2617_v34, %v2617_v34  ;;  %v7766_v34 = vld [vmem:[%s10541_s3 + $0x1f4] sm:$0xf] }
 0x58c   : > { %2807 = vmatpush.bf16.msrb.mxu2 %v8468_v28 }
 0x58e   : > { %v2369_v15 = vpop.f32.mrf.mxu1  ;;  %v2392_v46 = vpop.f32.mrf.mxu3 }
 0x58f   : > { %v2393_v50 = vadd.f32 %v2392_v46, %v2369_v15  ;;  %v2624_v15 = vpack.c.b16 %v2618_v37, %v2618_v37  ;;  %v6511_v37 = vld [vmem:[%s10541_s3 + $0x1f8] sm:$0xf0] }
 0x590   : > { %2808 = vmatpush.bf16.msrb.mxu2 %v8473_v57 }
 0x591   : > { %v2400_v54 = vpack.c.bf16 %v2393_v50, %v2391_v17 }
 0x593   : > { %6414 = vmatmul.msk.bf16.gmra.mxu2 %vm1243_vm2, %v2400_v54  ;;  %2508 = vmatmul.bf16.gmra.mxu0 %v6432_v26  ;;  %v7764_v54 = vld [vmem:[%s10541_s3 + $0x1e4] sm:$0xf] }
 0x594   : > { %2809 = vmatpush.bf16.msrb.mxu2 %v8497_v27 }
 0x596   : > { %v2372_v58 = vpop.f32.mrf.mxu1  ;;  %v2395_v59 = vpop.f32.mrf.mxu3 }
 0x597   : > { %v2396_v36 = vadd.f32 %v2395_v59, %v2372_v58  ;;  %v6503_v58 = vld [vmem:[%s10541_s3 + $0x1e8] sm:$0xf0] }
 0x598   : > { %v6506_v59 = vor.u32 %v7764_v54, %v6503_v58  ;;  %v6501_v54 = vld [vmem:[%s10541_s3 + $0x1e0] sm:$0xf]  ;;  %v7765_v58 = vld [vmem:[%s10541_s3 + $0x1e4] sm:$0xf0] }
 0x599   : > { %v2401_v41 = vpack.c.bf16 %v2396_v36, %v2396_v36 }
 0x59e   : > { %v2374_v63 = vpop.f32.mrf.mxu1  ;;  %v2397_v42 = vpop.f32.mrf.mxu3 }
 0x5a3   : > { %6415 = vmatmul.msk.bf16.gmra.mxu2 %vm1243_vm2, %v2401_v41  ;;  %2513 = vmatmul.bf16.gmra.mxu0 %v2481_v4 }
 0x5a6   : > { %v2527_v26 = vpop.f32.mrf.mxu1 }
 0x5b3   : > { %2645 = vmatmul.bf16.vlgmr.msra.gmra.mxu2 %v6463_v39  ;;  %6476 = vmatmul.msk.bf16.vlgmr.msrb.gmra.mxu0 %vm1071_vm1, %v6467_v7 }
 0x5b4   : > { %3063 = vmatpush.bf16.msrb.mxu0 %v8378_v35  ;;  %3002 = vmatpush.bf16.msra.mxu2 %v7775_v2 }
 0x5b8   : > { %3064 = vmatpush.bf16.msrb.mxu0 %v8384_v47  ;;  %3003 = vmatpush.bf16.msra.mxu2 %v7774_v18 }
 0x5bc   : > { %3065 = vmatpush.bf16.msrb.mxu0 %v8392_v56 }
 0x5c0   : > { %3066 = vmatpush.bf16.msrb.mxu0 %v8404_v53 }
 0x5c3   : > { %2650 = vmatmul.bf16.gmra.mxu2 %v6471_v24  ;;  %6477 = vmatmul.msk.bf16.gmra.mxu0 %vm1071_vm1, %v6475_v31 }
 0x5c4   : > { %3067 = vmatpush.bf16.msrb.mxu0 %v8410_v0 }
 0x5c8   : > { %3068 = vmatpush.bf16.msrb.mxu0 %v8417_v51 }
 0x5cc   : > { %3069 = vmatpush.bf16.msrb.mxu0 %v8422_v29 }
 0x5d0   : > { %3070 = vmatpush.bf16.msrb.mxu0 %v8334_v21  ;;  %v2295_v46 = vpop.f32.mrf.mxu0 }
 0x5d1   : > { %v2309_v17 = vadd.f32 %v2295_v46, %v9058_v12  ;;  %v2529_v12 = vpop.f32.mrf.mxu1 }
 0x5d3   : > { %2655 = vmatmul.bf16.gmra.mxu2 %v2623_v38  ;;  %6478 = vmatmul.msk.bf16.gmra.mxu0 %vm1071_vm1, %v2624_v15  ;;  %v6514_v38 = vor.u32 %v7766_v34, %v6511_v37  ;;  %v7770_v34 = vld [vmem:[%s10541_s3 + $0x20c] sm:$0xf]  ;;  %v6542_v37 = vld [vmem:[%s10541_s3 + $0x210] sm:$0xf0] }
 0x5d8   : > { %v9158_v50 = vpop.f32.mrf.mxu0 }
 0x5d9   : > { %v2532_v42 = vpop.f32.mrf.mxu1 }
 0x5e0   : > { %v2300_v36 = vpop.f32.mrf.mxu0 }
 0x5e1   : > { %v2311_v61 = vadd.f32 %v2300_v36, %v9064_v43  ;;  %v2534_v3 = vpop.f32.mrf.mxu1  ;;  %v6502_v36 = vor.u32 %v7765_v58, %v6501_v54  ;;  %v6550_v54 = vld [vmem:[%s10541_s3 + $0x220] sm:$0xf0] }
 0x5e3   : > { %6515 = vmatmul.msk.bf16.vlgmr.msrb.gmra.mxu2 %vm1071_vm1, %v6506_v59 }
 0x5e4   : > { %3205 = vmatpush.bf16.msrb.mxu2 %v8378_v35 }
 0x5e8   : > { %3206 = vmatpush.bf16.msrb.mxu2 %v8384_v47  ;;  %v9170_v63 = vpop.f32.mrf.mxu0 }
 0x5e9   : > { %v2537_v47 = vpop.f32.mrf.mxu1 }
 0x5ec   : > { %3207 = vmatpush.bf16.msrb.mxu2 %v8392_v56 }
 0x5f0   : > { %3208 = vmatpush.bf16.msrb.mxu2 %v8404_v53  ;;  %v2305_v41 = vpop.f32.mrf.mxu0 }
 0x5f1   : > { %v2313_v4 = vadd.f32 %v2305_v41, %v9073_v55  ;;  %v2539_v39 = vpop.f32.mrf.mxu1 }
 0x5f3   : > { %6516 = vmatmul.msk.bf16.gmra.mxu2 %vm1071_vm1, %v6514_v38  ;;  %v6545_v38 = vor.u32 %v7770_v34, %v6542_v37 }
 0x5f4   : > { %3209 = vmatpush.bf16.msrb.mxu2 %v8410_v0 }
 0x5f8   : > { %3210 = vmatpush.bf16.msrb.mxu2 %v8417_v51  ;;  %v2307_v43 = vpop.f32.mrf.mxu0 }
 0x5fc   : > { %3211 = vmatpush.bf16.msrb.mxu2 %v8422_v29 }
 0x600   : > { %3212 = vmatpush.bf16.msrb.mxu2 %v8334_v21  ;;  %v2504_v35 = vpop.f32.mrf.mxu0 }
 0x601   : > { %v2528_v53 = vadd.f32 %v2527_v26, %v2504_v35 }
 0x606   : > { %v2437_v52 = vpop.f32.mrf.mxu2 }
 0x607   : > { %v9179_v56 = vadd.f32 %v2437_v52, %v2309_v17  ;;  %v6509_v52 = vld [vmem:[%s10541_s3 + $0x1f0] sm:$0xf] }
 0x608   : > { %v2506_v60 = vpop.f32.mrf.mxu0 }
 0x609   : > { %v2530_v48 = vadd.f32 %v2529_v12, %v2506_v60  ;;  %v7767_v60 = vld [vmem:[%s10541_s3 + $0x1f4] sm:$0xf0] }
 0x60b   : > { %v2541_v55 = vpack.c.bf16 %v2530_v48, %v2528_v53  ;;  %v6510_v48 = vor.u32 %v7767_v60, %v6509_v52 }
 0x60d   : > { %6452 = vmatmul.msk.bf16.vlgmr.msra.gmra.mxu3 %vm1243_vm2, %v2541_v55 }
 0x60e   : > { %2947 = vmatpush.bf16.msra.mxu3 %v8453_v49  ;;  %v9183_v0 = vpop.f32.mrf.mxu2 }
 0x610   : > { %v2509_v51 = vpop.f32.mrf.mxu0 }
 0x611   : > { %v2533_v2 = vadd.f32 %v2532_v42, %v2509_v51 }
 0x612   : > { %2948 = vmatpush.bf16.msra.mxu3 %v8461_v40 }
 0x616   : > { %2949 = vmatpush.bf16.msra.mxu3 %v8468_v28  ;;  %v2442_v21 = vpop.f32.mrf.mxu2 }
 0x617   : > { %v9187_v29 = vadd.f32 %v2442_v21, %v2311_v61  ;;  %v6498_v61 = vld [vmem:[%s10541_s3 + $0x200] sm:$0x33] }
 0x618   : > { %v2511_v7 = vpop.f32.mrf.mxu0  ;;  %v2760_v12 = vunpack.c.h.b16 %v6498_v61 }
 0x619   : > { %v2535_v8 = vadd.f32 %v2534_v3, %v2511_v7 }
 0x61a   : > { %2950 = vmatpush.bf16.msra.mxu3 %v8473_v57  ;;  %v2766_v42 = vpack.c.b16 %v2760_v12, %v2760_v12  ;;  %v6537_v12 = vld [vmem:[%s10541_s3 + $0x228] sm:$0x33] }
 0x61b   : > { %v2542_v9 = vpack.c.bf16 %v2535_v8, %v2533_v2  ;;  %v2759_v2 = vunpack.c.l.b16 %v6498_v61 }
 0x61c   : > { %6517 = vmatmul.msk.bf16.gmra.mxu2 %vm1071_vm1, %v2766_v42  ;;  %v2902_v42 = vunpack.c.h.b16 %v6537_v12 }
 0x61d   : > { %6453 = vmatmul.msk.bf16.gmra.mxu3 %vm1243_vm2, %v2542_v9 }
 0x61e   : > { %2951 = vmatpush.bf16.msra.mxu3 %v8497_v27  ;;  %v9192_v10 = vpop.f32.mrf.mxu2 }
 0x620   : > { %v2514_v19 = vpop.f32.mrf.mxu0 }
 0x621   : > { %v2538_v31 = vadd.f32 %v2537_v47, %v2514_v19  ;;  %v2765_v19 = vpack.c.b16 %v2759_v2, %v2759_v2 }
 0x623   : > { %v2543_v15 = vpack.c.bf16 %v2538_v31, %v2538_v31 }
 0x626   : > { %v2447_v24 = vpop.f32.mrf.mxu2 }
 0x627   : > { %v9194_v18 = vadd.f32 %v2447_v24, %v2313_v4 }
 0x628   : > { %v2516_v20 = vpop.f32.mrf.mxu0 }
 0x62d   : > { %6454 = vmatmul.msk.bf16.gmra.mxu3 %vm1243_vm2, %v2543_v15  ;;  %v6540_v15 = vld [vmem:[%s10541_s3 + $0x208] sm:$0xf] }
 0x62e   : > { %v2449_v46 = vpop.f32.mrf.mxu2 }
 0x62f   : > { %v7771_v46 = vld [vmem:[%s10541_s3 + $0x20c] sm:$0xf0] }
 0x630   : > { %v2669_v17 = vpop.f32.mrf.mxu0 }
 0x636   : > { %v2646_v26 = vpop.f32.mrf.mxu2 }
 0x637   : > { %v2670_v4 = vadd.f32 %v2669_v17, %v2646_v26  ;;  %v6541_v17 = vor.u32 %v7771_v46, %v6540_v15  ;;  %v7772_v26 = vld [vmem:[%s10541_s3 + $0x21c] sm:$0xf] }
 0x638   : > { %v2671_v59 = vpop.f32.mrf.mxu0  ;;  %v6553_v58 = vor.u32 %v7772_v26, %v6550_v54 }
 0x63d   : > { %2787 = vmatmul.bf16.vlgmr.msrb.gmra.mxu3 %v6502_v36  ;;  %v7773_v36 = vld [vmem:[%s10541_s3 + $0x21c] sm:$0xf0] }
 0x63e   : > { %v2648_v41 = vpop.f32.mrf.mxu2 }
 0x63f   : > { %v2672_v43 = vadd.f32 %v2671_v59, %v2648_v41  ;;  %v6548_v59 = vld [vmem:[%s10541_s3 + $0x218] sm:$0xf]  ;;  %v2908_v41 = vpack.c.b16 %v2902_v42, %v2902_v42 }
 0x640   : > { %v2674_v3 = vpop.f32.mrf.mxu0  ;;  %v6549_v61 = vor.u32 %v7773_v36, %v6548_v59  ;;  %v6581_v59 = vld [vmem:[%s10541_s3 + $0x238] sm:$0xf0] }
 0x641   : > { %v2683_v35 = vpack.c.bf16 %v2672_v43, %v2670_v4  ;;  %v2901_v4 = vunpack.c.l.b16 %v6537_v12 }
 0x643   : > { %6491 = vmatmul.msk.bf16.vlgmr.msrb.gmra.mxu1 %vm1243_vm2, %v2683_v35  ;;  %v2907_v43 = vpack.c.b16 %v2901_v4, %v2901_v4  ;;  %v7778_v4 = vld [vmem:[%s10541_s3 + $0x244] sm:$0xf] }
 0x644   : > { %3089 = vmatpush.bf16.msrb.mxu1 %v8453_v49 }
 0x646   : > { %v2651_v47 = vpop.f32.mrf.mxu2 }
 0x647   : > { %v2675_v55 = vadd.f32 %v2674_v3, %v2651_v47 }
 0x648   : > { %3090 = vmatpush.bf16.msrb.mxu1 %v8461_v40  ;;  %v2676_v53 = vpop.f32.mrf.mxu0 }
 0x64c   : > { %3091 = vmatpush.bf16.msrb.mxu1 %v8468_v28 }
 0x64d   : > { %2792 = vmatmul.bf16.gmra.mxu3 %v6510_v48 }
 0x64e   : > { %v2653_v39 = vpop.f32.mrf.mxu2 }
 0x64f   : > { %v2677_v51 = vadd.f32 %v2676_v53, %v2653_v39 }
 0x650   : > { %3092 = vmatpush.bf16.msrb.mxu1 %v8473_v57  ;;  %v2679_v21 = vpop.f32.mrf.mxu0 }
 0x651   : > { %v2684_v7 = vpack.c.bf16 %v2677_v51, %v2675_v55 }
 0x653   : > { %6492 = vmatmul.msk.bf16.gmra.mxu1 %vm1243_vm2, %v2684_v7 }
 0x654   : > { %3093 = vmatpush.bf16.msrb.mxu1 %v8497_v27 }
 0x656   : > { %v2656_v8 = vpop.f32.mrf.mxu2 }
 0x657   : > { %v2680_v24 = vadd.f32 %v2679_v21, %v2656_v8 }
 0x658   : > { %v2681_v9 = vpop.f32.mrf.mxu0 }
 0x659   : > { %v2685_v20 = vpack.c.bf16 %v2680_v24, %v2680_v24 }
 0x65d   : > { %2797 = vmatmul.bf16.gmra.mxu3 %v2765_v19 }
 0x65e   : > { %v2658_v31 = vpop.f32.mrf.mxu2 }
 0x663   : > { %6493 = vmatmul.msk.bf16.gmra.mxu1 %vm1243_vm2, %v2685_v20 }
 0x666   : > { %v2811_v52 = vpop.f32.mrf.mxu2 }
 0x66d   : > { %6554 = vmatmul.msk.bf16.vlgmr.msra.gmra.mxu3 %vm1071_vm1, %v6545_v38 }
 0x66e   : > { %v2813_v48 = vpop.f32.mrf.mxu2 }
 0x673   : > { %2929 = vmatmul.bf16.vlgmr.msra.gmra.mxu1 %v6541_v17 }
 0x676   : > { %v2816_v55 = vpop.f32.mrf.mxu2 }
 0x67d   : > { %6555 = vmatmul.msk.bf16.gmra.mxu3 %vm1071_vm1, %v6553_v58 }
 0x67e   : > { %v2818_v2 = vpop.f32.mrf.mxu2 }
 0x683   : > { %2934 = vmatmul.bf16.gmra.mxu1 %v6549_v61 }
 0x68d   : > { %6556 = vmatmul.msk.bf16.gmra.mxu3 %vm1071_vm1, %v2908_v41 }
 0x690   : > { %v2579_v3 = vpop.f32.mrf.mxu3 }
 0x691   : > { %v2593_v35 = vadd.f32 %v2579_v3, %v9179_v56 }
 0x693   : > { %2939 = vmatmul.bf16.gmra.mxu1 %v2907_v43  ;;  %v6589_v43 = vld [vmem:[%s10541_s3 + $0x248] sm:$0xf0] }
 0x698   : > { %v9259_v47 = vpop.f32.mrf.mxu3 }
 0x69f   : > { %v2821_v56 = vpop.f32.mrf.mxu2 }
 0x6a0   : > { %v2584_v60 = vpop.f32.mrf.mxu3 }
 0x6a1   : > { %v2595_v53 = vadd.f32 %v2584_v60, %v9187_v29  ;;  %v7777_v60 = vld [vmem:[%s10541_s3 + $0x234] sm:$0xf0] }
 0x6a7   : > { %v2823_v29 = vpop.f32.mrf.mxu2 }
 0x6a8   : > { %v9262_v39 = vpop.f32.mrf.mxu3 }
 0x6b0   : > { %v2589_v51 = vpop.f32.mrf.mxu3 }
 0x6b1   : > { %v2597_v21 = vadd.f32 %v2589_v51, %v9194_v18 }
 0x6b8   : > { %v2591_v7 = vpop.f32.mrf.mxu3 }
 0x6c0   : > { %v2721_v8 = vpop.f32.mrf.mxu1  ;;  %v2788_v9 = vpop.f32.mrf.mxu3 }
 0x6c1   : > { %v9265_v19 = vadd.f32 %v2721_v8, %v2593_v35  ;;  %v2812_v20 = vadd.f32 %v2811_v52, %v2788_v9  ;;  %v6579_v52 = vld [vmem:[%s10541_s3 + $0x230] sm:$0xf] }
 0x6c8   : > { %v9267_v24 = vpop.f32.mrf.mxu1  ;;  %v2790_v31 = vpop.f32.mrf.mxu3 }
 0x6c9   : > { %v2814_v34 = vadd.f32 %v2813_v48, %v2790_v31 }
 0x6cb   : > { %v2825_v37 = vpack.c.bf16 %v2814_v34, %v2812_v20  ;;  %v6587_v20 = vld [vmem:[%s10541_s3 + $0x240] sm:$0xf]  ;;  %v7779_v34 = vld [vmem:[%s10541_s3 + $0x244] sm:$0xf0] }
 0x6cd   : > { %6530 = vmatmul.msk.bf16.vlgmr.msra.gmra.mxu0 %vm1243_vm2, %v2825_v37 }
 0x6ce   : > { %3231 = vmatpush.bf16.msra.mxu0 %v8453_v49  ;;  %v7776_v49 = vld [vmem:[%s10541_s3 + $0x234] sm:$0xf] }
 0x6d0   : > { %v2726_v38 = vpop.f32.mrf.mxu1  ;;  %v2793_v18 = vpop.f32.mrf.mxu3 }
 0x6d1   : > { %v9271_v15 = vadd.f32 %v2726_v38, %v2595_v53  ;;  %v2817_v26 = vadd.f32 %v2816_v55, %v2793_v18 }
 0x6d2   : > { %3232 = vmatpush.bf16.msra.mxu0 %v8461_v40  ;;  %v6584_v40 = vor.u32 %v7776_v49, %v6581_v59 }
 0x6d4   : > { %6593 = vmatmul.msk.bf16.vlgmr.msrb.gmra.mxu1 %vm1071_vm1, %v6584_v40 }
 0x6d6   : > { %3233 = vmatpush.bf16.msra.mxu0 %v8468_v28 }
 0x6d8   : > { %v9275_v46 = vpop.f32.mrf.mxu1  ;;  %v2795_v17 = vpop.f32.mrf.mxu3 }
 0x6d9   : > { %v2819_v54 = vadd.f32 %v2818_v2, %v2795_v17  ;;  %v6576_v2 = vld [vmem:[%s10541_s3 + $0x250] sm:$0x33]  ;;  %v6588_v17 = vor.u32 %v7779_v34, %v6587_v20 }
 0x6da   : > { %3234 = vmatpush.bf16.msra.mxu0 %v8473_v57  ;;  %v3044_v8 = vunpack.c.h.b16 %v6576_v2  ;;  %v3043_v59 = vunpack.c.l.b16 %v6576_v2 }
 0x6db   : > { %v2826_v58 = vpack.c.bf16 %v2819_v54, %v2817_v26 }
 0x6dc   : > { %v3050_v9 = vpack.c.b16 %v3044_v8, %v3044_v8 }
 0x6dd   : > { %6531 = vmatmul.msk.bf16.gmra.mxu0 %vm1243_vm2, %v2826_v58 }
 0x6de   : > { %3235 = vmatpush.bf16.msra.mxu0 %v8497_v27  ;;  %v6592_v27 = vor.u32 %v7778_v4, %v6589_v43  ;;  %v6620_v4 = vld [vmem:[%s10541_s3 + $0x260] sm:$0xf0] }
 0x6e0   : > { %v2731_v28 = vpop.f32.mrf.mxu1  ;;  %v2798_v36 = vpop.f32.mrf.mxu3 }
 0x6e1   : > { %v9287_v61 = vadd.f32 %v2731_v28, %v2597_v21  ;;  %v2822_v57 = vadd.f32 %v2821_v56, %v2798_v36  ;;  %v6580_v21 = vor.u32 %v7777_v60, %v6579_v52  ;;  %v7784_v52 = vld [vmem:[%s10541_s3 + $0x26c] sm:$0xf]  ;;  %v6628_v60 = vld [vmem:[%s10541_s3 + $0x270] sm:$0xf0] }
 0x6e3   : > { %v2827_v41 = vpack.c.bf16 %v2822_v57, %v2822_v57  ;;  %v3049_v57 = vpack.c.b16 %v3043_v59, %v3043_v59 }
 0x6e4   : > { %6594 = vmatmul.msk.bf16.gmra.mxu1 %vm1071_vm1, %v6592_v27 }
 0x6e8   : > { %v2733_v12 = vpop.f32.mrf.mxu1  ;;  %v2800_v42 = vpop.f32.mrf.mxu3 }
 0x6e9   : > { %v6618_v12 = vld [vmem:[%s10541_s3 + $0x258] sm:$0xf]  ;;  %v7783_v42 = vld [vmem:[%s10541_s3 + $0x25c] sm:$0xf0] }
 0x6ea   : > { %v6619_v43 = vor.u32 %v7783_v42, %v6618_v12 }
 0x6ed   : > { %6532 = vmatmul.msk.bf16.gmra.mxu0 %vm1243_vm2, %v2827_v41  ;;  %v7782_v41 = vld [vmem:[%s10541_s3 + $0x25c] sm:$0xf] }
 0x6ee   : > { %v6623_v27 = vor.u32 %v7782_v41, %v6620_v4 }
 0x6f0   : > { %v2930_v3 = vpop.f32.mrf.mxu1  ;;  %v2953_v35 = vpop.f32.mrf.mxu3 }
 0x6f1   : > { %v2954_v55 = vadd.f32 %v2953_v35, %v2930_v3  ;;  %v6626_v3 = vld [vmem:[%s10541_s3 + $0x268] sm:$0xf]  ;;  %v7785_v35 = vld [vmem:[%s10541_s3 + $0x26c] sm:$0xf0] }
 0x6f4   : > { %6595 = vmatmul.msk.bf16.gmra.mxu1 %vm1071_vm1, %v3050_v9 }
 0x6f8   : > { %v2932_v53 = vpop.f32.mrf.mxu1  ;;  %v2955_v48 = vpop.f32.mrf.mxu3 }
 0x6f9   : > { %v2956_v51 = vadd.f32 %v2955_v48, %v2932_v53  ;;  %v6627_v53 = vor.u32 %v7785_v35, %v6626_v3  ;;  %v6631_v48 = vor.u32 %v7784_v52, %v6628_v60  ;;  %v7787_v3 = vld [vmem:[%s10498_s4 + $0xf8] sm:$0xff] }
 0x6fa   : > { %3286 = vmatpush.bf16.msra.mxu1 %v7787_v3 }
 0x6fb   : > { %v2967_v7 = vpack.c.bf16 %v2956_v51, %v2954_v55  ;;  %v6615_v55 = vld [vmem:[%s10541_s3 + $0x278] sm:$0x33]  ;;  %s8041_s3 = scalar_lea.hbm %s8040_s1, 1 }
 0x6fc   : > { %v3185_v51 = vunpack.c.l.b16 %v6615_v55  ;;  %p8042_p11 = scmp.ne.s32.totalorder %s8040_s1, %s8041_s3  ;;  %p8047_p1 = scmp.lt.s32.totalorder %s8045_s19, %s8041_s3 }
 0x6fd   : > { %6569 = vmatmul.msk.bf16.vlgmr.msra.gmra.mxu2 %vm1243_vm2, %v2967_v7  ;;  %3071 = vmatmul.bf16.vlgmr.msrb.gmra.mxu0 %v6580_v21  ;;  %v3186_v21 = vunpack.c.h.b16 %v6615_v55 }
 0x6fe   : > { %v3191_v7 = vpack.c.b16 %v3185_v51, %v3185_v51  ;;  %p8043_p12 = pnand %p8042_p11, %p8222_p5  ;;  %p8048_p2 = por %p8047_p1, %p8046_p0 }
 0x6ff   : > { %v3192_v2 = vpack.c.b16 %v3186_v21, %v3186_v21 }
 0x700   : > { %v2935_v56 = vpop.f32.mrf.mxu1  ;;  %v2958_v31 = vpop.f32.mrf.mxu3  ;;  %p8044_p13 = pneg %p8043_p12 }
 0x701   : > { %v2959_v38 = vadd.f32 %v2958_v31, %v2935_v56 }
 0x702   : > { %p8049_p3 = pnand %p8048_p2, %p8044_p13 }
 0x708   : > { %v2937_v29 = vpop.f32.mrf.mxu1  ;;  %v2960_v37 = vpop.f32.mrf.mxu3 }
 0x709   : > { %v2961_v18 = vadd.f32 %v2960_v37, %v2937_v29  ;;  %v7781_v29 = vld [vmem:[%s10498_s4 + $0xe8] sm:$0xff] }
 0x70a   : > { %3144 = vmatpush.bf16.msrb.mxu3 %v7781_v29 }
 0x70b   : > { %v2968_v26 = vpack.c.bf16 %v2961_v18, %v2959_v38 }
 0x70d   : > { %6570 = vmatmul.msk.bf16.gmra.mxu2 %vm1243_vm2, %v2968_v26  ;;  %3076 = vmatmul.bf16.gmra.mxu0 %v6588_v17 }
 0x710   : > { %v2940_v54 = vpop.f32.mrf.mxu1  ;;  %v2963_v58 = vpop.f32.mrf.mxu3 }
 0x711   : > { %v2964_v49 = vadd.f32 %v2963_v58, %v2940_v54 }
 0x713   : > { %v2969_v36 = vpack.c.bf16 %v2964_v49, %v2964_v49 }
 0x718   : > { %v2942_v40 = vpop.f32.mrf.mxu1  ;;  %v2965_v28 = vpop.f32.mrf.mxu3 }
 0x71d   : > { %6571 = vmatmul.msk.bf16.gmra.mxu2 %vm1243_vm2, %v2969_v36  ;;  %3081 = vmatmul.bf16.gmra.mxu0 %v3049_v57 }
 0x72d   : > { %3213 = vmatmul.bf16.vlgmr.msrb.gmra.mxu2 %v6619_v43  ;;  %6632 = vmatmul.msk.bf16.vlgmr.msra.gmra.mxu0 %vm1071_vm1, %v6623_v27 }
 0x73d   : > { %3218 = vmatmul.bf16.gmra.mxu2 %v6627_v53  ;;  %6633 = vmatmul.msk.bf16.gmra.mxu0 %vm1071_vm1, %v6631_v48  ;;  %v7786_v48 = vld [vmem:[%s10498_s4 + $0xf0] sm:$0xff] }
 0x73e   : > { %3287 = vmatpush.bf16.msra.mxu1 %v7786_v48 }
 0x74a   : > { %v2863_v8 = vpop.f32.mrf.mxu0 }
 0x74b   : > { %v2877_v9 = vadd.f32 %v2863_v8, %v9265_v19  ;;  %v7780_v19 = vld [vmem:[%s10498_s4 + $0xe0] sm:$0xff] }
 0x74c   : > { %3145 = vmatpush.bf16.msrb.mxu3 %v7780_v19 }
 0x74d   : > { %3223 = vmatmul.bf16.gmra.mxu2 %v3191_v7  ;;  %6634 = vmatmul.msk.bf16.gmra.mxu0 %vm1071_vm1, %v3192_v2 }
 0x751   : > { %v3095_v34 = vpop.f32.mrf.mxu1 }
 0x752   : > { %v9347_v56 = vpop.f32.mrf.mxu0 }
 0x759   : > { %v3097_v38 = vpop.f32.mrf.mxu1 }
 0x75a   : > { %v2868_v31 = vpop.f32.mrf.mxu0 }
 0x75b   : > { %v2879_v20 = vadd.f32 %v2868_v31, %v9271_v15 }
 0x761   : > { %v3100_v26 = vpop.f32.mrf.mxu1 }
 0x762   : > { %v9353_v37 = vpop.f32.mrf.mxu0 }
 0x769   : > { %v3102_v15 = vpop.f32.mrf.mxu1 }
 0x76a   : > { %v2873_v18 = vpop.f32.mrf.mxu0 }
 0x76b   : > { %v2881_v17 = vadd.f32 %v2873_v18, %v9287_v61 }
 0x771   : > { %v3105_v40 = vpop.f32.mrf.mxu1 }
 0x772   : > { %v2875_v54 = vpop.f32.mrf.mxu0 }
 0x779   : > { %v3107_v41 = vpop.f32.mrf.mxu1 }
 0x77a   : > { %v3072_v58 = vpop.f32.mrf.mxu0 }
 0x77b   : > { %v3096_v36 = vadd.f32 %v3095_v34, %v3072_v58 }
 0x780   : > { %v3005_v49 = vpop.f32.mrf.mxu2 }
 0x781   : > { %v3019_v59 = vadd.f32 %v3005_v49, %v2877_v9 }
 0x782   : > { %v3074_v28 = vpop.f32.mrf.mxu0 }
 0x783   : > { %v3098_v57 = vadd.f32 %v3097_v38, %v3074_v28 }
 0x785   : > { %v3109_v12 = vpack.c.bf16 %v3098_v57, %v3096_v36 }
 0x787   : > { %6608 = vmatmul.msk.bf16.vlgmr.msrb.gmra.mxu3 %vm1243_vm2, %v3109_v12 }
 0x788   : > { %v9360_v42 = vpop.f32.mrf.mxu2 }
 0x78a   : > { %v3077_v4 = vpop.f32.mrf.mxu0 }
 0x78b   : > { %v3101_v35 = vadd.f32 %v3100_v26, %v3077_v4 }
 0x790   : > { %v3010_v43 = vpop.f32.mrf.mxu2 }
 0x791   : > { %v3021_v27 = vadd.f32 %v3010_v43, %v2879_v20 }
 0x792   : > { %v3079_v61 = vpop.f32.mrf.mxu0 }
 0x793   : > { %v3103_v52 = vadd.f32 %v3102_v15, %v3079_v61 }
 0x795   : > { %v3110_v60 = vpack.c.bf16 %v3103_v52, %v3101_v35 }
 0x797   : > { %6609 = vmatmul.msk.bf16.gmra.mxu3 %vm1243_vm2, %v3110_v60 }
 0x798   : > { %v9366_v53 = vpop.f32.mrf.mxu2 }
 0x79a   : > { %v3082_v55 = vpop.f32.mrf.mxu0 }
 0x79b   : > { %v3106_v7 = vadd.f32 %v3105_v40, %v3082_v55 }
 0x79d   : > { %v3111_v8 = vpack.c.bf16 %v3106_v7, %v3106_v7  ;;  %v1314_v7 = vadd.f32 %v8688_v14, %v8701_v30 }
 0x7a0   : > { %v3015_v51 = vpop.f32.mrf.mxu2 }
 0x7a1   : > { %v9371_v21 = vadd.f32 %v3015_v51, %v2881_v17 }
 0x7a2   : > { %v3084_v2 = vpop.f32.mrf.mxu0 }
 0x7a3   : > { %v1460_v2 = vadd.f32 %v8821_v32, %v1314_v7  ;;  %v7789_v7 = vld [vmem:[%s10501_s7] sm:$0xff] }
 0x7a7   : > { %6610 = vmatmul.msk.bf16.gmra.mxu3 %vm1243_vm2, %v3111_v8  ;;  %v1309_v8 = vadd.f32 %v8682_v11, %v8697_v22 }
 0x7a8   : > { %v3017_v9 = vpop.f32.mrf.mxu2 }
 0x7a9   : > { %v1458_v9 = vadd.f32 %v8814_v16, %v1309_v8 }
 0x7aa   : > { %v3237_v31 = vpop.f32.mrf.mxu0 }
 0x7b0   : > { %v3214_v20 = vpop.f32.mrf.mxu2 }
 0x7b1   : > { %v3238_v19 = vadd.f32 %v3237_v31, %v3214_v20  ;;  %v1602_v31 = vadd.f32 %v8817_v25, %v1460_v2 }
 0x7b2   : > { %v3239_v34 = vpop.f32.mrf.mxu0 }
 0x7b3   : > { %v1744_v20 = vadd.f32 %v8928_v45, %v1602_v31 }
 0x7b8   : > { %v3216_v29 = vpop.f32.mrf.mxu2 }
 0x7b9   : > { %v3240_v38 = vadd.f32 %v3239_v34, %v3216_v29  ;;  %v1886_v34 = vadd.f32 %v8950_v6, %v1744_v20 }
 0x7ba   : > { %v3242_v18 = vpop.f32.mrf.mxu0 }
 0x7bb   : > { %v3251_v26 = vpack.c.bf16 %v3240_v38, %v3238_v19  ;;  %v2028_v14 = vadd.f32 %v9049_v5, %v1886_v34  ;;  %v7818_v34 = vld [vmem:[%s10500_s6 + $0x30] sm:$0xff] }
 0x7bd   : > { %6647 = vmatmul.msk.bf16.vlgmr.msra.gmra.mxu1 %vm1243_vm2, %v3251_v26  ;;  %v2170_v32 = vadd.f32 %v9068_v44, %v2028_v14  ;;  %v7828_v14 = vld [vmem:[%s10500_s6 + $0x40] sm:$0xff] }
 0x7bf   : > { %v2312_v16 = vadd.f32 %v9170_v63, %v2170_v32  ;;  %v7823_v32 = vld [vmem:[%s10500_s6 + $0x38] sm:$0xff] }
 0x7c0   : > { %v3219_v54 = vpop.f32.mrf.mxu2 }
 0x7c1   : > { %v3243_v58 = vadd.f32 %v3242_v18, %v3219_v54  ;;  %v2454_v45 = vadd.f32 %v9192_v10, %v2312_v16  ;;  %v7800_v16 = vld [vmem:[%s10501_s7 + $0x48] sm:$0xff] }
 0x7c2   : > { %v3244_v15 = vpop.f32.mrf.mxu0 }
 0x7c3   : > { %v2596_v6 = vadd.f32 %v9262_v39, %v2454_v45  ;;  %v7807_v45 = vld [vmem:[%s10501_s7 + $0x78] sm:$0xff] }
 0x7c5   : > { %v2738_v5 = vadd.f32 %v9275_v46, %v2596_v6  ;;  %v8022_v46 = vld [vmem:[%s10499_s5] ss:$0 sm:$0xff]  ;;  %v7806_v6 = vld [vmem:[%s10501_s7 + $0x70] sm:$0xff] }
 0x7c7   : > { %v2880_v19 = vadd.f32 %v9353_v37, %v2738_v5 }
 0x7c8   : > { %v3221_v17 = vpop.f32.mrf.mxu2 }
 0x7c9   : > { %v3245_v49 = vadd.f32 %v3244_v15, %v3221_v17  ;;  %v3022_v63 = vadd.f32 %v9366_v53, %v2880_v19  ;;  %v7804_v19 = vld [vmem:[%s10501_s7 + $0x60] sm:$0xff] }
 0x7ca   : > { %v3247_v40 = vpop.f32.mrf.mxu0 }
 0x7cb   : > { %v3252_v28 = vpack.c.bf16 %v3245_v49, %v3243_v58 }
 0x7cd   : > { %6648 = vmatmul.msk.bf16.gmra.mxu1 %vm1243_vm2, %v3252_v28 }
 0x7d0   : > { %v3224_v36 = vpop.f32.mrf.mxu2 }
 0x7d1   : > { %v3248_v12 = vadd.f32 %v3247_v40, %v3224_v36 }
 0x7d2   : > { %v3249_v57 = vpop.f32.mrf.mxu0 }
 0x7d3   : > { %v3253_v4 = vpack.c.bf16 %v3248_v12, %v3248_v12 }
 0x7d8   : > { %v3226_v41 = vpop.f32.mrf.mxu2 }
 0x7d9   : > { %v7797_v41 = vld [vmem:[%s10501_s7 + $0x38] sm:$0xff] }
 0x7dd   : > { %6649 = vmatmul.msk.bf16.gmra.mxu1 %vm1243_vm2, %v3253_v4 }
 0x80a   : > { %v3147_v43 = vpop.f32.mrf.mxu3 }
 0x80b   : > { %v3161_v61 = vadd.f32 %v3147_v43, %v3019_v59  ;;  %v7793_v43 = vld [vmem:[%s10500_s6 + $0x8] sm:$0xff] }
 0x812   : > { %v3149_v3 = vpop.f32.mrf.mxu3 }
 0x81a   : > { %v3152_v35 = vpop.f32.mrf.mxu3 }
 0x81b   : > { %v3163_v52 = vadd.f32 %v3152_v35, %v3021_v27  ;;  %v1600_v27 = vadd.f32 %v8810_v13, %v1458_v9  ;;  %v7796_v35 = vld [vmem:[%s10501_s7 + $0x30] sm:$0xff] }
 0x81d   : > { %v1742_v29 = vadd.f32 %v8916_v33, %v1600_v27  ;;  %v7798_v27 = vld [vmem:[%s10500_s6 + $0x10] sm:$0xff] }
 0x81f   : > { %v1884_v30 = vadd.f32 %v8941_v1, %v1742_v29  ;;  %v7803_v29 = vld [vmem:[%s10500_s6 + $0x18] sm:$0xff] }
 0x821   : > { %v2026_v22 = vadd.f32 %v9037_v62, %v1884_v30  ;;  %v7813_v30 = vld [vmem:[%s10500_s6 + $0x28] sm:$0xff] }
 0x822   : > { %v3154_v60 = vpop.f32.mrf.mxu3 }
 0x823   : > { %v2168_v25 = vadd.f32 %v9060_v23, %v2026_v22  ;;  %v3164_v10 = vadd.f32 %v3154_v60, %v3022_v63  ;;  %v7794_v60 = vld [vmem:[%s10501_s7 + $0x20] sm:$0xff]  ;;  %v7801_v22 = vld [vmem:[%s10501_s7 + $0x50] sm:$0xff] }
 0x825   : > { %v2310_v13 = vadd.f32 %v9158_v50, %v2168_v25  ;;  %v7799_v25 = vld [vmem:[%s10501_s7 + $0x40] sm:$0xff] }
 0x827   : > { %v2452_v33 = vadd.f32 %v9183_v0, %v2310_v13  ;;  %v7812_v13 = vld [vmem:[%s10501_s7 + $0x98] sm:$0xff] }
 0x829   : > { %v2594_v44 = vadd.f32 %v9259_v47, %v2452_v33  ;;  %v7811_v33 = vld [vmem:[%s10501_s7 + $0x90] sm:$0xff] }
 0x82a   : > { %v3157_v48 = vpop.f32.mrf.mxu3 }
 0x82b   : > { %v2736_v62 = vadd.f32 %v9267_v24, %v2594_v44  ;;  %v3165_v50 = vadd.f32 %v3157_v48, %v9371_v21  ;;  %v7792_v48 = vld [vmem:[%s10501_s7 + $0x18] sm:$0xff]  ;;  %v7810_v44 = vld [vmem:[%s10501_s7 + $0x88] sm:$0xff] }
 0x82c   : > { %3470 = vmatpush.bf16.msrb.mxu0 %v7792_v48 }
 0x82d   : > { %v2878_v23 = vadd.f32 %v9347_v56, %v2736_v62  ;;  %v7809_v62 = vld [vmem:[%s10501_s7 + $0x80] sm:$0xff] }
 0x82f   : > { %v3020_v39 = vadd.f32 %v9360_v42, %v2878_v23  ;;  %v7817_v23 = vld [vmem:[%s10501_s7 + $0xb8] sm:$0xff] }
 0x831   : > { %v3162_v18 = vadd.f32 %v3149_v3, %v3020_v39  ;;  %v7808_v3 = vld [vmem:[%s10500_s6 + $0x20] sm:$0xff]  ;;  %v7815_v39 = vld [vmem:[%s10501_s7 + $0xa8] sm:$0xff] }
 0x832   : > { %v3159_v55 = vpop.f32.mrf.mxu3 }
 0x833   : > { %v7791_v55 = vld [vmem:[%s10501_s7 + $0x10] sm:$0xff] }
 0x834   : > { %3471 = vmatpush.bf16.msrb.mxu0 %v7791_v55 }
 0x83a   : > { %v3289_v51 = vpop.f32.mrf.mxu1 }
 0x83b   : > { %v3303_v15 = vadd.f32 %v3289_v51, %v3161_v61  ;;  %v7788_v61 = vld [vmem:[%s10500_s6] sm:$0xff]  ;;  %v7790_v51 = vld [vmem:[%s10501_s7 + $0x8] sm:$0xff] }
 0x83c   : > { %3472 = vmatpush.bf16.msrb.mxu0 %v7790_v51 }
 0x83d   : > { %v3312_v40 = vadd.f32 %v8022_v46, %v3303_v15 }
 0x83f   : > { %v3317_v12 = vmax.f32 %v3312_v40, 0.0  ;;  %v7831_v40 = vld [vmem:[%s10501_s7 + $0x110] sm:$0xff] }
 0x840   : > { %3473 = vmatpush.bf16.msrb.mxu0 %v7789_v7 }
 0x842   : > { %v3291_v59 = vpop.f32.mrf.mxu1 }
 0x843   : > { %v3304_v24 = vadd.f32 %v3291_v59, %v3162_v18 }
 0x844   : > { %3624 = vmatpush.bf16.msra.mxu0 %v7807_v45 }
 0x845   : > { %v3313_v58 = vadd.f32 %v8022_v46, %v3304_v24 }
 0x847   : > { %v3318_v36 = vmax.f32 %v3313_v58, 0.0  ;;  %v7832_v58 = vld [vmem:[%s10501_s7 + $0x118] sm:$0xff] }
 0x848   : > { %3625 = vmatpush.bf16.msra.mxu0 %v7806_v6 }
 0x849   : > { %v3322_v4 = vpack.c.bf16 %v3318_v36, %v3317_v12  ;;  %v7825_v36 = vld [vmem:[%s10501_s7 + $0xe8] sm:$0xff] }
 0x84a   : > { %v3294_v11 = vpop.f32.mrf.mxu1 }
 0x84b   : > { %v3305_v37 = vadd.f32 %v3294_v11, %v3163_v52  ;;  %v7795_v52 = vld [vmem:[%s10501_s7 + $0x28] sm:$0xff]  ;;  %v7802_v11 = vld [vmem:[%s10501_s7 + $0x58] sm:$0xff] }
 0x84d   : > { %v3314_v56 = vadd.f32 %v8022_v46, %v3305_v37  ;;  %v7821_v37 = vld [vmem:[%s10501_s7 + $0xd0] sm:$0xff] }
 0x84f   : > { %v3319_v28 = vmax.f32 %v3314_v56, 0.0 }
 0x852   : > { %v3296_v1 = vpop.f32.mrf.mxu1 }
 0x853   : > { %v3306_v38 = vadd.f32 %v3296_v1, %v3164_v10  ;;  %v7805_v1 = vld [vmem:[%s10501_s7 + $0x68] sm:$0xff]  ;;  %v7816_v10 = vld [vmem:[%s10501_s7 + $0xb0] sm:$0xff] }
 0x854   : > { %3626 = vmatpush.bf16.msra.mxu0 %v7805_v1 }
 0x855   : > { %v3315_v54 = vadd.f32 %v8022_v46, %v3306_v38 }
 0x857   : > { %v3320_v21 = vmax.f32 %v3315_v54, 0.0  ;;  %v7820_v54 = vld [vmem:[%s10501_s7 + $0xc8] sm:$0xff] }
 0x858   : > { %3627 = vmatpush.bf16.msra.mxu0 %v7804_v19 }
 0x859   : > { %v9415_v57 = vpack.c.bf16 %v3320_v21, %v3319_v28 }
 0x85a   : > { %v3299_v0 = vpop.f32.mrf.mxu1 }
 0x85b   : > { %v3307_v47 = vadd.f32 %v3299_v0, %v3165_v50  ;;  %v7814_v0 = vld [vmem:[%s10501_s7 + $0xa0] sm:$0xff] }
 0x85d   : > { %v3316_v26 = vadd.f32 %v8022_v46, %v3307_v47  ;;  %v7822_v47 = vld [vmem:[%s10501_s7 + $0xd8] sm:$0xff] }
 0x85f   : > { %v3321_v53 = vmax.f32 %v3316_v26, 0.0 }
 0x861   : > { %v3324_v17 = vpack.c.bf16 %v3321_v53, %v3321_v53  ;;  %v7819_v53 = vld [vmem:[%s10501_s7 + $0xc0] sm:$0xff] }
 0x862   : > { %v3301_v49 = vpop.f32.mrf.mxu1 }
 0x863   : > { %v9410_v42 = vsel %vm1081_vm0, %v3324_v17, 0  ;;  %v7827_v17 = vld [vmem:[%s10501_s7 + $0xf8] sm:$0xff] }
 0x864   : > { %3344 = vmatpush.bf16.msra.mxu3 %v9410_v42  ;;  %3378 = vmatpush.bf16.msra.mxu2 %v9410_v42 }
 0x865   : > { %3652 = vmatpush.bf16.msrb.mxu1 %v9410_v42 }
 0x868   : > { %3345 = vmatpush.bf16.msra.mxu3 %v9415_v57  ;;  %3379 = vmatpush.bf16.msra.mxu2 %v9415_v57 }
 0x869   : > { %3653 = vmatpush.bf16.msrb.mxu1 %v9415_v57 }
 0x86c   : > { %3346 = vmatpush.bf16.msra.mxu3 %v3322_v4  ;;  %3380 = vmatpush.bf16.msra.mxu2 %v3322_v4 }
 0x86d   : > { %3654 = vmatpush.bf16.msrb.mxu1 %v3322_v4 }
 0x86f   : > { %6661 = vmatmul.msk.bf16.vlgmr.msra.gmra.mxu2 %vm3332_vm3, %v7793_v43  ;;  %6654 = vmatmul.msk.bf16.vlgmr.msra.gmra.mxu3 %vm3332_vm3, %v7788_v61 }
 0x870   : > { %3429 = vmatpush.bf16.msrb.mxu3 %v7797_v41  ;;  %6774 = vmatmul.msk.bf16.vlgmr.msrb.gmra.mxu1 %vm3332_vm3, %v7808_v3  ;;  %v7824_v41 = vld [vmem:[%s10501_s7 + $0xe0] sm:$0xff] }
 0x871   : > { %3808 = vmatpush.bf16.msra.mxu1 %v9410_v42  ;;  %3546 = vmatpush.bf16.msrb.mxu2 %v7802_v11 }
 0x874   : > { %3430 = vmatpush.bf16.msrb.mxu3 %v7796_v35 }
 0x875   : > { %3809 = vmatpush.bf16.msra.mxu1 %v9415_v57  ;;  %3547 = vmatpush.bf16.msrb.mxu2 %v7801_v22 }
 0x878   : > { %3431 = vmatpush.bf16.msrb.mxu3 %v7795_v52 }
 0x879   : > { %3810 = vmatpush.bf16.msra.mxu1 %v3322_v4  ;;  %3548 = vmatpush.bf16.msrb.mxu2 %v7800_v16 }
 0x87c   : > { %3432 = vmatpush.bf16.msrb.mxu3 %v7794_v60 }
 0x87d   : > { %3964 = vmatpush.bf16.msrb.mxu1 %v9410_v42  ;;  %3549 = vmatpush.bf16.msrb.mxu2 %v7799_v25 }
 0x880   : > { %3496 = vmatpush.bf16.msra.mxu3 %v9410_v42  ;;  %6838 = vmatmul.msk.bf16.vlgmr.msra.gmra.mxu1 %vm3332_vm3, %v7818_v34  ;;  %v7839_v34 = vld [vmem:[%s10504_s10 + $0x30] sm:$0xff] }
 0x881   : > { %3965 = vmatpush.bf16.msrb.mxu1 %v9415_v57  ;;  %3702 = vmatpush.bf16.msra.mxu2 %v7812_v13 }
 0x884   : > { %3497 = vmatpush.bf16.msra.mxu3 %v9415_v57 }
 0x885   : > { %3966 = vmatpush.bf16.msrb.mxu1 %v3322_v4  ;;  %3703 = vmatpush.bf16.msra.mxu2 %v7811_v33 }
 0x888   : > { %3498 = vmatpush.bf16.msra.mxu3 %v3322_v4 }
 0x889   : > { %3704 = vmatpush.bf16.msra.mxu2 %v7810_v44 }
 0x88d   : > { %3705 = vmatpush.bf16.msra.mxu2 %v7809_v62 }
 0x890   : > { %6902 = vmatmul.msk.bf16.vlgmr.msrb.gmra.mxu1 %vm3332_vm3, %v7828_v14 }
 0x8ed   : > { %v3656_v38 = vpop.f32.mrf.mxu1 }
 0x8f2   : > { %v3382_v2 = vpop.f32.mrf.mxu2  ;;  %v3348_v8 = vpop.f32.mrf.mxu3 }
 0x8f5   : > { %v3658_v26 = vpop.f32.mrf.mxu1 }
 0x8f6   : > { %v3661_v49 = vpack.c.bf16 %v3658_v26, %v3656_v38 }
 0x8fa   : > { %v3384_v9 = vpop.f32.mrf.mxu2  ;;  %v3350_v31 = vpop.f32.mrf.mxu3 }
 0x8fb   : > { %v3387_v59 = vpack.c.bf16 %v3384_v9, %v3382_v2  ;;  %v3353_v20 = vpack.c.bf16 %v3350_v31, %v3348_v8 }
 0x8fd   : > { %6686 = vmatmul.msk.bf16.vlgmr.msrb.gmra.mxu3 %vm3421_vm4, %v3387_v59  ;;  %6703 = vmatmul.msk.bf16.vlgmr.msrb.gmra.mxu0 %vm3421_vm4, %v3353_v20  ;;  %v3812_v56 = vpop.f32.mrf.mxu1 }
 0x8fe   : > { %3574 = vmatpush.bf16.msrb.mxu3 %v9410_v42  ;;  %3780 = vmatpush.bf16.msrb.mxu0 %v7817_v23 }
 0x902   : > { %3575 = vmatpush.bf16.msrb.mxu3 %v9415_v57  ;;  %3781 = vmatpush.bf16.msrb.mxu0 %v7816_v10 }
 0x905   : > { %v3814_v12 = vpop.f32.mrf.mxu1 }
 0x906   : > { %3576 = vmatpush.bf16.msrb.mxu3 %v3322_v4  ;;  %3782 = vmatpush.bf16.msrb.mxu0 %v7815_v39  ;;  %v3817_v3 = vpack.c.bf16 %v3814_v12, %v3812_v56  ;;  %v4035_v56 = vld [vmem:[%s10503_s9] sm:$0x3]  ;;  %v7842_v12 = vld [vmem:[%s10504_s10 + $0x48] sm:$0xff] }
 0x90a   : > { %3783 = vmatpush.bf16.msrb.mxu0 %v7814_v0 }
 0x90d   : > { %6710 = vmatmul.msk.bf16.vlgmr.msra.gmra.mxu3 %vm3332_vm3, %v7798_v27  ;;  %v3968_v35 = vpop.f32.mrf.mxu1  ;;  %v7840_v27 = vld [vmem:[%s10504_s10 + $0x38] sm:$0xff] }
 0x90e   : > { %3730 = vmatpush.bf16.msra.mxu3 %v9410_v42  ;;  %4121 = vmatpush.bf16.msra.mxu1 %v7840_v27  ;;  %v7851_v27 = vld [vmem:[%s10504_s10 + $0x90] sm:$0xff] }
 0x912   : > { %3731 = vmatpush.bf16.msra.mxu3 %v9415_v57  ;;  %4122 = vmatpush.bf16.msra.mxu1 %v7839_v34  ;;  %v7846_v34 = vld [vmem:[%s10504_s10 + $0x68] sm:$0xff] }
 0x915   : > { %v3970_v60 = vpop.f32.mrf.mxu1 }
 0x916   : > { %3732 = vmatpush.bf16.msra.mxu3 %v3322_v4  ;;  %v3973_v51 = vpack.c.bf16 %v3970_v60, %v3968_v35  ;;  %v7135_v60 = vld [vmem:[%s10503_s9 + $0x10] sm:$0x3] }
 0x91d   : > { %6742 = vmatmul.msk.bf16.vlgmr.msrb.gmra.mxu3 %vm3332_vm3, %v7803_v29 }
 0x91e   : > { %3886 = vmatpush.bf16.msrb.mxu3 %v9410_v42  ;;  %v7826_v42 = vld [vmem:[%s10501_s7 + $0xf0] sm:$0xff] }
 0x922   : > { %3887 = vmatpush.bf16.msrb.mxu3 %v9415_v57  ;;  %v7830_v57 = vld [vmem:[%s10501_s7 + $0x108] sm:$0xff] }
 0x926   : > { %3888 = vmatpush.bf16.msrb.mxu3 %v3322_v4  ;;  %v7829_v4 = vld [vmem:[%s10501_s7 + $0x100] sm:$0xff] }
 0x92d   : > { %6806 = vmatmul.msk.bf16.vlgmr.msra.gmra.mxu3 %vm3332_vm3, %v7813_v30  ;;  %v7838_v30 = vld [vmem:[%s10504_s10 + $0x28] sm:$0xff] }
 0x92e   : > { %4123 = vmatpush.bf16.msra.mxu1 %v7838_v30  ;;  %v7849_v30 = vld [vmem:[%s10504_s10 + $0x80] sm:$0xff] }
 0x93d   : > { %6870 = vmatmul.msk.bf16.vlgmr.msrb.gmra.mxu3 %vm3332_vm3, %v7823_v32  ;;  %v7837_v32 = vld [vmem:[%s10504_s10 + $0x20] sm:$0xff] }
 0x93e   : > { %4124 = vmatpush.bf16.msra.mxu1 %v7837_v32 }
 0x97a   : > { %v3475_v7 = vpop.f32.mrf.mxu0 }
 0x980   : > { %v9518_v5 = vpop.f32.mrf.mxu3 }
 0x981   : > { %v3476_v16 = vadd.f32 %v3475_v7, %v9518_v5  ;;  %v8023_v5 = vld [vmem:[%s10502_s8] ss:$0 sm:$0xff] }
 0x982   : > { %v3477_v8 = vpop.f32.mrf.mxu0 }
 0x988   : > { %v9532_v63 = vpop.f32.mrf.mxu3 }
 0x989   : > { %v3478_v6 = vadd.f32 %v3477_v8, %v9532_v63  ;;  %v7054_v8 = vld [vmem:[%s10503_s9 + $0xa] sm:$0x3] }
 0x990   : > { %v3500_v50 = vpop.f32.mrf.mxu3 }
 0x998   : > { %v3502_v46 = vpop.f32.mrf.mxu3 }
 0x999   : > { %v3505_v18 = vpack.c.bf16 %v3502_v46, %v3500_v50 }
 0x99b   : > { %6735 = vmatmul.msk.bf16.vlgmr.msrb.gmra.mxu2 %vm3421_vm4, %v3505_v18 }
 0x99c   : > { %3858 = vmatpush.bf16.msrb.mxu2 %v7822_v47 }
 0x9a0   : > { %v3578_v24 = vpop.f32.mrf.mxu3  ;;  %3859 = vmatpush.bf16.msrb.mxu2 %v7821_v37 }
 0x9a4   : > { %3860 = vmatpush.bf16.msrb.mxu2 %v7820_v54 }
 0x9a8   : > { %v3580_v15 = vpop.f32.mrf.mxu3  ;;  %3861 = vmatpush.bf16.msrb.mxu2 %v7819_v53 }
 0x9a9   : > { %v3583_v21 = vpack.c.bf16 %v3580_v15, %v3578_v24 }
 0x9ab   : > { %6767 = vmatmul.msk.bf16.vlgmr.msra.gmra.mxu0 %vm3421_vm4, %v3583_v21  ;;  %6799 = vmatmul.msk.bf16.vlgmr.msra.gmra.mxu2 %vm3421_vm4, %v3661_v49  ;;  %v7027_v21 = vld [vmem:[%s10503_s9 + $0x8] sm:$0x3]  ;;  %v7836_v49 = vld [vmem:[%s10504_s10 + $0x18] sm:$0xff] }
 0x9ac   : > { %3936 = vmatpush.bf16.msra.mxu0 %v7827_v17  ;;  %4014 = vmatpush.bf16.msra.mxu2 %v7832_v58  ;;  %v6929_v17 = vld [vmem:[%s10503_s9 + $0x2] sm:$0x3]  ;;  %v6973_v58 = vld [vmem:[%s10503_s9 + $0x4] sm:$0x3] }
 0x9b0   : > { %v3734_v28 = vpop.f32.mrf.mxu3  ;;  %3937 = vmatpush.bf16.msra.mxu0 %v7826_v42  ;;  %4015 = vmatpush.bf16.msra.mxu2 %v7831_v40  ;;  %v7835_v42 = vld [vmem:[%s10504_s10 + $0x10] sm:$0xff]  ;;  %v7834_v40 = vld [vmem:[%s10504_s10 + $0x8] sm:$0xff] }
 0x9b4   : > { %3938 = vmatpush.bf16.msra.mxu0 %v7825_v36  ;;  %4016 = vmatpush.bf16.msra.mxu2 %v7830_v57  ;;  %v7844_v36 = vld [vmem:[%s10504_s10 + $0x58] sm:$0xff]  ;;  %v7843_v57 = vld [vmem:[%s10504_s10 + $0x50] sm:$0xff] }
 0x9b8   : > { %v3736_v43 = vpop.f32.mrf.mxu3  ;;  %3939 = vmatpush.bf16.msra.mxu0 %v7824_v41  ;;  %4017 = vmatpush.bf16.msra.mxu2 %v7829_v4  ;;  %v7841_v41 = vld [vmem:[%s10504_s10 + $0x40] sm:$0xff]  ;;  %v7081_v4 = vld [vmem:[%s10503_s9 + $0xc] sm:$0x3] }
 0x9b9   : > { %v3739_v61 = vpack.c.bf16 %v3736_v43, %v3734_v28  ;;  %v7833_v28 = vld [vmem:[%s10504_s10] sm:$0xff] }
 0x9bb   : > { %6831 = vmatmul.msk.bf16.vlgmr.msrb.gmra.mxu0 %vm3421_vm4, %v3739_v61  ;;  %6863 = vmatmul.msk.bf16.vlgmr.msrb.gmra.mxu2 %vm3421_vm4, %v3817_v3 }
 0x9bc   : > { %4161 = vmatpush.bf16.msrb.mxu2 %v7836_v49  ;;  %v7861_v49 = vld [vmem:[%s10504_s10 + $0xe0] sm:$0xff] }
 0x9c0   : > { %v3890_v52 = vpop.f32.mrf.mxu3  ;;  %4162 = vmatpush.bf16.msrb.mxu2 %v7835_v42 }
 0x9c4   : > { %4163 = vmatpush.bf16.msrb.mxu2 %v7834_v40 }
 0x9c8   : > { %v3892_v48 = vpop.f32.mrf.mxu3  ;;  %4164 = vmatpush.bf16.msrb.mxu2 %v7833_v28 }
 0x9c9   : > { %v3895_v55 = vpack.c.bf16 %v3892_v48, %v3890_v52 }
 0x9cb   : > { %6895 = vmatmul.msk.bf16.vlgmr.msra.gmra.mxu0 %vm3421_vm4, %v3895_v55  ;;  %6927 = vmatmul.msk.bf16.vlgmr.msra.gmra.mxu2 %vm3421_vm4, %v3973_v51  ;;  %v7000_v55 = vld [vmem:[%s10503_s9 + $0x6] sm:$0x3] }
 0xa1e   : > { %v3551_v2 = vpop.f32.mrf.mxu2 }
 0xa1f   : > { %v3556_v45 = vadd.f32 %v3551_v2, %v3476_v16  ;;  %v7860_v16 = vld [vmem:[%s10504_s10 + $0xd8] sm:$0xff] }
 0xa26   : > { %v3553_v9 = vpop.f32.mrf.mxu2 }
 0xa27   : > { %v3557_v1 = vadd.f32 %v3553_v9, %v3478_v6  ;;  %v7108_v9 = vld [vmem:[%s10503_s9 + $0xe] sm:$0x3] }
 0xa28   : > { %v3629_v31 = vpop.f32.mrf.mxu0 }
 0xa29   : > { %v3634_v33 = vadd.f32 %v3629_v31, %v3556_v45  ;;  %v7848_v31 = vld [vmem:[%s10504_s10 + $0x78] sm:$0xff]  ;;  %v7859_v45 = vld [vmem:[%s10504_s10 + $0xd0] sm:$0xff] }
 0xa2a   : > { %4298 = vmatpush.bf16.msra.mxu2 %v7848_v31  ;;  %v7876_v31 = vld [vmem:[%s10506_s12 + $0x34] sm:$0xf0] }
 0xa2e   : > { %v3707_v59 = vpop.f32.mrf.mxu2 }
 0xa2f   : > { %v3712_v44 = vadd.f32 %v3707_v59, %v3634_v33  ;;  %v7852_v59 = vld [vmem:[%s10504_s10 + $0x98] sm:$0xff]  ;;  %v7858_v33 = vld [vmem:[%s10504_s10 + $0xc8] sm:$0xff] }
 0xa30   : > { %v3631_v20 = vpop.f32.mrf.mxu0 }
 0xa31   : > { %v3635_v19 = vadd.f32 %v3631_v20, %v3557_v1  ;;  %v7847_v20 = vld [vmem:[%s10504_s10 + $0x70] sm:$0xff]  ;;  %v7853_v1 = vld [vmem:[%s10504_s10 + $0xa0] sm:$0xff] }
 0xa32   : > { %4299 = vmatpush.bf16.msra.mxu2 %v7847_v20  ;;  %v7190_v20 = vld [vmem:[%s10506_s12 + $0x38] sm:$0xf0] }
 0xa36   : > { %v3709_v29 = vpop.f32.mrf.mxu2  ;;  %4300 = vmatpush.bf16.msra.mxu2 %v7846_v34 }
 0xa37   : > { %v3713_v10 = vadd.f32 %v3709_v29, %v3635_v19  ;;  %v7850_v29 = vld [vmem:[%s10504_s10 + $0x88] sm:$0xff] }
 0xa38   : > { %v3785_v14 = vpop.f32.mrf.mxu0 }
 0xa39   : > { %v3790_v62 = vadd.f32 %v3785_v14, %v3712_v44  ;;  %v7845_v14 = vld [vmem:[%s10504_s10 + $0x60] sm:$0xff] }
 0xa3a   : > { %4301 = vmatpush.bf16.msra.mxu2 %v7845_v14  ;;  %v7857_v44 = vld [vmem:[%s10504_s10 + $0xc0] sm:$0xff]  ;;  %v7871_v14 = vld [vmem:[%s10506_s12 + $0xc] sm:$0xf0] }
 0xa3e   : > { %v3863_v11 = vpop.f32.mrf.mxu2 }
 0xa3f   : > { %v3868_v50 = vadd.f32 %v3863_v11, %v3790_v62 }
 0xa40   : > { %v3787_v22 = vpop.f32.mrf.mxu0 }
 0xa41   : > { %v3791_v39 = vadd.f32 %v3787_v22, %v3713_v10  ;;  %v7856_v22 = vld [vmem:[%s10504_s10 + $0xb8] sm:$0xff] }
 0xa42   : > { %v7868_v10 = vld [vmem:[%s10504_s10 + $0x118] sm:$0xff] }
 0xa46   : > { %v3865_v25 = vpop.f32.mrf.mxu2 }
 0xa47   : > { %v3869_v46 = vadd.f32 %v3865_v25, %v3791_v39  ;;  %v7855_v25 = vld [vmem:[%s10504_s10 + $0xb0] sm:$0xff] }
 0xa48   : > { %v3941_v13 = vpop.f32.mrf.mxu0 }
 0xa49   : > { %v3946_v38 = vadd.f32 %v3941_v13, %v3868_v50  ;;  %v7854_v13 = vld [vmem:[%s10504_s10 + $0xa8] sm:$0xff]  ;;  %v7867_v50 = vld [vmem:[%s10504_s10 + $0x110] sm:$0xff] }
 0xa4e   : > { %v4019_v23 = vpop.f32.mrf.mxu2 }
 0xa4f   : > { %v4024_v47 = vadd.f32 %v4019_v23, %v3946_v38 }
 0xa50   : > { %v3943_v0 = vpop.f32.mrf.mxu0 }
 0xa51   : > { %v3947_v18 = vadd.f32 %v3943_v0, %v3869_v46  ;;  %v4030_v63 = vadd.f32 %v8023_v5, %v4024_v47  ;;  %v7866_v0 = vld [vmem:[%s10504_s10 + $0x108] sm:$0xff] }
 0xa53   : > { %v4032_v54 = vmax.f32 %v4030_v63, 0.0 }
 0xa56   : > { %v4021_v37 = vpop.f32.mrf.mxu2 }
 0xa57   : > { %v4025_v26 = vadd.f32 %v4021_v37, %v3947_v18  ;;  %v7864_v37 = vld [vmem:[%s10504_s10 + $0xf8] sm:$0xff] }
 0xa59   : > { %v4031_v24 = vadd.f32 %v8023_v5, %v4025_v26  ;;  %v7865_v5 = vld [vmem:[%s10504_s10 + $0x100] sm:$0xff] }
 0xa5b   : > { %v4033_v53 = vmax.f32 %v4031_v24, 0.0 }
 0xa5d   : > { %v4034_v15 = vpack.c.bf16 %v4033_v53, %v4032_v54  ;;  %v7863_v54 = vld [vmem:[%s10504_s10 + $0xf0] sm:$0xff] }
 0xa5f   : > { %4047 = vmatpush.bf16.msra.mxu3 %v4034_v15  ;;  %4074 = vmatpush.bf16.msrb.mxu0 %v4034_v15 }
 0xa60   : > { %4251 = vmatpush.bf16.msrb.mxu1 %v4034_v15 }
 0xa62   : > { %6928 = vmatmul.msk.bf16.vlgmr.msra.gmra.mxu3 %vm4036_vm5, %v4035_v56  ;;  %6930 = vmatmul.msk.bf16.vlgmr.msrb.gmra.mxu0 %vm4036_vm5, %v6929_v17 }
 0xa63   : > { %4182 = vmatpush.bf16.msrb.mxu3 %v4034_v15  ;;  %4229 = vmatpush.bf16.msra.mxu0 %v7844_v36 }
 0xa67   : > { %4320 = vmatpush.bf16.msra.mxu3 %v4034_v15  ;;  %4230 = vmatpush.bf16.msra.mxu0 %v7843_v57 }
 0xa6b   : > { %4231 = vmatpush.bf16.msra.mxu0 %v7842_v12 }
 0xa6f   : > { %4232 = vmatpush.bf16.msra.mxu0 %v7841_v41 }
 0xa72   : > { %6974 = vmatmul.msk.bf16.vlgmr.msrb.gmra.mxu3 %vm4036_vm5, %v6973_v58  ;;  %v7862_v58 = vld [vmem:[%s10504_s10 + $0xe8] sm:$0xff] }
 0xa73   : > { %4458 = vmatpush.bf16.msrb.mxu3 %v4034_v15  ;;  %4367 = vmatpush.bf16.msrb.mxu0 %v7852_v59  ;;  %v7874_v59 = vld [vmem:[%s10506_s12 + $0x2c] sm:$0xf] }
 0xa74   : > { %v7193_v34 = vor.u32 %v7874_v59, %v7190_v20  ;;  %v7252_v20 = vld [vmem:[%s10506_s12 + $0x80] sm:$0xf] }
 0xa77   : > { %4368 = vmatpush.bf16.msrb.mxu0 %v7851_v27 }
 0xa7b   : > { %4369 = vmatpush.bf16.msrb.mxu0 %v7850_v29  ;;  %v7164_v29 = vld [vmem:[%s10506_s12] sm:$0xf] }
 0xa7f   : > { %4370 = vmatpush.bf16.msrb.mxu0 %v7849_v30  ;;  %v7869_v30 = vld [vmem:[%s10506_s12 + $0x4] sm:$0xf] }
 0xa82   : > { %7028 = vmatmul.msk.bf16.vlgmr.msra.gmra.mxu3 %vm4036_vm5, %v7027_v21 }
 0xa83   : > { %4596 = vmatpush.bf16.msra.mxu3 %v4034_v15 }
 0xa92   : > { %7082 = vmatmul.msk.bf16.vlgmr.msrb.gmra.mxu3 %vm4036_vm5, %v7081_v4 }
 0xaa2   : > { %7136 = vmatmul.msk.bf16.vlgmr.msra.gmra.mxu3 %vm4036_vm5, %v7135_v60  ;;  %v7180_v60 = vld [vmem:[%s10506_s12 + $0x20] sm:$0xf] }
 0xadf   : > { %v4076_v43 = vpop.f32.mrf.mxu0 }
 0xae0   : > { %v4080_v61 = vpack.c.bf16 %v4076_v43, %v4076_v43 }
 0xae2   : > { %6955 = vmatmul.msk.bf16.vlgmr.msra.gmra.mxu1 %vm3421_vm4, %v4080_v61 }
 0xae3   : > { %4389 = vmatpush.bf16.msra.mxu1 %v4034_v15 }
 0xae5   : > { %v4049_v3 = vpop.f32.mrf.mxu3 }
 0xae6   : > { %v4053_v35 = vpack.c.bf16 %v4049_v3, %v4049_v3 }
 0xae7   : > { %v4078_v52 = vpop.f32.mrf.mxu0 }
 0xae8   : > { %6972 = vmatmul.msk.bf16.vlgmr.msrb.gmra.mxu2 %vm3421_vm4, %v4053_v35 }
 0xae9   : > { %4436 = vmatpush.bf16.msrb.mxu2 %v7856_v22  ;;  %v7172_v22 = vld [vmem:[%s10506_s12 + $0x8] sm:$0xf] }
 0xaed   : > { %v4051_v48 = vpop.f32.mrf.mxu3  ;;  %4437 = vmatpush.bf16.msrb.mxu2 %v7855_v25 }
 0xaee   : > { %v7875_v48 = vld [vmem:[%s10506_s12 + $0x2c] sm:$0xf0] }
 0xaf1   : > { %4438 = vmatpush.bf16.msrb.mxu2 %v7854_v13 }
 0xaf2   : > { %7001 = vmatmul.msk.bf16.vlgmr.msrb.gmra.mxu1 %vm4036_vm5, %v7000_v55  ;;  %v7873_v55 = vld [vmem:[%s10506_s12 + $0x24] sm:$0xf] }
 0xaf3   : > { %4527 = vmatpush.bf16.msrb.mxu1 %v4034_v15 }
 0xaf5   : > { %v4184_v51 = vpop.f32.mrf.mxu3  ;;  %4439 = vmatpush.bf16.msrb.mxu2 %v7853_v1 }
 0xaf6   : > { %v4188_v7 = vpack.c.bf16 %v4184_v51, %v4184_v51  ;;  %v7181_v51 = vor.u32 %v7875_v48, %v7180_v60 }
 0xaf8   : > { %6999 = vmatmul.msk.bf16.vlgmr.msra.gmra.mxu0 %vm3421_vm4, %v4188_v7  ;;  %v7182_v7 = vld [vmem:[%s10506_s12 + $0x30] sm:$0xf0] }
 0xaf9   : > { %4505 = vmatpush.bf16.msra.mxu0 %v7860_v16  ;;  %v7872_v16 = vld [vmem:[%s10506_s12 + $0x14] sm:$0xf0] }
 0xafa   : > { %v7173_v13 = vor.u32 %v7872_v16, %v7172_v22  ;;  %v7886_v22 = vld [vmem:[%s10506_s12 + $0x8c] sm:$0xf]  ;;  %v7262_v16 = vld [vmem:[%s10506_s12 + $0x98] sm:$0xf0] }
 0xafd   : > { %v4186_v2 = vpop.f32.mrf.mxu3  ;;  %4506 = vmatpush.bf16.msra.mxu0 %v7859_v45 }
 0xafe   : > { %v7188_v2 = vld [vmem:[%s10506_s12 + $0x28] sm:$0xf] }
 0xaff   : > { %v7189_v27 = vor.u32 %v7876_v31, %v7188_v2  ;;  %v7278_v2 = vld [vmem:[%s10506_s12 + $0xb8] sm:$0xf0] }
 0xb01   : > { %4507 = vmatpush.bf16.msra.mxu0 %v7858_v33  ;;  %4744 = vmatpush.bf16.msrb.mxu3 %v7189_v27  ;;  %v7174_v33 = vld [vmem:[%s10506_s12 + $0x18] sm:$0xf0]  ;;  %v7887_v27 = vld [vmem:[%s10506_s12 + $0x8c] sm:$0xf0] }
 0xb02   : > { %7055 = vmatmul.msk.bf16.vlgmr.msra.gmra.mxu1 %vm4036_vm5, %v7054_v8 }
 0xb03   : > { %4718 = vmatpush.bf16.msra.mxu1 %v7181_v51 }
 0xb05   : > { %v4322_v32 = vpop.f32.mrf.mxu3  ;;  %4508 = vmatpush.bf16.msra.mxu0 %v7857_v44  ;;  %4745 = vmatpush.bf16.msrb.mxu3 %v7173_v13  ;;  %v7224_v44 = vld [vmem:[%s10506_s12 + $0x60] sm:$0xf] }
 0xb06   : > { %v4326_v11 = vpack.c.bf16 %v4322_v32, %v4322_v32  ;;  %v7165_v32 = vor.u32 %v7871_v14, %v7164_v29  ;;  %v7885_v14 = vld [vmem:[%s10506_s12 + $0x84] sm:$0xf] }
 0xb08   : > { %7053 = vmatmul.msk.bf16.vlgmr.msrb.gmra.mxu0 %vm3421_vm4, %v4326_v11  ;;  %v7166_v11 = vld [vmem:[%s10506_s12 + $0x10] sm:$0xf0]  ;;  %4719 = vmatpush.bf16.msra.mxu1 %v7165_v32  ;;  %v7260_v32 = vld [vmem:[%s10506_s12 + $0x88] sm:$0xf] }
 0xb09   : > { %4643 = vmatpush.bf16.msrb.mxu0 %v7868_v10  ;;  %v7169_v45 = vor.u32 %v7869_v30, %v7166_v11  ;;  %v7226_v10 = vld [vmem:[%s10506_s12 + $0x70] sm:$0xf0]  ;;  %v7888_v11 = vld [vmem:[%s10506_s12 + $0x94] sm:$0xf0] }
 0xb0a   : > { %v7254_v30 = vld [vmem:[%s10506_s12 + $0x90] sm:$0xf0]  ;;  %v7261_v13 = vor.u32 %v7888_v11, %v7260_v32  ;;  %v7928_v11 = vld [vmem:[%s10508_s14 + $0xd4] sm:$0xf0] }
 0xb0d   : > { %v4324_v6 = vpop.f32.mrf.mxu3  ;;  %4644 = vmatpush.bf16.msrb.mxu0 %v7867_v50  ;;  %v7232_v50 = vld [vmem:[%s10506_s12 + $0x68] sm:$0xf] }
 0xb0e   : > { %v7870_v6 = vld [vmem:[%s10506_s12 + $0xc] sm:$0xf] }
 0xb0f   : > { %v7177_v1 = vor.u32 %v7870_v6, %v7174_v33  ;;  %v7265_v6 = vor.u32 %v7886_v22, %v7262_v16  ;;  %v7500_v22 = vld [vmem:[%s10508_s14 + $0x150] sm:$0xf]  ;;  %v7944_v16 = vld [vmem:[%s10508_s14 + $0x154] sm:$0xf0] }
 0xb11   : > { %4645 = vmatpush.bf16.msrb.mxu0 %v7866_v0 }
 0xb12   : > { %7109 = vmatmul.msk.bf16.vlgmr.msrb.gmra.mxu1 %vm4036_vm5, %v7108_v9  ;;  %v7185_v9 = vor.u32 %v7873_v55, %v7182_v7  ;;  %v7892_v55 = vld [vmem:[%s10506_s12 + $0xb4] sm:$0xf0]  ;;  %v7890_v7 = vld [vmem:[%s10506_s12 + $0xac] sm:$0xf] }
 0xb13   : > { %v7281_v29 = vor.u32 %v7890_v7, %v7278_v2  ;;  %v7930_v2 = vld [vmem:[%s10508_s14 + $0xe4] sm:$0xf0] }
 0xb15   : > { %v4460_v62 = vpop.f32.mrf.mxu3  ;;  %4646 = vmatpush.bf16.msrb.mxu0 %v7865_v5  ;;  %v7208_v5 = vld [vmem:[%s10506_s12 + $0x40] sm:$0xf] }
 0xb16   : > { %v4464_v23 = vpack.c.bf16 %v4460_v62, %v4460_v62  ;;  %v7881_v62 = vld [vmem:[%s10506_s12 + $0x64] sm:$0xf] }
 0xb18   : > { %7107 = vmatmul.msk.bf16.vlgmr.msra.gmra.mxu0 %vm3421_vm4, %v4464_v23 }
 0xb19   : > { %4757 = vmatpush.bf16.msra.mxu0 %v7193_v34 }
 0xb1d   : > { %v4462_v38 = vpop.f32.mrf.mxu3  ;;  %4758 = vmatpush.bf16.msra.mxu0 %v7177_v1 }
 0xb1e   : > { %v7229_v38 = vor.u32 %v7881_v62, %v7226_v10  ;;  %v7897_v62 = vld [vmem:[%s10506_s12 + $0xe4] sm:$0xf]  ;;  %v7320_v10 = vld [vmem:[%s10506_s12 + $0xe8] sm:$0xf] }
 0xb25   : > { %v4598_v26 = vpop.f32.mrf.mxu3 }
 0xb26   : > { %v4602_v24 = vpack.c.bf16 %v4598_v26, %v4598_v26  ;;  %v7877_v26 = vld [vmem:[%s10506_s12 + $0x44] sm:$0xf] }
 0xb28   : > { %7161 = vmatmul.msk.bf16.vlgmr.msrb.gmra.mxu0 %vm3421_vm4, %v4602_v24  ;;  %v7210_v24 = vld [vmem:[%s10506_s12 + $0x50] sm:$0xf0] }
 0xb2d   : > { %v4600_v21 = vpop.f32.mrf.mxu3 }
 0xb5f   : > { %v4126_v19 = vpop.f32.mrf.mxu1 }
 0xb67   : > { %v4128_v39 = vpop.f32.mrf.mxu1 }
 0xb68   : > { %v7884_v39 = vld [vmem:[%s10506_s12 + $0x74] sm:$0xf0] }
 0xb69   : > { %v7233_v0 = vor.u32 %v7884_v39, %v7232_v50  ;;  %v7900_v50 = vld [vmem:[%s10506_s12 + $0xf4] sm:$0xf0]  ;;  %v7898_v39 = vld [vmem:[%s10506_s12 + $0xec] sm:$0xf] }
 0xb6b   : > { %v4166_v46 = vpop.f32.mrf.mxu2  ;;  %4868 = vmatpush.bf16.msra.mxu3 %v7233_v0 }
 0xb6c   : > { %v4167_v47 = vadd.f32 %v4166_v46, %v4126_v19  ;;  %v7883_v19 = vld [vmem:[%s10506_s12 + $0x6c] sm:$0xf0]  ;;  %v7882_v46 = vld [vmem:[%s10506_s12 + $0x6c] sm:$0xf] }
 0xb6d   : > { %v7225_v23 = vor.u32 %v7883_v19, %v7224_v44  ;;  %v7312_v44 = vld [vmem:[%s10506_s12 + $0xe0] sm:$0xf]  ;;  %v7899_v19 = vld [vmem:[%s10506_s12 + $0xec] sm:$0xf0] }
 0xb6f   : > { %v4253_v18 = vpop.f32.mrf.mxu1  ;;  %4842 = vmatpush.bf16.msrb.mxu1 %v7225_v23  ;;  %v7314_v23 = vld [vmem:[%s10506_s12 + $0xf0] sm:$0xf0] }
 0xb70   : > { %v4257_v63 = vpack.c.bf16 %v4253_v18, %v4253_v18 }
 0xb72   : > { %7026 = vmatmul.msk.bf16.vlgmr.msra.gmra.mxu2 %vm3421_vm4, %v4257_v63  ;;  %v7879_v63 = vld [vmem:[%s10506_s12 + $0x4c] sm:$0xf0] }
 0xb73   : > { %4574 = vmatpush.bf16.msra.mxu2 %v7864_v37  ;;  %v4168_v53 = vpop.f32.mrf.mxu2 }
 0xb74   : > { %v7213_v53 = vor.u32 %v7877_v26, %v7210_v24  ;;  %v7893_v26 = vld [vmem:[%s10506_s12 + $0xc4] sm:$0xf]  ;;  %v7298_v24 = vld [vmem:[%s10506_s12 + $0xd0] sm:$0xf0] }
 0xb75   : > { %v4234_v15 = vpop.f32.mrf.mxu0 }
 0xb76   : > { %v9739_v56 = vadd.f32 %v4234_v15, %v4167_v47  ;;  %v7234_v47 = vld [vmem:[%s10506_s12 + $0x78] sm:$0xf0]  ;;  %v7216_v15 = vld [vmem:[%s10506_s12 + $0x48] sm:$0xf] }
 0xb77   : > { %v4255_v17 = vpop.f32.mrf.mxu1  ;;  %4575 = vmatpush.bf16.msra.mxu2 %v7863_v54  ;;  %v7237_v37 = vor.u32 %v7882_v46, %v7234_v47  ;;  %v7209_v54 = vor.u32 %v7879_v63, %v7208_v5  ;;  %v7313_v46 = vor.u32 %v7899_v19, %v7312_v44  ;;  %v7317_v47 = vor.u32 %v7897_v62, %v7314_v23  ;;  %v7296_v5 = vld [vmem:[%s10506_s12 + $0xc0] sm:$0xf]  ;;  %v7910_v62 = vld [vmem:[%s10508_s14 + $0x44] sm:$0xf0] }
 0xb78   : > { %v7880_v17 = vld [vmem:[%s10506_s12 + $0x54] sm:$0xf0]  ;;  %v7364_v19 = vld [vmem:[%s10508_s14 + $0x40] sm:$0xf] }
 0xb79   : > { %4881 = vmatpush.bf16.msrb.mxu0 %v7237_v37  ;;  %v7217_v21 = vor.u32 %v7880_v17, %v7216_v15  ;;  %4843 = vmatpush.bf16.msrb.mxu1 %v7209_v54  ;;  %v7321_v37 = vor.u32 %v7900_v50, %v7320_v10  ;;  %v7304_v54 = vld [vmem:[%s10506_s12 + $0xc8] sm:$0xf]  ;;  %v7894_v15 = vld [vmem:[%s10506_s12 + $0xcc] sm:$0xf]  ;;  %v7306_v17 = vld [vmem:[%s10506_s12 + $0xd8] sm:$0xf0]  ;;  %v7365_v10 = vor.u32 %v7910_v62, %v7364_v19 }
 0xb7a   : > { %v7428_v23 = vld [vmem:[%s10508_s14 + $0xc0] sm:$0xf]  ;;  %v7926_v50 = vld [vmem:[%s10508_s14 + $0xc4] sm:$0xf0] }
 0xb7b   : > { %4576 = vmatpush.bf16.msra.mxu2 %v7862_v58  ;;  %v7878_v58 = vld [vmem:[%s10506_s12 + $0x4c] sm:$0xf]  ;;  %4869 = vmatpush.bf16.msra.mxu3 %v7217_v21  ;;  %v7301_v21 = vor.u32 %v7893_v26, %v7298_v24  ;;  %v7420_v26 = vld [vmem:[%s10508_s14 + $0xb0] sm:$0xf]  ;;  %v7934_v62 = vld [vmem:[%s10508_s14 + $0x104] sm:$0xf0] }
 0xb7d   : > { %v4236_v42 = vpop.f32.mrf.mxu0 }
 0xb7f   : > { %v4391_v40 = vpop.f32.mrf.mxu1  ;;  %4577 = vmatpush.bf16.msra.mxu2 %v7861_v49  ;;  %v7218_v49 = vld [vmem:[%s10506_s12 + $0x58] sm:$0xf0] }
 0xb80   : > { %v4395_v28 = vpack.c.bf16 %v4391_v40, %v4391_v40  ;;  %v7221_v42 = vor.u32 %v7878_v58, %v7218_v49 }
 0xb82   : > { %7080 = vmatmul.msk.bf16.vlgmr.msrb.gmra.mxu2 %vm3421_vm4, %v4395_v28  ;;  %4882 = vmatpush.bf16.msrb.mxu0 %v7221_v42  ;;  %v7309_v42 = vor.u32 %v7894_v15, %v7306_v17  ;;  %v7484_v15 = vld [vmem:[%s10508_s14 + $0x130] sm:$0xf]  ;;  %v7940_v17 = vld [vmem:[%s10508_s14 + $0x134] sm:$0xf0] }
 0xb83   : > { %4731 = vmatpush.bf16.msrb.mxu2 %v7185_v9 }
 0xb85   : > { %v9749_v4 = vpop.f32.mrf.mxu0 }
 0xb87   : > { %v4393_v36 = vpop.f32.mrf.mxu1  ;;  %4732 = vmatpush.bf16.msrb.mxu2 %v7169_v45  ;;  %v7257_v45 = vor.u32 %v7885_v14, %v7254_v30  ;;  %v7912_v14 = vld [vmem:[%s10508_s14 + $0x54] sm:$0xf0]  ;;  %v7436_v30 = vld [vmem:[%s10508_s14 + $0xd0] sm:$0xf] }
 0xb8d   : > { %v4374_v43 = vpop.f32.mrf.mxu0 }
 0xb8f   : > { %v4529_v57 = vpop.f32.mrf.mxu1 }
 0xb90   : > { %v4533_v12 = vpack.c.bf16 %v4529_v57, %v4529_v57 }
 0xb92   : > { %7134 = vmatmul.msk.bf16.vlgmr.msra.gmra.mxu2 %vm3421_vm4, %v4533_v12 }
 0xb93   : > { %4855 = vmatpush.bf16.msra.mxu2 %v7229_v38  ;;  %v7322_v38 = vld [vmem:[%s10506_s12 + $0xf8] sm:$0xf0] }
 0xb94   : > { %v7325_v63 = vor.u32 %v7898_v39, %v7322_v38  ;;  %v7492_v39 = vld [vmem:[%s10508_s14 + $0x140] sm:$0xf]  ;;  %v7429_v38 = vor.u32 %v7926_v50, %v7428_v23 }
 0xb95   : > { %v9751_v61 = vpop.f32.mrf.mxu0  ;;  %v7524_v23 = vld [vmem:[%s10508_s14 + $0x180] sm:$0xf] }
 0xb97   : > { %v4531_v41 = vpop.f32.mrf.mxu1  ;;  %4856 = vmatpush.bf16.msra.mxu2 %v7213_v53  ;;  %v7896_v53 = vld [vmem:[%s10506_s12 + $0xd4] sm:$0xf0] }
 0xb98   : > { %v7305_v49 = vor.u32 %v7896_v53, %v7304_v54  ;;  %v7924_v53 = vld [vmem:[%s10508_s14 + $0xb4] sm:$0xf0] }
 0xb9d   : > { %v4512_v3 = vpop.f32.mrf.mxu0 }
 0xb9e   : > { %v8024_v3 = vld [vmem:[%s10505_s11] ss:$0 sm:$0xff] }
 0xba5   : > { %v9753_v35 = vpop.f32.mrf.mxu0 }
 0xbad   : > { %v4650_v8 = vpop.f32.mrf.mxu0 }
 0xbf5   : > { %v9755_v52 = vpop.f32.mrf.mxu2 }
 0xbf6   : > { %v4307_v40 = vadd.f32 %v9755_v52, %v9739_v56  ;;  %v7268_v56 = vld [vmem:[%s10506_s12 + $0xa0] sm:$0xf]  ;;  %v7270_v52 = vld [vmem:[%s10506_s12 + $0xb0] sm:$0xf0] }
 0xbf8   : > { %v4376_v36 = vadd.f32 %v9749_v4, %v4307_v40  ;;  %v7891_v4 = vld [vmem:[%s10506_s12 + $0xac] sm:$0xf0] }
 0xbf9   : > { %v7269_v31 = vor.u32 %v7891_v4, %v7268_v56  ;;  %v7580_v4 = vld [vmem:[%s10508_s14 + $0x1f0] sm:$0xf] }
 0xbfd   : > { %v4305_v25 = vpop.f32.mrf.mxu2 }
 0xbfe   : > { %v7253_v25 = vor.u32 %v7887_v27, %v7252_v20  ;;  %v7572_v20 = vld [vmem:[%s10508_s14 + $0x1e0] sm:$0xf]  ;;  %v7962_v27 = vld [vmem:[%s10508_s14 + $0x1e4] sm:$0xf0] }
 0xc05   : > { %v4441_v18 = vpop.f32.mrf.mxu2 }
 0xc06   : > { %v4445_v57 = vadd.f32 %v4441_v18, %v4376_v36  ;;  %v7895_v18 = vld [vmem:[%s10506_s12 + $0xcc] sm:$0xf0] }
 0xc07   : > { %v7297_v58 = vor.u32 %v7895_v18, %v7296_v5  ;;  %v7388_v36 = vld [vmem:[%s10508_s14 + $0x70] sm:$0xf] }
 0xc08   : > { %v4514_v12 = vadd.f32 %v9751_v61, %v4445_v57  ;;  %v7889_v61 = vld [vmem:[%s10506_s12 + $0xa4] sm:$0xf]  ;;  %v7916_v57 = vld [vmem:[%s10508_s14 + $0x74] sm:$0xf0] }
 0xc09   : > { %v7273_v59 = vor.u32 %v7889_v61, %v7270_v52  ;;  %v7964_v61 = vld [vmem:[%s10508_s14 + $0x1f4] sm:$0xf0] }
 0xc0a   : > { %v7581_v52 = vor.u32 %v7964_v61, %v7580_v4 }
 0xc0d   : > { %v4443_v28 = vpop.f32.mrf.mxu2 }
 0xc15   : > { %v4579_v41 = vpop.f32.mrf.mxu2 }
 0xc16   : > { %v4583_v43 = vadd.f32 %v4579_v41, %v4514_v12  ;;  %v7452_v12 = vld [vmem:[%s10508_s14 + $0xf0] sm:$0xf]  ;;  %v7389_v41 = vor.u32 %v7916_v57, %v7388_v36 }
 0xc18   : > { %v4652_v60 = vadd.f32 %v9753_v35, %v4583_v43  ;;  %v7276_v35 = vld [vmem:[%s10506_s12 + $0xa8] sm:$0xf]  ;;  %v7932_v43 = vld [vmem:[%s10508_s14 + $0xf4] sm:$0xf0] }
 0xc19   : > { %v7277_v34 = vor.u32 %v7892_v55, %v7276_v35  ;;  %v7380_v35 = vld [vmem:[%s10508_s14 + $0x60] sm:$0xf]  ;;  %v7914_v55 = vld [vmem:[%s10508_s14 + $0x64] sm:$0xf0] }
 0xc1a   : > { %v4657_v48 = vadd.f32 %v8024_v3, %v4652_v60  ;;  %v7516_v3 = vld [vmem:[%s10508_s14 + $0x170] sm:$0xf]  ;;  %v7948_v60 = vld [vmem:[%s10508_s14 + $0x174] sm:$0xf0]  ;;  %v7381_v7 = vor.u32 %v7914_v55, %v7380_v35  ;;  %v7954_v35 = vld [vmem:[%s10508_s14 + $0x1a4] sm:$0xf0] }
 0xc1b   : > { %v7517_v56 = vor.u32 %v7948_v60, %v7516_v3  ;;  %v7922_v60 = vld [vmem:[%s10508_s14 + $0xa4] sm:$0xf0] }
 0xc1c   : > { %v4658_v51 = vmax.f32 %v4657_v48, 0.0  ;;  %v7453_v48 = vor.u32 %v7932_v43, %v7452_v12  ;;  %v7348_v12 = vld [vmem:[%s10508_s14 + $0x20] sm:$0xf] }
 0xc1d   : > { %v4581_v8 = vpop.f32.mrf.mxu2  ;;  %v7412_v43 = vld [vmem:[%s10508_s14 + $0xa0] sm:$0xf] }
 0xc1e   : > { %v4659_v9 = vpack.c.bf16 %v4658_v51, %v4658_v51  ;;  %v7444_v51 = vld [vmem:[%s10508_s14 + $0xe0] sm:$0xf]  ;;  %v7413_v4 = vor.u32 %v7922_v60, %v7412_v43  ;;  %v7961_v60 = vld [vmem:[%s10508_s14 + $0x1e4] sm:$0xf] }
 0xc1f   : > { %v7508_v8 = vld [vmem:[%s10508_s14 + $0x160] sm:$0xf] }
 0xc20   : > { %7194 = vmatmul.msk.bf16.vlgmr.msra.gmra.mxu1 %vm1243_vm2, %v4659_v9  ;;  %7195 = vmatmul.msk.bf16.vlgmr.msrb.gmra.mxu2 %vm1243_vm2, %v4659_v9  ;;  %v4788_v33 = vunpack.c.l.b16 %v4659_v9 }
 0xc21   : > { %7196 = vmatmul.msk.bf16.vlgmr.msrb.gmra.mxu3 %vm1243_vm2, %v4659_v9  ;;  %7197 = vmatmul.msk.bf16.vlgmr.msra.gmra.mxu0 %vm1243_vm2, %v4659_v9  ;;  %v7946_v9 = vld [vmem:[%s10508_s14 + $0x164] sm:$0xf0] }
 0xc22   : > { %4959 = vmatpush.bf16.msra.mxu1 %v7269_v31  ;;  %4972 = vmatpush.bf16.msrb.mxu2 %v7273_v59  ;;  %v4789_v1 = vpack.c.b16 %v4788_v33, %v4788_v33  ;;  %v7445_v31 = vor.u32 %v7930_v2, %v7444_v51  ;;  %v7509_v59 = vor.u32 %v7946_v9, %v7508_v8  ;;  %v7340_v51 = vld [vmem:[%s10508_s14 + $0x10] sm:$0xf] }
 0xc23   : > { %4985 = vmatpush.bf16.msrb.mxu3 %v7277_v34  ;;  %4998 = vmatpush.bf16.msra.mxu0 %v7281_v29  ;;  %v7573_v34 = vor.u32 %v7962_v27, %v7572_v20  ;;  %v7372_v29 = vld [vmem:[%s10508_s14 + $0x50] sm:$0xf]  ;;  %v7936_v20 = vld [vmem:[%s10508_s14 + $0x114] sm:$0xf0] }
 0xc24   : > { %v4791_v0 = vshrl.u32 %v4789_v1, 16  ;;  %v4909_v40 = vrot.slane %v4789_v1, 1  ;;  %v7373_v32 = vor.u32 %v7912_v14, %v7372_v29  ;;  %v7404_v2 = vld [vmem:[%s10508_s14 + $0x90] sm:$0xf] }
 0xc25   : > { %v7532_v14 = vld [vmem:[%s10508_s14 + $0x190] sm:$0xf] }
 0xc26   : > { %4960 = vmatpush.bf16.msra.mxu1 %v7253_v25  ;;  %4973 = vmatpush.bf16.msrb.mxu2 %v7257_v45  ;;  %v5026_v28 = vrot.slane %v4791_v0, 1  ;;  %v7437_v25 = vor.u32 %v7928_v11, %v7436_v30  ;;  %v7501_v45 = vor.u32 %v7944_v16, %v7500_v22  ;;  %v7952_v30 = vld [vmem:[%s10508_s14 + $0x194] sm:$0xf0]  ;;  %v7332_v16 = vld [vmem:[%s10508_s14] sm:$0xf] }
 0xc27   : > { %4986 = vmatpush.bf16.msrb.mxu3 %v7261_v13  ;;  %4999 = vmatpush.bf16.msra.mxu0 %v7265_v6  ;;  %v7564_v13 = vld [vmem:[%s10508_s14 + $0x1d0] sm:$0xf]  ;;  %v7960_v6 = vld [vmem:[%s10508_s14 + $0x1d4] sm:$0xf0]  ;;  %v7533_v11 = vor.u32 %v7952_v30, %v7532_v14  ;;  %v7925_v14 = vld [vmem:[%s10508_s14 + $0xc4] sm:$0xf] }
 0xc28   : > { %v7565_v1 = vor.u32 %v7960_v6, %v7564_v13  ;;  %v7918_v6 = vld [vmem:[%s10508_s14 + $0x84] sm:$0xf0] }
 0xc30   : > { %7238 = vmatmul.msk.bf16.vlgmr.msrb.gmra.mxu1 %vm1243_vm2, %v4791_v0  ;;  %7239 = vmatmul.msk.bf16.vlgmr.msra.gmra.mxu2 %vm1243_vm2, %v4791_v0 }
 0xc31   : > { %7240 = vmatmul.msk.bf16.vlgmr.msra.gmra.mxu3 %vm1243_vm2, %v4791_v0  ;;  %7241 = vmatmul.msk.bf16.vlgmr.msrb.gmra.mxu0 %vm1243_vm2, %v4791_v0  ;;  %v7942_v0 = vld [vmem:[%s10508_s14 + $0x144] sm:$0xf0] }
 0xc32   : > { %5076 = vmatpush.bf16.msrb.mxu1 %v7313_v46  ;;  %5089 = vmatpush.bf16.msra.mxu2 %v7317_v47  ;;  %v7556_v46 = vld [vmem:[%s10508_s14 + $0x1c0] sm:$0xf]  ;;  %v7958_v47 = vld [vmem:[%s10508_s14 + $0x1c4] sm:$0xf0]  ;;  %v7493_v5 = vor.u32 %v7942_v0, %v7492_v39  ;;  %v7390_v0 = vld [vmem:[%s10508_s14 + $0x78] sm:$0xf0] }
 0xc33   : > { %5102 = vmatpush.bf16.msra.mxu3 %v7321_v37  ;;  %5115 = vmatpush.bf16.msrb.mxu0 %v7325_v63  ;;  %v7557_v18 = vor.u32 %v7958_v47, %v7556_v46  ;;  %v7356_v37 = vld [vmem:[%s10508_s14 + $0x30] sm:$0xf]  ;;  %v7908_v63 = vld [vmem:[%s10508_s14 + $0x34] sm:$0xf0]  ;;  %v7931_v46 = vld [vmem:[%s10508_s14 + $0xf4] sm:$0xf] }
 0xc34   : > { %v7357_v54 = vor.u32 %v7908_v63, %v7356_v37  ;;  %v7518_v37 = vld [vmem:[%s10508_s14 + $0x178] sm:$0xf0] }
 0xc36   : > { %5077 = vmatpush.bf16.msrb.mxu1 %v7297_v58  ;;  %5090 = vmatpush.bf16.msra.mxu2 %v7301_v21  ;;  %v7421_v21 = vor.u32 %v7924_v53, %v7420_v26  ;;  %v7963_v53 = vld [vmem:[%s10508_s14 + $0x1f4] sm:$0xf] }
 0xc37   : > { %5103 = vmatpush.bf16.msra.mxu3 %v7305_v49  ;;  %5116 = vmatpush.bf16.msrb.mxu0 %v7309_v42  ;;  %v7485_v49 = vor.u32 %v7940_v17, %v7484_v15  ;;  %v7548_v42 = vld [vmem:[%s10508_s14 + $0x1b0] sm:$0xf]  ;;  %v7582_v15 = vld [vmem:[%s10508_s14 + $0x1f8] sm:$0xf0]  ;;  %v7913_v17 = vld [vmem:[%s10508_s14 + $0x64] sm:$0xf] }
 0xc40   : > { %7282 = vmatmul.msk.bf16.vlgmr.msra.gmra.mxu1 %vm1243_vm2, %v4909_v40  ;;  %7283 = vmatmul.msk.bf16.vlgmr.msrb.gmra.mxu2 %vm1243_vm2, %v4909_v40 }
 0xc41   : > { %7284 = vmatmul.msk.bf16.vlgmr.msrb.gmra.mxu3 %vm1243_vm2, %v4909_v40  ;;  %7285 = vmatmul.msk.bf16.vlgmr.msra.gmra.mxu0 %vm1243_vm2, %v4909_v40  ;;  %v7956_v40 = vld [vmem:[%s10508_s14 + $0x1b4] sm:$0xf0] }
 0xc42   : > { %5538 = vmatpush.bf16.msra.mxu1 %v7389_v41  ;;  %5551 = vmatpush.bf16.msrb.mxu2 %v7453_v48  ;;  %v7549_v36 = vor.u32 %v7956_v40, %v7548_v42  ;;  %v7906_v41 = vld [vmem:[%s10508_s14 + $0x24] sm:$0xf0]  ;;  %v7476_v48 = vld [vmem:[%s10508_s14 + $0x120] sm:$0xf]  ;;  %v7382_v42 = vld [vmem:[%s10508_s14 + $0x68] sm:$0xf0] }
 0xc43   : > { %5564 = vmatpush.bf16.msrb.mxu3 %v7517_v56  ;;  %5577 = vmatpush.bf16.msra.mxu0 %v7581_v52  ;;  %v7349_v3 = vor.u32 %v7906_v41, %v7348_v12  ;;  %v7938_v56 = vld [vmem:[%s10508_s14 + $0x124] sm:$0xf0]  ;;  %v7540_v52 = vld [vmem:[%s10508_s14 + $0x1a0] sm:$0xf]  ;;  %v7929_v40 = vld [vmem:[%s10508_s14 + $0xe4] sm:$0xf] }
 0xc44   : > { %v7477_v61 = vor.u32 %v7938_v56, %v7476_v48  ;;  %v7541_v55 = vor.u32 %v7954_v35, %v7540_v52  ;;  %v7945_v12 = vld [vmem:[%s10508_s14 + $0x164] sm:$0xf]  ;;  %v7574_v48 = vld [vmem:[%s10508_s14 + $0x1e8] sm:$0xf0]  ;;  %v7374_v52 = vld [vmem:[%s10508_s14 + $0x58] sm:$0xf0] }
 0xc45   : > { %v7927_v35 = vld [vmem:[%s10508_s14 + $0xd4] sm:$0xf] }
 0xc46   : > { %5539 = vmatpush.bf16.msra.mxu1 %v7381_v7  ;;  %5552 = vmatpush.bf16.msrb.mxu2 %v7445_v31  ;;  %v7904_v7 = vld [vmem:[%s10508_s14 + $0x14] sm:$0xf0] }
 0xc47   : > { %5565 = vmatpush.bf16.msrb.mxu3 %v7509_v59  ;;  %5578 = vmatpush.bf16.msra.mxu0 %v7573_v34  ;;  %v7341_v9 = vor.u32 %v7904_v7, %v7340_v51  ;;  %v7920_v31 = vld [vmem:[%s10508_s14 + $0x94] sm:$0xf0]  ;;  %v7468_v59 = vld [vmem:[%s10508_s14 + $0x110] sm:$0xf]  ;;  %v7438_v51 = vld [vmem:[%s10508_s14 + $0xd8] sm:$0xf0] }
 0xc48   : > { %v7405_v34 = vor.u32 %v7920_v31, %v7404_v2  ;;  %v7469_v29 = vor.u32 %v7936_v20, %v7468_v59  ;;  %v7943_v7 = vld [vmem:[%s10508_s14 + $0x154] sm:$0xf]  ;;  %v7502_v2 = vld [vmem:[%s10508_s14 + $0x158] sm:$0xf0] }
 0xc49   : > { %v7959_v31 = vld [vmem:[%s10508_s14 + $0x1d4] sm:$0xf]  ;;  %v7566_v59 = vld [vmem:[%s10508_s14 + $0x1d8] sm:$0xf0] }
 0xc4a   : > { %5540 = vmatpush.bf16.msra.mxu1 %v7373_v32  ;;  %5553 = vmatpush.bf16.msrb.mxu2 %v7437_v25  ;;  %v7902_v25 = vld [vmem:[%s10508_s14 + $0x4] sm:$0xf0]  ;;  %v7569_v20 = vor.u32 %v7959_v31, %v7566_v59  ;;  %v7951_v31 = vld [vmem:[%s10508_s14 + $0x194] sm:$0xf]  ;;  %v7534_v59 = vld [vmem:[%s10508_s14 + $0x198] sm:$0xf0] }
 0xc4b   : > { %5566 = vmatpush.bf16.msrb.mxu3 %v7501_v45  ;;  %5579 = vmatpush.bf16.msra.mxu0 %v7565_v1  ;;  %v7396_v45 = vld [vmem:[%s10508_s14 + $0x80] sm:$0xf]  ;;  %v7333_v13 = vor.u32 %v7902_v25, %v7332_v16  ;;  %v7430_v16 = vld [vmem:[%s10508_s14 + $0xc8] sm:$0xf0]  ;;  %v7941_v25 = vld [vmem:[%s10508_s14 + $0x144] sm:$0xf] }
 0xc4c   : > { %v7460_v1 = vld [vmem:[%s10508_s14 + $0x100] sm:$0xf]  ;;  %v7397_v19 = vor.u32 %v7918_v6, %v7396_v45  ;;  %v7494_v45 = vld [vmem:[%s10508_s14 + $0x148] sm:$0xf0]  ;;  %v7433_v6 = vor.u32 %v7925_v14, %v7430_v16 }
 0xc4d   : > { %v7461_v50 = vor.u32 %v7934_v62, %v7460_v1  ;;  %v7497_v1 = vor.u32 %v7941_v25, %v7494_v45  ;;  %v7558_v62 = vld [vmem:[%s10508_s14 + $0x1c8] sm:$0xf0] }
 0xc4e   : > { %5541 = vmatpush.bf16.msra.mxu1 %v7365_v10  ;;  %5554 = vmatpush.bf16.msrb.mxu2 %v7429_v38  ;;  %v7950_v10 = vld [vmem:[%s10508_s14 + $0x184] sm:$0xf0]  ;;  %v7915_v38 = vld [vmem:[%s10508_s14 + $0x74] sm:$0xf]  ;;  %v7398_v14 = vld [vmem:[%s10508_s14 + $0x88] sm:$0xf0] }
 0xc4f   : > { %5567 = vmatpush.bf16.msrb.mxu3 %v7493_v5  ;;  %5580 = vmatpush.bf16.msra.mxu0 %v7557_v18  ;;  %v7525_v39 = vor.u32 %v7950_v10, %v7524_v23  ;;  %v7393_v47 = vor.u32 %v7915_v38, %v7390_v0  ;;  %v7454_v5 = vld [vmem:[%s10508_s14 + $0xf8] sm:$0xf0]  ;;  %v7947_v18 = vld [vmem:[%s10508_s14 + $0x174] sm:$0xf] }
 0xc50   : > { %7326 = vmatmul.msk.bf16.vlgmr.msrb.gmra.mxu1 %vm1243_vm2, %v5026_v28  ;;  %7327 = vmatmul.msk.bf16.vlgmr.msra.gmra.mxu2 %vm1243_vm2, %v5026_v28  ;;  %v7457_v26 = vor.u32 %v7931_v46, %v7454_v5  ;;  %v7923_v38 = vld [vmem:[%s10508_s14 + $0xb4] sm:$0xf]  ;;  %v7422_v46 = vld [vmem:[%s10508_s14 + $0xb8] sm:$0xf0] }
 0xc51   : > { %7328 = vmatmul.msk.bf16.vlgmr.msra.gmra.mxu3 %vm1243_vm2, %v5026_v28  ;;  %7329 = vmatmul.msk.bf16.vlgmr.msrb.gmra.mxu0 %vm1243_vm2, %v5026_v28  ;;  %v7486_v5 = vld [vmem:[%s10508_s14 + $0x138] sm:$0xf0] }
 0xc52   : > { %5542 = vmatpush.bf16.msra.mxu1 %v7357_v54  ;;  %5555 = vmatpush.bf16.msrb.mxu2 %v7421_v21  ;;  %v7521_v54 = vor.u32 %v7947_v18, %v7518_v37  ;;  %v7425_v18 = vor.u32 %v7923_v38, %v7422_v46 }
 0xc53   : > { %5568 = vmatpush.bf16.msrb.mxu3 %v7485_v49  ;;  %5581 = vmatpush.bf16.msra.mxu0 %v7549_v36  ;;  %v7585_v49 = vor.u32 %v7963_v53, %v7582_v15  ;;  %v7385_v36 = vor.u32 %v7913_v17, %v7382_v42  ;;  %v7905_v53 = vld [vmem:[%s10508_s14 + $0x24] sm:$0xf] }
 0xc54   : > { %v7921_v42 = vld [vmem:[%s10508_s14 + $0xa4] sm:$0xf] }
 0xc56   : > { %5543 = vmatpush.bf16.msra.mxu1 %v7349_v3  ;;  %5556 = vmatpush.bf16.msrb.mxu2 %v7413_v4  ;;  %v7510_v3 = vld [vmem:[%s10508_s14 + $0x168] sm:$0xf0]  ;;  %v7577_v4 = vor.u32 %v7961_v60, %v7574_v48  ;;  %v7953_v48 = vld [vmem:[%s10508_s14 + $0x1a4] sm:$0xf] }
 0xc57   : > { %5569 = vmatpush.bf16.msrb.mxu3 %v7477_v61  ;;  %5582 = vmatpush.bf16.msra.mxu0 %v7541_v55  ;;  %v7513_v56 = vor.u32 %v7945_v12, %v7510_v3  ;;  %v7911_v61 = vld [vmem:[%s10508_s14 + $0x54] sm:$0xf]  ;;  %v7478_v12 = vld [vmem:[%s10508_s14 + $0x128] sm:$0xf0] }
 0xc58   : > { %v7377_v55 = vor.u32 %v7911_v61, %v7374_v52  ;;  %v7342_v52 = vld [vmem:[%s10508_s14 + $0x18] sm:$0xf0] }
 0xc5a   : > { %5544 = vmatpush.bf16.msra.mxu1 %v7341_v9  ;;  %5557 = vmatpush.bf16.msrb.mxu2 %v7405_v34  ;;  %v7505_v9 = vor.u32 %v7943_v7, %v7502_v2  ;;  %v7909_v34 = vld [vmem:[%s10508_s14 + $0x44] sm:$0xf]  ;;  %v7470_v7 = vld [vmem:[%s10508_s14 + $0x118] sm:$0xf0] }
 0xc5b   : > { %5570 = vmatpush.bf16.msrb.mxu3 %v7469_v29  ;;  %5583 = vmatpush.bf16.msra.mxu0 %v7533_v11  ;;  %v7366_v29 = vld [vmem:[%s10508_s14 + $0x48] sm:$0xf0] }
 0xc5c   : > { %v7369_v11 = vor.u32 %v7909_v34, %v7366_v29  ;;  %v7917_v34 = vld [vmem:[%s10508_s14 + $0x84] sm:$0xf]  ;;  %v7537_v29 = vor.u32 %v7951_v31, %v7534_v59  ;;  %v7970_v31 = vld [vmem:[%s10510_s16 + $0x28] sm:$0xff] }
 0xc5d   : > { %v7969_v59 = vld [vmem:[%s10510_s16 + $0x20] sm:$0xff] }
 0xc5e   : > { %5545 = vmatpush.bf16.msra.mxu1 %v7333_v13  ;;  %5558 = vmatpush.bf16.msrb.mxu2 %v7397_v19  ;;  %v7957_v19 = vld [vmem:[%s10508_s14 + $0x1c4] sm:$0xf] }
 0xc5f   : > { %5571 = vmatpush.bf16.msrb.mxu3 %v7461_v50  ;;  %5584 = vmatpush.bf16.msra.mxu0 %v7525_v39  ;;  %v7561_v10 = vor.u32 %v7957_v19, %v7558_v62  ;;  %v7907_v50 = vld [vmem:[%s10508_s14 + $0x34] sm:$0xf]  ;;  %v7358_v39 = vld [vmem:[%s10508_s14 + $0x38] sm:$0xf0] }
 0xc60   : > { %v7361_v0 = vor.u32 %v7907_v50, %v7358_v39 }
 0xc62   : > { %5590 = vmatpush.bf16.msrb.mxu1 %v7393_v47  ;;  %5603 = vmatpush.bf16.msra.mxu2 %v7457_v26  ;;  %v7939_v47 = vld [vmem:[%s10508_s14 + $0x134] sm:$0xf] }
 0xc63   : > { %5616 = vmatpush.bf16.msra.mxu3 %v7521_v54  ;;  %5629 = vmatpush.bf16.msrb.mxu0 %v7585_v49  ;;  %v7489_v37 = vor.u32 %v7939_v47, %v7486_v5  ;;  %v7955_v26 = vld [vmem:[%s10508_s14 + $0x1b4] sm:$0xf]  ;;  %v7550_v54 = vld [vmem:[%s10508_s14 + $0x1b8] sm:$0xf0]  ;;  %v7350_v49 = vld [vmem:[%s10508_s14 + $0x28] sm:$0xf0] }
 0xc64   : > { %v7553_v17 = vor.u32 %v7955_v26, %v7550_v54 }
 0xc66   : > { %5591 = vmatpush.bf16.msrb.mxu1 %v7385_v36  ;;  %v7353_v36 = vor.u32 %v7905_v53, %v7350_v49 }
 0xc67   : > { %5617 = vmatpush.bf16.msra.mxu3 %v7513_v56  ;;  %5630 = vmatpush.bf16.msrb.mxu0 %v7577_v4  ;;  %v7542_v56 = vld [vmem:[%s10508_s14 + $0x1a8] sm:$0xf0] }
 0xc68   : > { %v7545_v61 = vor.u32 %v7953_v48, %v7542_v56 }
 0xc6a   : > { %5592 = vmatpush.bf16.msrb.mxu1 %v7377_v55  ;;  %v7406_v55 = vld [vmem:[%s10508_s14 + $0x98] sm:$0xf0] }
 0xc6b   : > { %5618 = vmatpush.bf16.msra.mxu3 %v7505_v9  ;;  %5631 = vmatpush.bf16.msrb.mxu0 %v7569_v20 }
 0xc6e   : > { %5593 = vmatpush.bf16.msrb.mxu1 %v7369_v11  ;;  %v7462_v11 = vld [vmem:[%s10508_s14 + $0x108] sm:$0xf0] }
 0xc6f   : > { %5619 = vmatpush.bf16.msra.mxu3 %v7497_v1  ;;  %5632 = vmatpush.bf16.msrb.mxu0 %v7561_v10  ;;  %v7526_v1 = vld [vmem:[%s10508_s14 + $0x188] sm:$0xf0] }
 0xc72   : > { %5594 = vmatpush.bf16.msrb.mxu1 %v7361_v0  ;;  %v7401_v0 = vor.u32 %v7917_v34, %v7398_v14  ;;  %v7966_v34 = vld [vmem:[%s10510_s16 + $0x8] sm:$0xff]  ;;  %v7965_v14 = vld [vmem:[%s10510_s16] sm:$0xff] }
 0xc73   : > { %5620 = vmatpush.bf16.msra.mxu3 %v7489_v37  ;;  %5633 = vmatpush.bf16.msrb.mxu0 %v7553_v17  ;;  %v4660_v37 = vld [vmem:[%s10507_s13] sm:$0xf] }
 0xc76   : > { %5595 = vmatpush.bf16.msrb.mxu1 %v7353_v36 }
 0xc77   : > { %5634 = vmatpush.bf16.msrb.mxu0 %v7545_v61 }
 0xc7b   : > { %5635 = vmatpush.bf16.msrb.mxu0 %v7537_v29  ;;  %v7978_v29 = vld [vmem:[%s10510_s16 + $0x68] sm:$0xff] }
 0xc9d   : > { %v10045_v33 = vpop.f32.mrf.mxu1 }
 0xc9e   : > { %v10047_v44 = vpop.f32.mrf.mxu0 }
 0xca3   : > { %v10082_v24 = vpop.f32.mrf.mxu2 }
 0xca4   : > { %v10093_v58 = vpop.f32.mrf.mxu3  ;;  %v4768_v2 = vrot.slane %v10082_v24, 7  ;;  %v7901_v24 = vld [vmem:[%s10508_s14 + $0x4] sm:$0xf] }
 0xca5   : > { %v4723_v28 = vpop.f32.mrf.mxu1 }
 0xca6   : > { %v4762_v57 = vpop.f32.mrf.mxu0  ;;  %v4772_v19 = vsel %vm4771_vm6, %v10045_v33, %v4768_v2 }
 0xca7   : > { %v7446_v57 = vld [vmem:[%s10508_s14 + $0xe8] sm:$0xf0] }
 0xca8   : > { %v7449_v43 = vor.u32 %v7929_v40, %v7446_v57  ;;  %v7414_v40 = vld [vmem:[%s10508_s14 + $0xa8] sm:$0xf0]  ;;  %v7937_v57 = vld [vmem:[%s10508_s14 + $0x124] sm:$0xf] }
 0xca9   : > { %v7417_v3 = vor.u32 %v7921_v42, %v7414_v40  ;;  %v7481_v60 = vor.u32 %v7937_v57, %v7478_v12 }
 0xcaa   : > { %5604 = vmatpush.bf16.msra.mxu2 %v7449_v43 }
 0xcab   : > { %v4736_v8 = vpop.f32.mrf.mxu2  ;;  %5621 = vmatpush.bf16.msra.mxu3 %v7481_v60 }
 0xcac   : > { %v4749_v27 = vpop.f32.mrf.mxu3  ;;  %v7441_v8 = vor.u32 %v7927_v35, %v7438_v51  ;;  %v7919_v35 = vld [vmem:[%s10508_s14 + $0x94] sm:$0xf] }
 0xcad   : > { %v10149_v32 = vpop.f32.mrf.mxu1  ;;  %v7935_v51 = vld [vmem:[%s10508_s14 + $0x114] sm:$0xf]  ;;  %v7409_v20 = vor.u32 %v7919_v35, %v7406_v55 }
 0xcae   : > { %v10151_v22 = vpop.f32.mrf.mxu0  ;;  %5605 = vmatpush.bf16.msra.mxu2 %v7441_v8  ;;  %v4769_v8 = vrot.slane %v10093_v58, 6  ;;  %v7334_v58 = vld [vmem:[%s10508_s14 + $0x8] sm:$0xf0] }
 0xcaf   : > { %v4894_v10 = vrot.slane %v10151_v22, 5 }
 0xcb2   : > { %5606 = vmatpush.bf16.msra.mxu2 %v7433_v6  ;;  %v7949_v6 = vld [vmem:[%s10508_s14 + $0x184] sm:$0xf] }
 0xcb3   : > { %v10195_v63 = vpop.f32.mrf.mxu2  ;;  %v7529_v5 = vor.u32 %v7949_v6, %v7526_v1  ;;  %v5212_v6 = vld [vmem:[%s10509_s15] sm:$0x3] }
 0xcb4   : > { %v10206_v21 = vpop.f32.mrf.mxu3  ;;  %v4892_v16 = vrot.slane %v10195_v63, 7  ;;  %v7337_v63 = vor.u32 %v7901_v24, %v7334_v58  ;;  %v7967_v24 = vld [vmem:[%s10510_s16 + $0x10] sm:$0xff] }
 0xcb5   : > { %v4847_v28 = vpop.f32.mrf.mxu1  ;;  %v4893_v25 = vrot.slane %v10206_v21, 6  ;;  %5636 = vmatpush.bf16.msrb.mxu0 %v7529_v5  ;;  %v7979_v58 = vld [vmem:[%s10510_s16 + $0x70] sm:$0xff] }
 0xcb6   : > { %v4886_v41 = vpop.f32.mrf.mxu0  ;;  %5607 = vmatpush.bf16.msra.mxu2 %v7425_v18  ;;  %v4895_v33 = vsel %vm4771_vm6, %v10149_v32, %v4892_v16  ;;  %v7975_v16 = vld [vmem:[%s10510_s16 + $0x50] sm:$0xff] }
 0xcb7   : > { %v4770_v41 = vrot.slane %v10047_v44, 5  ;;  %v7903_v44 = vld [vmem:[%s10508_s14 + $0x14] sm:$0xf]  ;;  %v4896_v22 = vsel %vm4773_vm7, %v4893_v25, %v4894_v10  ;;  %v7974_v25 = vld [vmem:[%s10510_s16 + $0x48] sm:$0xff] }
 0xcb8   : > { %v7345_v9 = vor.u32 %v7903_v44, %v7342_v52  ;;  %v4897_v32 = vsel %vm1081_vm0, %v4895_v33, %v4896_v22 }
 0xcb9   : > { %v4774_v62 = vsel %vm4773_vm7, %v4769_v8, %v4770_v41  ;;  %v7972_v8 = vld [vmem:[%s10510_s16 + $0x38] sm:$0xff] }
 0xcba   : > { %5608 = vmatpush.bf16.msra.mxu2 %v7417_v3  ;;  %5596 = vmatpush.bf16.msrb.mxu1 %v7345_v9  ;;  %v4775_v26 = vsel %vm1081_vm0, %v4772_v19, %v4774_v62  ;;  %v7971_v9 = vld [vmem:[%s10510_s16 + $0x30] sm:$0xff]  ;;  %v5534_v19 = vperm.slane %v5212_v6, 0 }
 0xcbb   : > { %v4860_v27 = vpop.f32.mrf.mxu2 }
 0xcbc   : > { %v4873_v30 = vpop.f32.mrf.mxu3  ;;  %v7473_v27 = vor.u32 %v7935_v51, %v7470_v7 }
 0xcbd   : > { %v10271_v13 = vpop.f32.mrf.mxu1  ;;  %v7933_v30 = vld [vmem:[%s10508_s14 + $0x104] sm:$0xf] }
 0xcbe   : > { %v10279_v23 = vpop.f32.mrf.mxu0  ;;  %5609 = vmatpush.bf16.msra.mxu2 %v7409_v20  ;;  %5622 = vmatpush.bf16.msra.mxu3 %v7473_v27  ;;  %v7465_v46 = vor.u32 %v7933_v30, %v7462_v11  ;;  %v7968_v20 = vld [vmem:[%s10510_s16 + $0x18] sm:$0xff]  ;;  %v7977_v30 = vld [vmem:[%s10510_s16 + $0x60] sm:$0xff] }
 0xcbf   : > { %v5011_v18 = vrot.slane %v10279_v23, 5  ;;  %5597 = vmatpush.bf16.msrb.mxu1 %v7337_v63  ;;  %v7980_v27 = vld [vmem:[%s10510_s16 + $0x78] sm:$0xff] }
 0xcc0   : > { %v7976_v11 = vld [vmem:[%s10510_s16 + $0x58] sm:$0xff] }
 0xcc2   : > { %5610 = vmatpush.bf16.msra.mxu2 %v7401_v0  ;;  %5623 = vmatpush.bf16.msra.mxu3 %v7465_v46 }
 0xcc3   : > { %v10308_v15 = vpop.f32.mrf.mxu2 }
 0xcc4   : > { %v10319_v28 = vpop.f32.mrf.mxu3  ;;  %v5009_v21 = vrot.slane %v10308_v15, 7  ;;  %v4777_v15 = vadd.f32 %v4775_v26, %v4660_v37  ;;  %v5535_v37 = vperm.slane %v5212_v6, 1 }
 0xcc5   : > { %v4964_v43 = vpop.f32.mrf.mxu1  ;;  %v5010_v39 = vrot.slane %v10319_v28, 6 }
 0xcc6   : > { %v5003_v4 = vpop.f32.mrf.mxu0  ;;  %v5012_v54 = vsel %vm4771_vm6, %v10271_v13, %v5009_v21  ;;  %v4899_v40 = vadd.f32 %v4897_v32, %v4777_v15 }
 0xcc7   : > { %v5013_v53 = vsel %vm4773_vm7, %v5010_v39, %v5011_v18 }
 0xcc8   : > { %v5014_v23 = vsel %vm1081_vm0, %v5012_v54, %v5013_v53 }
 0xcc9   : > { %v5016_v41 = vadd.f32 %v5014_v23, %v4899_v40 }
 0xccb   : > { %v4977_v45 = vpop.f32.mrf.mxu2 }
 0xccc   : > { %v4990_v50 = vpop.f32.mrf.mxu3  ;;  %v7973_v45 = vld [vmem:[%s10510_s16 + $0x40] sm:$0xff] }
 0xccd   : > { %v5079_v38 = vpop.f32.mrf.mxu1 }
 0xcce   : > { %v5118_v47 = vpop.f32.mrf.mxu0 }
 0xccf   : > { %v5128_v28 = vrot.slane %v5118_v47, 5 }
 0xcd3   : > { %v5092_v17 = vpop.f32.mrf.mxu2 }
 0xcd4   : > { %v5126_v49 = vrot.slane %v5092_v17, 7  ;;  %v5105_v42 = vpop.f32.mrf.mxu3 }
 0xcd5   : > { %v5127_v36 = vrot.slane %v5105_v42, 6  ;;  %v5081_v57 = vpop.f32.mrf.mxu1 }
 0xcd6   : > { %v5129_v12 = vsel %vm4771_vm6, %v5079_v38, %v5126_v49  ;;  %v5120_v13 = vpop.f32.mrf.mxu0 }
 0xcd7   : > { %v5130_v43 = vsel %vm4773_vm7, %v5127_v36, %v5128_v28 }
 0xcd8   : > { %v5131_v3 = vsel %vm1081_vm0, %v5129_v12, %v5130_v43 }
 0xcd9   : > { %v5133_v60 = vadd.f32 %v5131_v3, %v5016_v41  ;;  %v5678_v41 = vld [vmem:[%s10543_s30] sm:$0x1] }
 0xcdb   : > { %v5134_v48 = vmax.f32 %v5133_v60, 0.0  ;;  %v5094_v56 = vpop.f32.mrf.mxu2 }
 0xcdc   : > { %v5107_v4 = vpop.f32.mrf.mxu3 }
 0xcdd   : > { %v5136_v61 = vperm.slane %v5134_v48, 0  ;;  %v5137_v44 = vperm.slane %v5134_v48, 1  ;;  %v5138_v52 = vperm.slane %v5134_v48, 2  ;;  %v5139_v35 = vperm.slane %v5134_v48, 3 }
 0xcdf   : > { %v5144_v55 = vpack.c.bf16 %v5136_v61, %v5136_v61  ;;  %v5145_v51 = vpack.c.bf16 %v5137_v44, %v5137_v44  ;;  %v5146_v7 = vpack.c.bf16 %v5138_v52, %v5138_v52  ;;  %v5147_v2 = vpack.c.bf16 %v5139_v35, %v5139_v35 }
 0xce1   : > { %5546 = vmatmul.bf16.vlgmr.msra.gmra.mxu1 %v5144_v55  ;;  %5559 = vmatmul.bf16.vlgmr.msrb.gmra.mxu2 %v5145_v51 }
 0xce2   : > { %5572 = vmatmul.bf16.vlgmr.msrb.gmra.mxu3 %v5146_v7  ;;  %5585 = vmatmul.bf16.vlgmr.msra.gmra.mxu0 %v5147_v2 }
 0xce3   : > { %5775 = vmatpush.bf16.msra.mxu1 %v7972_v8  ;;  %5788 = vmatpush.bf16.msrb.mxu2 %v7980_v27 }
 0xce7   : > { %5776 = vmatpush.bf16.msra.mxu1 %v7971_v9  ;;  %5789 = vmatpush.bf16.msrb.mxu2 %v7979_v58 }
 0xceb   : > { %5777 = vmatpush.bf16.msra.mxu1 %v7970_v31  ;;  %5790 = vmatpush.bf16.msrb.mxu2 %v7978_v29 }
 0xcef   : > { %5778 = vmatpush.bf16.msra.mxu1 %v7969_v59  ;;  %5791 = vmatpush.bf16.msrb.mxu2 %v7977_v30 }
 0xcf1   : > { %5598 = vmatmul.bf16.vlgmr.msrb.gmra.mxu1 %v5144_v55  ;;  %5611 = vmatmul.bf16.vlgmr.msra.gmra.mxu2 %v5145_v51 }
 0xcf2   : > { %5624 = vmatmul.bf16.vlgmr.msra.gmra.mxu3 %v5146_v7  ;;  %5637 = vmatmul.bf16.vlgmr.msrb.gmra.mxu0 %v5147_v2 }
 0xcf3   : > { %5779 = vmatpush.bf16.msra.mxu1 %v7968_v20  ;;  %5792 = vmatpush.bf16.msrb.mxu2 %v7976_v11 }
 0xcf7   : > { %5780 = vmatpush.bf16.msra.mxu1 %v7967_v24  ;;  %5793 = vmatpush.bf16.msrb.mxu2 %v7975_v16 }
 0xcfb   : > { %5781 = vmatpush.bf16.msra.mxu1 %v7966_v34  ;;  %5794 = vmatpush.bf16.msrb.mxu2 %v7974_v25 }
 0xcff   : > { %5782 = vmatpush.bf16.msra.mxu1 %v7965_v14  ;;  %5795 = vmatpush.bf16.msrb.mxu2 %v7973_v45 }
 0xd5e   : > { %v5547_v1 = vpop.f32.mrf.mxu1 }
 0xd5f   : > { %v5586_v62 = vpop.f32.mrf.mxu0  ;;  %v5548_v10 = vadd.f32 %v5547_v1, %v5534_v19 }
 0xd64   : > { %v5560_v50 = vpop.f32.mrf.mxu2 }
 0xd65   : > { %v5561_v63 = vadd.f32 %v5560_v50, %v5548_v10  ;;  %v5573_v21 = vpop.f32.mrf.mxu3 }
 0xd66   : > { %v5549_v39 = vpop.f32.mrf.mxu1 }
 0xd67   : > { %v5574_v38 = vadd.f32 %v5573_v21, %v5561_v63  ;;  %v5588_v0 = vpop.f32.mrf.mxu0 }
 0xd69   : > { %v5587_v46 = vadd.f32 %v5586_v62, %v5574_v38 }
 0xd6b   : > { %v5642_v47 = vmax.f32 %v5587_v46, 0.0 }
 0xd6c   : > { %v5562_v5 = vpop.f32.mrf.mxu2 }
 0xd6d   : > { %v5644_v33 = vpack.c.bf16 %v5642_v47, %v5642_v47  ;;  %v5575_v22 = vpop.f32.mrf.mxu3 }
 0xd6e   : > { %v5599_v18 = vpop.f32.mrf.mxu1 }
 0xd6f   : > { %v5638_v26 = vpop.f32.mrf.mxu0  ;;  %5783 = vmatmul.bf16.vlgmr.msra.gmra.mxu1 %v5644_v33  ;;  %v5600_v54 = vadd.f32 %v5599_v18, %v5535_v37 }
 0xd74   : > { %v5612_v53 = vpop.f32.mrf.mxu2 }
 0xd75   : > { %v5613_v32 = vadd.f32 %v5612_v53, %v5600_v54  ;;  %v5625_v15 = vpop.f32.mrf.mxu3 }
 0xd76   : > { %v5601_v17 = vpop.f32.mrf.mxu1 }
 0xd77   : > { %v5626_v23 = vadd.f32 %v5625_v15, %v5613_v32  ;;  %v5640_v49 = vpop.f32.mrf.mxu0 }
 0xd79   : > { %v5639_v42 = vadd.f32 %v5638_v26, %v5626_v23 }
 0xd7b   : > { %v5643_v40 = vmax.f32 %v5639_v42, 0.0 }
 0xd7c   : > { %v5614_v28 = vpop.f32.mrf.mxu2 }
 0xd7d   : > { %v5645_v36 = vpack.c.bf16 %v5643_v40, %v5643_v40  ;;  %v5627_v57 = vpop.f32.mrf.mxu3 }
 0xd7f   : > { %5796 = vmatmul.bf16.vlgmr.msrb.gmra.mxu2 %v5645_v36 }
 0xdec   : > { %v5784_v12 = vpop.f32.mrf.mxu1 }
 0xded   : > { %v5785_v43 = vadd.f32 %v5784_v12, %v5678_v41 }
 0xdf4   : > { %v5786_v13 = vpop.f32.mrf.mxu1 }
 0xe02   : > { %v5797_v3 = vpop.f32.mrf.mxu2 }
 0xe03   : > { %v5798_v60 = vadd.f32 %v5797_v3, %v5785_v43 }
 0xe05   : > { %5801 = vst [vmem:[%s567_s20] sm:$0x1] %v5798_v60 }
 0xe06   : > { %8052 = shalt.err (!%p8049_p3)
}
 0xe07   : > { %7982 = dma.vmem_to_hbm [thread:$0]  (%p8222_p5), %s5814_s21, 16, %s5816_s27, %s5803_s29  }
 0xe0a   : > { %v5799_v48 = vpop.f32.mrf.mxu2 }
 0xe0b PF: > { %s10545_s23 = sld [smem:[#allocation7_spill]] }
 0xe0c   : > { %s10546_s18 = sld [smem:[#allocation5_spill]] }
 0xe11   : > { %p7988_p4 = scmp.ge.s32.totalorder %s10545_s23, 2 }
 0xe12   : > { %s5827_s20 = sand.u32 1, %s10546_s18  }
 0xe13   : > { %p7985_p7 = pnand %p7988_p4, %p8226_p6  ;;  %s5828_s0 = scalar_lea.sflag [#allocation3], %s5827_s20 }
 0xe15   : > { %p7986_p8 = pneg %p7985_p7 }
 0xe17   : > { %8070 = dma.done.wait (%p7986_p8), %s5828_s0, 16  }
 0xe18   : > { %8072 = vsyncadd (%p7986_p8), %s5828_s0, 4294967280  ;;  %s10548_s30 = sld [smem:[#allocation8_spill]]  ;;  %s10551_s27 = smov %s8079_s28 }
 0xe19   : > { %s10549_s3 = sld [smem:[#allocation6_spill]] }
 0xe1a   : > { %s10550_s29 = sld [smem:[#allocation9_spill]] }
 0xe1e   : > { %p28_p9 = scmp.ge.s32.totalorder %s10548_s30, 4  }
 0xe1f   : > { %s10552_s28 = smov %s10549_s3 }
 0xe20   :  { %30 = sbr.rel (!%p28_p9) target bundleno = 10 (0xa), region = 192 }
 0xe25   :  { %5833 = vsyncpa [#allocation3], 1 }
 0xe26   :  { %5835 = vsyncpa [#allocation3 + $0x1], 1 }

</bundles_post_ra>
